<compile_context>
chip_gen: v7x
topology: tpu7x:2x2x1
jax: 0.10.0
libtpu: 0.0.40
codegen_flags: <defaults>
</compile_context>

<pallas_src>
import jax
import jax.numpy as jnp
import numpy as np
from jax.experimental import pallas as pl
from jax.experimental.pallas import tpu as pltpu


# ----------------------------------------------------------------------------
# Fused kernel.  One grid step == one block of B images; everything VMEM-resident.
# Activations are 2-D (rows = batch*spatial, lanes = channels) throughout, so every
# matmul is a plain 2-D MXU GEMM and no in-kernel reshapes/transposes are needed.
# ----------------------------------------------------------------------------
def _extra_convs_kernel(x_ref, w61_ref, b61_ref, g6_ref, w62_ref, b62_ref,
                        w71_ref, b71_ref, g7_ref, w72_ref, b72_ref,
                        out6_ref, out7_ref,
                        t1_ref, tap6_ref, acc6_ref, t3_ref, tap7_ref, acc7_ref):
    f32, bf16 = jnp.float32, jnp.bfloat16

    hw = g6_ref.shape[1]          # input spatial size (h*w) per image
    m6 = g6_ref.shape[0] // 9     # conv6_2 output spatial size per image
    m7 = g7_ref.shape[0] // 9     # conv7_2 output spatial size per image
    B = x_ref.shape[0] // hw      # images per grid step
    c2 = w62_ref.shape[2]
    c4 = w72_ref.shape[2]

    # ---- conv6_1: 1x1 conv + bias + ReLU as ONE lane-dense MXU GEMM (M = B*hw) ----
    t1 = jnp.dot(x_ref[...], w61_ref[...], preferred_element_type=f32) + b61_ref[...]
    t1_ref[...] = jnp.maximum(t1, 0.0).astype(bf16)

    # ---- conv6_2: 3x3 stride-2 pad-1 + ReLU -------------------------------------
    # Per image: one stacked gather GEMM (rows = tap-major one-hot selectors, M=9*m6)
    # pulls all 9 taps out of t1 at once (exact 0/1 selection -> bf16 cast lossless),
    # then 9 accumulating weight GEMMs run with M = B*m6 across the whole block.
    g6 = g6_ref[...]
    for b in range(B):
        gth = jnp.dot(g6, t1_ref[b * hw:(b + 1) * hw, :],
                      preferred_element_type=f32).astype(bf16)          # (9*m6, c1)
        for t in range(9):
            tap6_ref[t, b * m6:(b + 1) * m6, :] = gth[t * m6:(t + 1) * m6, :]

    acc6_ref[...] = jnp.zeros((B * m6, c2), f32) + b62_ref[...]         # bias once
    for t in range(9):
        acc6_ref[...] += jnp.dot(tap6_ref[t], w62_ref[t],
                                 preferred_element_type=f32)
    out6 = jnp.maximum(acc6_ref[...], 0.0)                              # (B*m6, c2)
    out6_ref[...] = out6.astype(out6_ref.dtype)

    # ---- conv7_1: 1x1 conv + bias + ReLU (M = B*m6) ------------------------------
    t3 = jnp.dot(out6.astype(bf16), w71_ref[...],
                 preferred_element_type=f32) + b71_ref[...]
    t3_ref[...] = jnp.maximum(t3, 0.0).astype(bf16)                     # (B*m6, c3)

    # ---- conv7_2: 3x3 stride-2 pad-1 + ReLU (same scheme) ------------------------
    g7 = g7_ref[...]
    for b in range(B):
        gth = jnp.dot(g7, t3_ref[b * m6:(b + 1) * m6, :],
                      preferred_element_type=f32).astype(bf16)          # (9*m7, c3)
        for t in range(9):
            tap7_ref[t, b * m7:(b + 1) * m7, :] = gth[t * m7:(t + 1) * m7, :]

    acc7_ref[...] = jnp.zeros((B * m7, c4), f32) + b72_ref[...]
    for t in range(9):
        acc7_ref[...] += jnp.dot(tap7_ref[t], w72_ref[t],
                                 preferred_element_type=f32)
    out7_ref[...] = jnp.maximum(acc7_ref[...], 0.0).astype(out7_ref.dtype)


# ----------------------------------------------------------------------------
# Static one-hot gather matrices for a 3x3 / stride-2 / pad-1 conv, stacked tap-major:
# row (t*ho*wo + oy*wo + ox) has a single 1 at input (iy*w + ix) where
# (iy, ix) = (2*oy+dy-1, 2*ox+dx-1), t = dy*3+dx; out-of-bounds taps -> all-zero row
# (the implicit zero padding).  Matches the (kh, kw, Cin, Cout) weight reshape.
# ----------------------------------------------------------------------------
def _gather_matrices(h, w, ho, wo):
    g = np.zeros((9, ho * wo, h * w), np.float32)
    for dy in range(3):
        for dx in range(3):
            t = dy * 3 + dx
            for oy in range(ho):
                iy = 2 * oy + dy - 1
                if iy < 0 or iy >= h:
                    continue
                for ox in range(wo):
                    ix = 2 * ox + dx - 1
                    if 0 <= ix < w:
                        g[t, oy * wo + ox, iy * w + ix] = 1.0
    return g.reshape(9 * ho * wo, h * w)


def _pick_batch_block(n, target=8):
    """Largest divisor of n that is <= target while keeping >= 2 grid steps
    (so both v7x TensorCores get parallel grid work when n >= 2)."""
    if n <= 1:
        return 1
    best = 1
    for b in range(1, min(n, target) + 1):
        if n % b == 0 and n // b >= 2:
            best = b
    return best


# ----------------------------------------------------------------------------
# Module: Extra_Conv_layers parameters + forward
# ----------------------------------------------------------------------------
def init_params(in_channels, key):
    ks = jax.random.split(key, 8)
    def w(k, shape):
        return jax.random.normal(k, shape, jnp.float32) * 0.05
    def b(k, n):
        return jax.random.normal(k, (n,), jnp.float32) * 0.01
    return {
        "conv6_1_w": w(ks[0], (256, in_channels, 1, 1)), "conv6_1_b": b(ks[1], 256),
        "conv6_2_w": w(ks[2], (512, 256, 3, 3)),         "conv6_2_b": b(ks[3], 512),
        "conv7_1_w": w(ks[4], (128, 512, 1, 1)),         "conv7_1_b": b(ks[5], 128),
        "conv7_2_w": w(ks[6], (256, 128, 3, 3)),         "conv7_2_b": b(ks[7], 256),
    }


@jax.jit
def extra_conv_layers_forward(params, conv_fc7_feats_nchw):
    n, cin, h, w = conv_fc7_feats_nchw.shape
    ho6, wo6 = (h + 2 - 3) // 2 + 1, (w + 2 - 3) // 2 + 1
    ho7, wo7 = (ho6 + 2 - 3) // 2 + 1, (wo6 + 2 - 3) // 2 + 1
    hw, m6, m7 = h * w, ho6 * wo6, ho7 * wo7
    c1, c2, c3, c4 = 256, 512, 128, 256
    bf16, f32 = jnp.bfloat16, jnp.float32

    B = _pick_batch_block(n)
    nsteps = n // B
    cinp = ((cin + 127) // 128) * 128          # pad Cin to a lane-dense width

    # Boundary-only plumbing: NCHW -> (n*hw, Cin) raster rows, pad Cin, cast bf16.
    x2d = jnp.transpose(conv_fc7_feats_nchw, (0, 2, 3, 1)).reshape(n * hw, cin)
    x2d = jnp.pad(x2d, ((0, 0), (0, cinp - cin))).astype(bf16)

    # Weights in MXU-friendly (K, N) / tap-major layouts, cast to bf16 once.
    w61 = jnp.pad(params["conv6_1_w"][:, :, 0, 0].T,
                  ((0, cinp - cin), (0, 0))).astype(bf16)                        # (cinp, 256)
    w62 = jnp.transpose(params["conv6_2_w"], (2, 3, 1, 0)).reshape(9, c1, c2).astype(bf16)
    w71 = params["conv7_1_w"][:, :, 0, 0].T.astype(bf16)                         # (512, 128)
    w72 = jnp.transpose(params["conv7_2_w"], (2, 3, 1, 0)).reshape(9, c3, c4).astype(bf16)
    b61 = params["conv6_1_b"].reshape(1, c1).astype(f32)
    b62 = params["conv6_2_b"].reshape(1, c2).astype(f32)
    b71 = params["conv7_1_b"].reshape(1, c3).astype(f32)
    b72 = params["conv7_2_b"].reshape(1, c4).astype(f32)

    # Tap-stacked one-hot gather matrices (trace-time constants, exact selectors).
    g6 = jnp.asarray(_gather_matrices(h, w, ho6, wo6), dtype=bf16)               # (9*m6, hw)
    g7 = jnp.asarray(_gather_matrices(ho6, wo6, ho7, wo7), dtype=bf16)           # (9*m7, m6)

    rowblk = lambda i: (i, 0)          # per-step row block (B images folded into M)
    const2 = lambda i: (0, 0)          # grid-invariant 2-D operand
    const3 = lambda i: (0, 0, 0)       # grid-invariant 3-D operand

    out6_flat, out7_flat = pl.pallas_call(
        _extra_convs_kernel,
        out_shape=(jax.ShapeDtypeStruct((n * m6, c2), f32),
                   jax.ShapeDtypeStruct((n * m7, c4), f32)),
        grid_spec=pltpu.PrefetchScalarGridSpec(
            num_scalar_prefetch=0,
            grid=(nsteps,),
            in_specs=[
                pl.BlockSpec((B * hw, cinp), rowblk),   # x        (B*hw, cinp)
                pl.BlockSpec((cinp, c1), const2),       # w6_1
                pl.BlockSpec((1, c1), const2),          # b6_1
                pl.BlockSpec((9 * m6, hw), const2),     # gather for conv6_2
                pl.BlockSpec((9, c1, c2), const3),      # w6_2 (tap-major)
                pl.BlockSpec((1, c2), const2),          # b6_2
                pl.BlockSpec((c2, c3), const2),         # w7_1
                pl.BlockSpec((1, c3), const2),          # b7_1
                pl.BlockSpec((9 * m7, m6), const2),     # gather for conv7_2
                pl.BlockSpec((9, c3, c4), const3),      # w7_2 (tap-major)
                pl.BlockSpec((1, c4), const2),          # b7_2
            ],
            out_specs=(pl.BlockSpec((B * m6, c2), rowblk),
                       pl.BlockSpec((B * m7, c4), rowblk)),
            scratch_shapes=[
                pltpu.VMEM((B * hw, c1), bf16),         # t1  (conv6_1 output)
                pltpu.VMEM((9, B * m6, c1), bf16),      # tap-major im2col for conv6_2
                pltpu.VMEM((B * m6, c2), f32),          # conv6_2 accumulator
                pltpu.VMEM((B * m6, c3), bf16),         # t3  (conv7_1 output)
                pltpu.VMEM((9, B * m7, c3), bf16),      # tap-major im2col for conv7_2
                pltpu.VMEM((B * m7, c4), f32),          # conv7_2 accumulator
            ]),
        compiler_params=pltpu.CompilerParams(
            dimension_semantics=("parallel",),
            vmem_limit_bytes=32 * 1024 * 1024),
    )(x2d, w61, b61, g6, w62, b62, w71, b71, g7, w72, b72)

    # Boundary-only plumbing back to NCHW.
    conv6_2_feats = jnp.transpose(out6_flat.reshape(n, ho6, wo6, c2), (0, 3, 1, 2))
    conv7_2_feats = jnp.transpose(out7_flat.reshape(n, ho7, wo7, c4), (0, 3, 1, 2))
    return conv6_2_feats, conv7_2_feats


# ----------------------------------------------------------------------------
# Pure-JAX f32 reference (sanity check)
# ----------------------------------------------------------------------------
def _ref_conv(x_nhwc, w_oihw, bias, stride, pad):
    w_hwio = jnp.transpose(w_oihw, (2, 3, 1, 0))
    y = jax.lax.conv_general_dilated(
        x_nhwc, w_hwio, (stride, stride), [(pad, pad), (pad, pad)],
        dimension_numbers=("NHWC", "HWIO", "NHWC"))
    return jnp.maximum(y + bias, 0.0)


def _ref_forward(params, x_nchw):
    x = jnp.transpose(x_nchw, (0, 2, 3, 1))
    out = _ref_conv(x, params["conv6_1_w"], params["conv6_1_b"], 1, 0)
    out = _ref_conv(out, params["conv6_2_w"], params["conv6_2_b"], 2, 1)
    c6 = out
    out = _ref_conv(out, params["conv7_1_w"], params["conv7_1_b"], 1, 0)
    out = _ref_conv(out, params["conv7_2_w"], params["conv7_2_b"], 2, 1)
    return (jnp.transpose(c6, (0, 3, 1, 2)), jnp.transpose(out, (0, 3, 1, 2)))


if __name__ == "__main__":
    key = jax.random.PRNGKey(0)
    k_x, k_p = jax.random.split(key)

    in_channels = 8
    x = jax.random.normal(k_x, (2, in_channels, 16, 16), jnp.float32)  # NCHW
    params = init_params(in_channels, k_p)

    conv6_2_feats, conv7_2_feats = extra_conv_layers_forward(params, x)
    jax.block_until_ready((conv6_2_feats, conv7_2_feats))

    assert conv6_2_feats.shape == (2, 512, 8, 8), conv6_2_feats.shape
    assert conv7_2_feats.shape == (2, 256, 4, 4), conv7_2_feats.shape

    # Loose tolerance: the kernel feeds the MXU in bf16 (f32 accumulation), the
    # reference is pure f32.  Structural errors would be O(value scale).
    ref6, ref7 = _ref_forward(params, x)
    np.testing.assert_allclose(np.asarray(conv6_2_feats), np.asarray(ref6),
                               atol=4e-2, rtol=4e-2)
    np.testing.assert_allclose(np.asarray(conv7_2_feats), np.asarray(ref7),
                               atol=4e-2, rtol=4e-2)

    print("KERNEL_OK")
</pallas_src>

<mosaic_0001>
module attributes {stable_mosaic.version = 11 : i64} {
  func.func @_extra_convs_kernel(%arg0: i32, %arg1: memref<256x128xbf16, #tpu.memory_space<vmem>>, %arg2: memref<128x256xbf16, #tpu.memory_space<vmem>>, %arg3: memref<1x256xf32, #tpu.memory_space<vmem>>, %arg4: memref<576x256xbf16, #tpu.memory_space<vmem>>, %arg5: memref<9x256x512xbf16, #tpu.memory_space<vmem>>, %arg6: memref<1x512xf32, #tpu.memory_space<vmem>>, %arg7: memref<512x128xbf16, #tpu.memory_space<vmem>>, %arg8: memref<1x128xf32, #tpu.memory_space<vmem>>, %arg9: memref<144x64xbf16, #tpu.memory_space<vmem>>, %arg10: memref<9x128x256xbf16, #tpu.memory_space<vmem>>, %arg11: memref<1x256xf32, #tpu.memory_space<vmem>>, %arg12: memref<64x512xf32, #tpu.memory_space<vmem>>, %arg13: memref<16x256xf32, #tpu.memory_space<vmem>>, %arg14: memref<256x256xbf16, #tpu.memory_space<vmem>>, %arg15: memref<9x64x256xbf16, #tpu.memory_space<vmem>>, %arg16: memref<64x512xf32, #tpu.memory_space<vmem>>, %arg17: memref<64x128xbf16, #tpu.memory_space<vmem>>, %arg18: memref<9x16x128xbf16, #tpu.memory_space<vmem>>, %arg19: memref<16x256xf32, #tpu.memory_space<vmem>>) attributes {dimension_semantics = [#tpu.dimension_semantics<parallel>], iteration_bounds = array<i64: 2>, scalar_prefetch = 0 : i64, scratch_operands = 6 : i64, tpu.core_type = #tpu.core_type<tc>, window_params = [{transform_indices = @transform_0, window_bounds = array<i64: 256, 128>}, {pipeline_mode = #tpu.pipeline_mode<synchronous>, transform_indices = @transform_1, window_bounds = array<i64: 128, 256>}, {pipeline_mode = #tpu.pipeline_mode<synchronous>, transform_indices = @transform_2, window_bounds = array<i64: 1, 256>}, {pipeline_mode = #tpu.pipeline_mode<synchronous>, transform_indices = @transform_3, window_bounds = array<i64: 576, 256>}, {pipeline_mode = #tpu.pipeline_mode<synchronous>, transform_indices = @transform_4, window_bounds = array<i64: 9, 256, 512>}, {pipeline_mode = #tpu.pipeline_mode<synchronous>, transform_indices = @transform_5, window_bounds = array<i64: 1, 512>}, {pipeline_mode = #tpu.pipeline_mode<synchronous>, transform_indices = @transform_6, window_bounds = array<i64: 512, 128>}, {pipeline_mode = #tpu.pipeline_mode<synchronous>, transform_indices = @transform_7, window_bounds = array<i64: 1, 128>}, {pipeline_mode = #tpu.pipeline_mode<synchronous>, transform_indices = @transform_8, window_bounds = array<i64: 144, 64>}, {pipeline_mode = #tpu.pipeline_mode<synchronous>, transform_indices = @transform_9, window_bounds = array<i64: 9, 128, 256>}, {pipeline_mode = #tpu.pipeline_mode<synchronous>, transform_indices = @transform_10, window_bounds = array<i64: 1, 256>}, {transform_indices = @transform_11, window_bounds = array<i64: 64, 512>}, {transform_indices = @transform_12, window_bounds = array<i64: 16, 256>}]} {
    %c0 = arith.constant 0 : index
    %c0_0 = arith.constant 0 : index
    %0 = vector.load %arg1[%c0, %c0_0] : memref<256x128xbf16, #tpu.memory_space<vmem>>, vector<256x128xbf16>
    %c0_1 = arith.constant 0 : index
    %c0_2 = arith.constant 0 : index
    %1 = vector.load %arg2[%c0_1, %c0_2] : memref<128x256xbf16, #tpu.memory_space<vmem>>, vector<128x256xbf16>
    %cst = arith.constant dense<0.000000e+00> : vector<256x256xf32>
    %2 = tpu.matmul %0, %1, %cst {dimension_numbers = #tpu.dot_dimension_numbers<[1], [0], [0], [1], [0, 0, 1, 1], [], []>} : vector<256x128xbf16>, vector<128x256xbf16>, vector<256x256xf32> -> vector<256x256xf32>
    %c0_3 = arith.constant 0 : index
    %c0_4 = arith.constant 0 : index
    %3 = vector.load %arg3[%c0_3, %c0_4] : memref<1x256xf32, #tpu.memory_space<vmem>>, vector<1x256xf32>
    %4 = vector.broadcast %3 : vector<1x256xf32> to vector<256x256xf32>
    %5 = arith.addf %2, %4 : vector<256x256xf32>
    %cst_5 = arith.constant 0.000000e+00 : f32
    %6 = vector.broadcast %cst_5 : f32 to vector<256x256xf32>
    %7 = arith.maximumf %5, %6 : vector<256x256xf32>
    %8 = arith.truncf %7 : vector<256x256xf32> to vector<256x256xbf16>
    %c0_6 = arith.constant 0 : index
    %c0_7 = arith.constant 0 : index
    %9 = vector.load %arg14[%c0_6, %c0_7] : memref<256x256xbf16, #tpu.memory_space<vmem>>, vector<256x256xbf16>
    tpu.vector_store %arg14[%c0_6, %c0_7], %8 {strides = array<i32>} : memref<256x256xbf16, #tpu.memory_space<vmem>>, vector<256x256xbf16>,
    %c0_8 = arith.constant 0 : index
    %c0_9 = arith.constant 0 : index
    %10 = vector.load %arg4[%c0_8, %c0_9] : memref<576x256xbf16, #tpu.memory_space<vmem>>, vector<576x256xbf16>
    %c0_10 = arith.constant 0 : index
    %c0_11 = arith.constant 0 : index
    %11 = vector.load %arg14[%c0_10, %c0_11] : memref<256x256xbf16, #tpu.memory_space<vmem>>, vector<256x256xbf16>
    %cst_12 = arith.constant dense<0.000000e+00> : vector<576x256xf32>
    %12 = tpu.matmul %10, %11, %cst_12 {dimension_numbers = #tpu.dot_dimension_numbers<[1], [0], [0], [1], [0, 0, 1, 1], [], []>} : vector<576x256xbf16>, vector<256x256xbf16>, vector<576x256xf32> -> vector<576x256xf32>
    %13 = arith.truncf %12 : vector<576x256xf32> to vector<576x256xbf16>
    %14 = vector.extract_strided_slice %13 {offsets = [0, 0], sizes = [64, 256], strides = [1, 1]} : vector<576x256xbf16> to vector<64x256xbf16>
    %c0_13 = arith.constant 0 : index
    %c0_14 = arith.constant 0 : index
    %c0_15 = arith.constant 0 : index
    %15 = vector.load %arg15[%c0_13, %c0_14, %c0_15] : memref<9x64x256xbf16, #tpu.memory_space<vmem>>, vector<1x64x256xbf16>
    %16 = vector.shape_cast %15 : vector<1x64x256xbf16> to vector<64x256xbf16>
    %17 = vector.shape_cast %14 : vector<64x256xbf16> to vector<1x64x256xbf16>
    tpu.vector_store %arg15[%c0_13, %c0_14, %c0_15], %17 {strides = array<i32>} : memref<9x64x256xbf16, #tpu.memory_space<vmem>>, vector<1x64x256xbf16>,
    %18 = vector.extract_strided_slice %13 {offsets = [64, 0], sizes = [64, 256], strides = [1, 1]} : vector<576x256xbf16> to vector<64x256xbf16>
    %c1 = arith.constant 1 : index
    %c0_16 = arith.constant 0 : index
    %c0_17 = arith.constant 0 : index
    %19 = vector.load %arg15[%c1, %c0_16, %c0_17] : memref<9x64x256xbf16, #tpu.memory_space<vmem>>, vector<1x64x256xbf16>
    %20 = vector.shape_cast %19 : vector<1x64x256xbf16> to vector<64x256xbf16>
    %21 = vector.shape_cast %18 : vector<64x256xbf16> to vector<1x64x256xbf16>
    tpu.vector_store %arg15[%c1, %c0_16, %c0_17], %21 {strides = array<i32>} : memref<9x64x256xbf16, #tpu.memory_space<vmem>>, vector<1x64x256xbf16>,
    %22 = vector.extract_strided_slice %13 {offsets = [128, 0], sizes = [64, 256], strides = [1, 1]} : vector<576x256xbf16> to vector<64x256xbf16>
    %c2 = arith.constant 2 : index
    %c0_18 = arith.constant 0 : index
    %c0_19 = arith.constant 0 : index
    %23 = vector.load %arg15[%c2, %c0_18, %c0_19] : memref<9x64x256xbf16, #tpu.memory_space<vmem>>, vector<1x64x256xbf16>
    %24 = vector.shape_cast %23 : vector<1x64x256xbf16> to vector<64x256xbf16>
    %25 = vector.shape_cast %22 : vector<64x256xbf16> to vector<1x64x256xbf16>
    tpu.vector_store %arg15[%c2, %c0_18, %c0_19], %25 {strides = array<i32>} : memref<9x64x256xbf16, #tpu.memory_space<vmem>>, vector<1x64x256xbf16>,
    %26 = vector.extract_strided_slice %13 {offsets = [192, 0], sizes = [64, 256], strides = [1, 1]} : vector<576x256xbf16> to vector<64x256xbf16>
    %c3 = arith.constant 3 : index
    %c0_20 = arith.constant 0 : index
    %c0_21 = arith.constant 0 : index
    %27 = vector.load %arg15[%c3, %c0_20, %c0_21] : memref<9x64x256xbf16, #tpu.memory_space<vmem>>, vector<1x64x256xbf16>
    %28 = vector.shape_cast %27 : vector<1x64x256xbf16> to vector<64x256xbf16>
    %29 = vector.shape_cast %26 : vector<64x256xbf16> to vector<1x64x256xbf16>
    tpu.vector_store %arg15[%c3, %c0_20, %c0_21], %29 {strides = array<i32>} : memref<9x64x256xbf16, #tpu.memory_space<vmem>>, vector<1x64x256xbf16>,
    %30 = vector.extract_strided_slice %13 {offsets = [256, 0], sizes = [64, 256], strides = [1, 1]} : vector<576x256xbf16> to vector<64x256xbf16>
    %c4 = arith.constant 4 : index
    %c0_22 = arith.constant 0 : index
    %c0_23 = arith.constant 0 : index
    %31 = vector.load %arg15[%c4, %c0_22, %c0_23] : memref<9x64x256xbf16, #tpu.memory_space<vmem>>, vector<1x64x256xbf16>
    %32 = vector.shape_cast %31 : vector<1x64x256xbf16> to vector<64x256xbf16>
    %33 = vector.shape_cast %30 : vector<64x256xbf16> to vector<1x64x256xbf16>
    tpu.vector_store %arg15[%c4, %c0_22, %c0_23], %33 {strides = array<i32>} : memref<9x64x256xbf16, #tpu.memory_space<vmem>>, vector<1x64x256xbf16>,
    %34 = vector.extract_strided_slice %13 {offsets = [320, 0], sizes = [64, 256], strides = [1, 1]} : vector<576x256xbf16> to vector<64x256xbf16>
    %c5 = arith.constant 5 : index
    %c0_24 = arith.constant 0 : index
    %c0_25 = arith.constant 0 : index
    %35 = vector.load %arg15[%c5, %c0_24, %c0_25] : memref<9x64x256xbf16, #tpu.memory_space<vmem>>, vector<1x64x256xbf16>
    %36 = vector.shape_cast %35 : vector<1x64x256xbf16> to vector<64x256xbf16>
    %37 = vector.shape_cast %34 : vector<64x256xbf16> to vector<1x64x256xbf16>
    tpu.vector_store %arg15[%c5, %c0_24, %c0_25], %37 {strides = array<i32>} : memref<9x64x256xbf16, #tpu.memory_space<vmem>>, vector<1x64x256xbf16>,
    %38 = vector.extract_strided_slice %13 {offsets = [384, 0], sizes = [64, 256], strides = [1, 1]} : vector<576x256xbf16> to vector<64x256xbf16>
    %c6 = arith.constant 6 : index
    %c0_26 = arith.constant 0 : index
    %c0_27 = arith.constant 0 : index
    %39 = vector.load %arg15[%c6, %c0_26, %c0_27] : memref<9x64x256xbf16, #tpu.memory_space<vmem>>, vector<1x64x256xbf16>
    %40 = vector.shape_cast %39 : vector<1x64x256xbf16> to vector<64x256xbf16>
    %41 = vector.shape_cast %38 : vector<64x256xbf16> to vector<1x64x256xbf16>
    tpu.vector_store %arg15[%c6, %c0_26, %c0_27], %41 {strides = array<i32>} : memref<9x64x256xbf16, #tpu.memory_space<vmem>>, vector<1x64x256xbf16>,
    %42 = vector.extract_strided_slice %13 {offsets = [448, 0], sizes = [64, 256], strides = [1, 1]} : vector<576x256xbf16> to vector<64x256xbf16>
    %c7 = arith.constant 7 : index
    %c0_28 = arith.constant 0 : index
    %c0_29 = arith.constant 0 : index
    %43 = vector.load %arg15[%c7, %c0_28, %c0_29] : memref<9x64x256xbf16, #tpu.memory_space<vmem>>, vector<1x64x256xbf16>
    %44 = vector.shape_cast %43 : vector<1x64x256xbf16> to vector<64x256xbf16>
    %45 = vector.shape_cast %42 : vector<64x256xbf16> to vector<1x64x256xbf16>
    tpu.vector_store %arg15[%c7, %c0_28, %c0_29], %45 {strides = array<i32>} : memref<9x64x256xbf16, #tpu.memory_space<vmem>>, vector<1x64x256xbf16>,
    %46 = vector.extract_strided_slice %13 {offsets = [512, 0], sizes = [64, 256], strides = [1, 1]} : vector<576x256xbf16> to vector<64x256xbf16>
    %c8 = arith.constant 8 : index
    %c0_30 = arith.constant 0 : index
    %c0_31 = arith.constant 0 : index
    %47 = vector.load %arg15[%c8, %c0_30, %c0_31] : memref<9x64x256xbf16, #tpu.memory_space<vmem>>, vector<1x64x256xbf16>
    %48 = vector.shape_cast %47 : vector<1x64x256xbf16> to vector<64x256xbf16>
    %49 = vector.shape_cast %46 : vector<64x256xbf16> to vector<1x64x256xbf16>
    tpu.vector_store %arg15[%c8, %c0_30, %c0_31], %49 {strides = array<i32>} : memref<9x64x256xbf16, #tpu.memory_space<vmem>>, vector<1x64x256xbf16>,
    %cst_32 = arith.constant 0.000000e+00 : f32
    %50 = vector.broadcast %cst_32 : f32 to vector<64x512xf32>
    %c0_33 = arith.constant 0 : index
    %c0_34 = arith.constant 0 : index
    %51 = vector.load %arg6[%c0_33, %c0_34] : memref<1x512xf32, #tpu.memory_space<vmem>>, vector<1x512xf32>
    %52 = vector.broadcast %51 : vector<1x512xf32> to vector<64x512xf32>
    %53 = arith.addf %50, %52 : vector<64x512xf32>
    %c0_35 = arith.constant 0 : index
    %c0_36 = arith.constant 0 : index
    %54 = vector.load %arg16[%c0_35, %c0_36] : memref<64x512xf32, #tpu.memory_space<vmem>>, vector<64x512xf32>
    tpu.vector_store %arg16[%c0_35, %c0_36], %53 {strides = array<i32>} : memref<64x512xf32, #tpu.memory_space<vmem>>, vector<64x512xf32>,
    %c0_37 = arith.constant 0 : index
    %c0_38 = arith.constant 0 : index
    %55 = vector.load %arg16[%c0_37, %c0_38] : memref<64x512xf32, #tpu.memory_space<vmem>>, vector<64x512xf32>
    %c0_39 = arith.constant 0 : index
    %c0_40 = arith.constant 0 : index
    %c0_41 = arith.constant 0 : index
    %56 = vector.load %arg15[%c0_39, %c0_40, %c0_41] : memref<9x64x256xbf16, #tpu.memory_space<vmem>>, vector<1x64x256xbf16>
    %57 = vector.shape_cast %56 : vector<1x64x256xbf16> to vector<64x256xbf16>
    %c0_42 = arith.constant 0 : index
    %c0_43 = arith.constant 0 : index
    %c0_44 = arith.constant 0 : index
    %58 = vector.load %arg5[%c0_42, %c0_43, %c0_44] : memref<9x256x512xbf16, #tpu.memory_space<vmem>>, vector<1x256x512xbf16>
    %59 = vector.shape_cast %58 : vector<1x256x512xbf16> to vector<256x512xbf16>
    %cst_45 = arith.constant dense<0.000000e+00> : vector<64x512xf32>
    %60 = tpu.matmul %57, %59, %cst_45 {dimension_numbers = #tpu.dot_dimension_numbers<[1], [0], [0], [1], [0, 0, 1, 1], [], []>} : vector<64x256xbf16>, vector<256x512xbf16>, vector<64x512xf32> -> vector<64x512xf32>
    %61 = arith.addf %55, %60 : vector<64x512xf32>
    %c0_46 = arith.constant 0 : index
    %c0_47 = arith.constant 0 : index
    %62 = vector.load %arg16[%c0_46, %c0_47] : memref<64x512xf32, #tpu.memory_space<vmem>>, vector<64x512xf32>
    tpu.vector_store %arg16[%c0_46, %c0_47], %61 {strides = array<i32>} : memref<64x512xf32, #tpu.memory_space<vmem>>, vector<64x512xf32>,
    %c0_48 = arith.constant 0 : index
    %c0_49 = arith.constant 0 : index
    %63 = vector.load %arg16[%c0_48, %c0_49] : memref<64x512xf32, #tpu.memory_space<vmem>>, vector<64x512xf32>
    %c1_50 = arith.constant 1 : index
    %c0_51 = arith.constant 0 : index
    %c0_52 = arith.constant 0 : index
    %64 = vector.load %arg15[%c1_50, %c0_51, %c0_52] : memref<9x64x256xbf16, #tpu.memory_space<vmem>>, vector<1x64x256xbf16>
    %65 = vector.shape_cast %64 : vector<1x64x256xbf16> to vector<64x256xbf16>
    %c1_53 = arith.constant 1 : index
    %c0_54 = arith.constant 0 : index
    %c0_55 = arith.constant 0 : index
    %66 = vector.load %arg5[%c1_53, %c0_54, %c0_55] : memref<9x256x512xbf16, #tpu.memory_space<vmem>>, vector<1x256x512xbf16>
    %67 = vector.shape_cast %66 : vector<1x256x512xbf16> to vector<256x512xbf16>
    %cst_56 = arith.constant dense<0.000000e+00> : vector<64x512xf32>
    %68 = tpu.matmul %65, %67, %cst_56 {dimension_numbers = #tpu.dot_dimension_numbers<[1], [0], [0], [1], [0, 0, 1, 1], [], []>} : vector<64x256xbf16>, vector<256x512xbf16>, vector<64x512xf32> -> vector<64x512xf32>
    %69 = arith.addf %63, %68 : vector<64x512xf32>
    %c0_57 = arith.constant 0 : index
    %c0_58 = arith.constant 0 : index
    %70 = vector.load %arg16[%c0_57, %c0_58] : memref<64x512xf32, #tpu.memory_space<vmem>>, vector<64x512xf32>
    tpu.vector_store %arg16[%c0_57, %c0_58], %69 {strides = array<i32>} : memref<64x512xf32, #tpu.memory_space<vmem>>, vector<64x512xf32>,
    %c0_59 = arith.constant 0 : index
    %c0_60 = arith.constant 0 : index
    %71 = vector.load %arg16[%c0_59, %c0_60] : memref<64x512xf32, #tpu.memory_space<vmem>>, vector<64x512xf32>
    %c2_61 = arith.constant 2 : index
    %c0_62 = arith.constant 0 : index
    %c0_63 = arith.constant 0 : index
    %72 = vector.load %arg15[%c2_61, %c0_62, %c0_63] : memref<9x64x256xbf16, #tpu.memory_space<vmem>>, vector<1x64x256xbf16>
    %73 = vector.shape_cast %72 : vector<1x64x256xbf16> to vector<64x256xbf16>
    %c2_64 = arith.constant 2 : index
    %c0_65 = arith.constant 0 : index
    %c0_66 = arith.constant 0 : index
    %74 = vector.load %arg5[%c2_64, %c0_65, %c0_66] : memref<9x256x512xbf16, #tpu.memory_space<vmem>>, vector<1x256x512xbf16>
    %75 = vector.shape_cast %74 : vector<1x256x512xbf16> to vector<256x512xbf16>
    %cst_67 = arith.constant dense<0.000000e+00> : vector<64x512xf32>
    %76 = tpu.matmul %73, %75, %cst_67 {dimension_numbers = #tpu.dot_dimension_numbers<[1], [0], [0], [1], [0, 0, 1, 1], [], []>} : vector<64x256xbf16>, vector<256x512xbf16>, vector<64x512xf32> -> vector<64x512xf32>
    %77 = arith.addf %71, %76 : vector<64x512xf32>
    %c0_68 = arith.constant 0 : index
    %c0_69 = arith.constant 0 : index
    %78 = vector.load %arg16[%c0_68, %c0_69] : memref<64x512xf32, #tpu.memory_space<vmem>>, vector<64x512xf32>
    tpu.vector_store %arg16[%c0_68, %c0_69], %77 {strides = array<i32>} : memref<64x512xf32, #tpu.memory_space<vmem>>, vector<64x512xf32>,
    %c0_70 = arith.constant 0 : index
    %c0_71 = arith.constant 0 : index
    %79 = vector.load %arg16[%c0_70, %c0_71] : memref<64x512xf32, #tpu.memory_space<vmem>>, vector<64x512xf32>
    %c3_72 = arith.constant 3 : index
    %c0_73 = arith.constant 0 : index
    %c0_74 = arith.constant 0 : index
    %80 = vector.load %arg15[%c3_72, %c0_73, %c0_74] : memref<9x64x256xbf16, #tpu.memory_space<vmem>>, vector<1x64x256xbf16>
    %81 = vector.shape_cast %80 : vector<1x64x256xbf16> to vector<64x256xbf16>
    %c3_75 = arith.constant 3 : index
    %c0_76 = arith.constant 0 : index
    %c0_77 = arith.constant 0 : index
    %82 = vector.load %arg5[%c3_75, %c0_76, %c0_77] : memref<9x256x512xbf16, #tpu.memory_space<vmem>>, vector<1x256x512xbf16>
    %83 = vector.shape_cast %82 : vector<1x256x512xbf16> to vector<256x512xbf16>
    %cst_78 = arith.constant dense<0.000000e+00> : vector<64x512xf32>
    %84 = tpu.matmul %81, %83, %cst_78 {dimension_numbers = #tpu.dot_dimension_numbers<[1], [0], [0], [1], [0, 0, 1, 1], [], []>} : vector<64x256xbf16>, vector<256x512xbf16>, vector<64x512xf32> -> vector<64x512xf32>
    %85 = arith.addf %79, %84 : vector<64x512xf32>
    %c0_79 = arith.constant 0 : index
    %c0_80 = arith.constant 0 : index
    %86 = vector.load %arg16[%c0_79, %c0_80] : memref<64x512xf32, #tpu.memory_space<vmem>>, vector<64x512xf32>
    tpu.vector_store %arg16[%c0_79, %c0_80], %85 {strides = array<i32>} : memref<64x512xf32, #tpu.memory_space<vmem>>, vector<64x512xf32>,
    %c0_81 = arith.constant 0 : index
    %c0_82 = arith.constant 0 : index
    %87 = vector.load %arg16[%c0_81, %c0_82] : memref<64x512xf32, #tpu.memory_space<vmem>>, vector<64x512xf32>
    %c4_83 = arith.constant 4 : index
    %c0_84 = arith.constant 0 : index
    %c0_85 = arith.constant 0 : index
    %88 = vector.load %arg15[%c4_83, %c0_84, %c0_85] : memref<9x64x256xbf16, #tpu.memory_space<vmem>>, vector<1x64x256xbf16>
    %89 = vector.shape_cast %88 : vector<1x64x256xbf16> to vector<64x256xbf16>
    %c4_86 = arith.constant 4 : index
    %c0_87 = arith.constant 0 : index
    %c0_88 = arith.constant 0 : index
    %90 = vector.load %arg5[%c4_86, %c0_87, %c0_88] : memref<9x256x512xbf16, #tpu.memory_space<vmem>>, vector<1x256x512xbf16>
    %91 = vector.shape_cast %90 : vector<1x256x512xbf16> to vector<256x512xbf16>
    %cst_89 = arith.constant dense<0.000000e+00> : vector<64x512xf32>
    %92 = tpu.matmul %89, %91, %cst_89 {dimension_numbers = #tpu.dot_dimension_numbers<[1], [0], [0], [1], [0, 0, 1, 1], [], []>} : vector<64x256xbf16>, vector<256x512xbf16>, vector<64x512xf32> -> vector<64x512xf32>
    %93 = arith.addf %87, %92 : vector<64x512xf32>
    %c0_90 = arith.constant 0 : index
    %c0_91 = arith.constant 0 : index
    %94 = vector.load %arg16[%c0_90, %c0_91] : memref<64x512xf32, #tpu.memory_space<vmem>>, vector<64x512xf32>
    tpu.vector_store %arg16[%c0_90, %c0_91], %93 {strides = array<i32>} : memref<64x512xf32, #tpu.memory_space<vmem>>, vector<64x512xf32>,
    %c0_92 = arith.constant 0 : index
    %c0_93 = arith.constant 0 : index
    %95 = vector.load %arg16[%c0_92, %c0_93] : memref<64x512xf32, #tpu.memory_space<vmem>>, vector<64x512xf32>
    %c5_94 = arith.constant 5 : index
    %c0_95 = arith.constant 0 : index
    %c0_96 = arith.constant 0 : index
    %96 = vector.load %arg15[%c5_94, %c0_95, %c0_96] : memref<9x64x256xbf16, #tpu.memory_space<vmem>>, vector<1x64x256xbf16>
    %97 = vector.shape_cast %96 : vector<1x64x256xbf16> to vector<64x256xbf16>
    %c5_97 = arith.constant 5 : index
    %c0_98 = arith.constant 0 : index
    %c0_99 = arith.constant 0 : index
    %98 = vector.load %arg5[%c5_97, %c0_98, %c0_99] : memref<9x256x512xbf16, #tpu.memory_space<vmem>>, vector<1x256x512xbf16>
    %99 = vector.shape_cast %98 : vector<1x256x512xbf16> to vector<256x512xbf16>
    %cst_100 = arith.constant dense<0.000000e+00> : vector<64x512xf32>
    %100 = tpu.matmul %97, %99, %cst_100 {dimension_numbers = #tpu.dot_dimension_numbers<[1], [0], [0], [1], [0, 0, 1, 1], [], []>} : vector<64x256xbf16>, vector<256x512xbf16>, vector<64x512xf32> -> vector<64x512xf32>
    %101 = arith.addf %95, %100 : vector<64x512xf32>
    %c0_101 = arith.constant 0 : index
    %c0_102 = arith.constant 0 : index
    %102 = vector.load %arg16[%c0_101, %c0_102] : memref<64x512xf32, #tpu.memory_space<vmem>>, vector<64x512xf32>
    tpu.vector_store %arg16[%c0_101, %c0_102], %101 {strides = array<i32>} : memref<64x512xf32, #tpu.memory_space<vmem>>, vector<64x512xf32>,
    %c0_103 = arith.constant 0 : index
    %c0_104 = arith.constant 0 : index
    %103 = vector.load %arg16[%c0_103, %c0_104] : memref<64x512xf32, #tpu.memory_space<vmem>>, vector<64x512xf32>
    %c6_105 = arith.constant 6 : index
    %c0_106 = arith.constant 0 : index
    %c0_107 = arith.constant 0 : index
    %104 = vector.load %arg15[%c6_105, %c0_106, %c0_107] : memref<9x64x256xbf16, #tpu.memory_space<vmem>>, vector<1x64x256xbf16>
    %105 = vector.shape_cast %104 : vector<1x64x256xbf16> to vector<64x256xbf16>
    %c6_108 = arith.constant 6 : index
    %c0_109 = arith.constant 0 : index
    %c0_110 = arith.constant 0 : index
    %106 = vector.load %arg5[%c6_108, %c0_109, %c0_110] : memref<9x256x512xbf16, #tpu.memory_space<vmem>>, vector<1x256x512xbf16>
    %107 = vector.shape_cast %106 : vector<1x256x512xbf16> to vector<256x512xbf16>
    %cst_111 = arith.constant dense<0.000000e+00> : vector<64x512xf32>
    %108 = tpu.matmul %105, %107, %cst_111 {dimension_numbers = #tpu.dot_dimension_numbers<[1], [0], [0], [1], [0, 0, 1, 1], [], []>} : vector<64x256xbf16>, vector<256x512xbf16>, vector<64x512xf32> -> vector<64x512xf32>
    %109 = arith.addf %103, %108 : vector<64x512xf32>
    %c0_112 = arith.constant 0 : index
    %c0_113 = arith.constant 0 : index
    %110 = vector.load %arg16[%c0_112, %c0_113] : memref<64x512xf32, #tpu.memory_space<vmem>>, vector<64x512xf32>
    tpu.vector_store %arg16[%c0_112, %c0_113], %109 {strides = array<i32>} : memref<64x512xf32, #tpu.memory_space<vmem>>, vector<64x512xf32>,
    %c0_114 = arith.constant 0 : index
    %c0_115 = arith.constant 0 : index
    %111 = vector.load %arg16[%c0_114, %c0_115] : memref<64x512xf32, #tpu.memory_space<vmem>>, vector<64x512xf32>
    %c7_116 = arith.constant 7 : index
    %c0_117 = arith.constant 0 : index
    %c0_118 = arith.constant 0 : index
    %112 = vector.load %arg15[%c7_116, %c0_117, %c0_118] : memref<9x64x256xbf16, #tpu.memory_space<vmem>>, vector<1x64x256xbf16>
    %113 = vector.shape_cast %112 : vector<1x64x256xbf16> to vector<64x256xbf16>
    %c7_119 = arith.constant 7 : index
    %c0_120 = arith.constant 0 : index
    %c0_121 = arith.constant 0 : index
    %114 = vector.load %arg5[%c7_119, %c0_120, %c0_121] : memref<9x256x512xbf16, #tpu.memory_space<vmem>>, vector<1x256x512xbf16>
    %115 = vector.shape_cast %114 : vector<1x256x512xbf16> to vector<256x512xbf16>
    %cst_122 = arith.constant dense<0.000000e+00> : vector<64x512xf32>
    %116 = tpu.matmul %113, %115, %cst_122 {dimension_numbers = #tpu.dot_dimension_numbers<[1], [0], [0], [1], [0, 0, 1, 1], [], []>} : vector<64x256xbf16>, vector<256x512xbf16>, vector<64x512xf32> -> vector<64x512xf32>
    %117 = arith.addf %111, %116 : vector<64x512xf32>
    %c0_123 = arith.constant 0 : index
    %c0_124 = arith.constant 0 : index
    %118 = vector.load %arg16[%c0_123, %c0_124] : memref<64x512xf32, #tpu.memory_space<vmem>>, vector<64x512xf32>
    tpu.vector_store %arg16[%c0_123, %c0_124], %117 {strides = array<i32>} : memref<64x512xf32, #tpu.memory_space<vmem>>, vector<64x512xf32>,
    %c0_125 = arith.constant 0 : index
    %c0_126 = arith.constant 0 : index
    %119 = vector.load %arg16[%c0_125, %c0_126] : memref<64x512xf32, #tpu.memory_space<vmem>>, vector<64x512xf32>
    %c8_127 = arith.constant 8 : index
    %c0_128 = arith.constant 0 : index
    %c0_129 = arith.constant 0 : index
    %120 = vector.load %arg15[%c8_127, %c0_128, %c0_129] : memref<9x64x256xbf16, #tpu.memory_space<vmem>>, vector<1x64x256xbf16>
    %121 = vector.shape_cast %120 : vector<1x64x256xbf16> to vector<64x256xbf16>
    %c8_130 = arith.constant 8 : index
    %c0_131 = arith.constant 0 : index
    %c0_132 = arith.constant 0 : index
    %122 = vector.load %arg5[%c8_130, %c0_131, %c0_132] : memref<9x256x512xbf16, #tpu.memory_space<vmem>>, vector<1x256x512xbf16>
    %123 = vector.shape_cast %122 : vector<1x256x512xbf16> to vector<256x512xbf16>
    %cst_133 = arith.constant dense<0.000000e+00> : vector<64x512xf32>
    %124 = tpu.matmul %121, %123, %cst_133 {dimension_numbers = #tpu.dot_dimension_numbers<[1], [0], [0], [1], [0, 0, 1, 1], [], []>} : vector<64x256xbf16>, vector<256x512xbf16>, vector<64x512xf32> -> vector<64x512xf32>
    %125 = arith.addf %119, %124 : vector<64x512xf32>
    %c0_134 = arith.constant 0 : index
    %c0_135 = arith.constant 0 : index
    %126 = vector.load %arg16[%c0_134, %c0_135] : memref<64x512xf32, #tpu.memory_space<vmem>>, vector<64x512xf32>
    tpu.vector_store %arg16[%c0_134, %c0_135], %125 {strides = array<i32>} : memref<64x512xf32, #tpu.memory_space<vmem>>, vector<64x512xf32>,
    %c0_136 = arith.constant 0 : index
    %c0_137 = arith.constant 0 : index
    %127 = vector.load %arg16[%c0_136, %c0_137] : memref<64x512xf32, #tpu.memory_space<vmem>>, vector<64x512xf32>
    %cst_138 = arith.constant 0.000000e+00 : f32
    %128 = vector.broadcast %cst_138 : f32 to vector<64x512xf32>
    %129 = arith.maximumf %127, %128 : vector<64x512xf32>
    %c0_139 = arith.constant 0 : index
    %c0_140 = arith.constant 0 : index
    %130 = vector.load %arg12[%c0_139, %c0_140] : memref<64x512xf32, #tpu.memory_space<vmem>>, vector<64x512xf32>
    tpu.vector_store %arg12[%c0_139, %c0_140], %129 {strides = array<i32>} : memref<64x512xf32, #tpu.memory_space<vmem>>, vector<64x512xf32>,
    %131 = arith.truncf %129 : vector<64x512xf32> to vector<64x512xbf16>
    %c0_141 = arith.constant 0 : index
    %c0_142 = arith.constant 0 : index
    %132 = vector.load %arg7[%c0_141, %c0_142] : memref<512x128xbf16, #tpu.memory_space<vmem>>, vector<512x128xbf16>
    %cst_143 = arith.constant dense<0.000000e+00> : vector<64x128xf32>
    %133 = tpu.matmul %131, %132, %cst_143 {dimension_numbers = #tpu.dot_dimension_numbers<[1], [0], [0], [1], [0, 0, 1, 1], [], []>} : vector<64x512xbf16>, vector<512x128xbf16>, vector<64x128xf32> -> vector<64x128xf32>
    %c0_144 = arith.constant 0 : index
    %c0_145 = arith.constant 0 : index
    %134 = vector.load %arg8[%c0_144, %c0_145] : memref<1x128xf32, #tpu.memory_space<vmem>>, vector<1x128xf32>
    %135 = vector.broadcast %134 : vector<1x128xf32> to vector<64x128xf32>
    %136 = arith.addf %133, %135 : vector<64x128xf32>
    %cst_146 = arith.constant 0.000000e+00 : f32
    %137 = vector.broadcast %cst_146 : f32 to vector<64x128xf32>
    %138 = arith.maximumf %136, %137 : vector<64x128xf32>
    %139 = arith.truncf %138 : vector<64x128xf32> to vector<64x128xbf16>
    %c0_147 = arith.constant 0 : index
    %c0_148 = arith.constant 0 : index
    %140 = vector.load %arg17[%c0_147, %c0_148] : memref<64x128xbf16, #tpu.memory_space<vmem>>, vector<64x128xbf16>
    tpu.vector_store %arg17[%c0_147, %c0_148], %139 {strides = array<i32>} : memref<64x128xbf16, #tpu.memory_space<vmem>>, vector<64x128xbf16>,
    %c0_149 = arith.constant 0 : index
    %c0_150 = arith.constant 0 : index
    %141 = vector.load %arg9[%c0_149, %c0_150] : memref<144x64xbf16, #tpu.memory_space<vmem>>, vector<144x64xbf16>
    %c0_151 = arith.constant 0 : index
    %c0_152 = arith.constant 0 : index
    %142 = vector.load %arg17[%c0_151, %c0_152] : memref<64x128xbf16, #tpu.memory_space<vmem>>, vector<64x128xbf16>
    %cst_153 = arith.constant dense<0.000000e+00> : vector<144x128xf32>
    %143 = tpu.matmul %141, %142, %cst_153 {dimension_numbers = #tpu.dot_dimension_numbers<[1], [0], [0], [1], [0, 0, 1, 1], [], []>} : vector<144x64xbf16>, vector<64x128xbf16>, vector<144x128xf32> -> vector<144x128xf32>
    %144 = arith.truncf %143 : vector<144x128xf32> to vector<144x128xbf16>
    %145 = vector.extract_strided_slice %144 {offsets = [0, 0], sizes = [16, 128], strides = [1, 1]} : vector<144x128xbf16> to vector<16x128xbf16>
    %c0_154 = arith.constant 0 : index
    %c0_155 = arith.constant 0 : index
    %c0_156 = arith.constant 0 : index
    %146 = vector.load %arg18[%c0_154, %c0_155, %c0_156] : memref<9x16x128xbf16, #tpu.memory_space<vmem>>, vector<1x16x128xbf16>
    %147 = vector.shape_cast %146 : vector<1x16x128xbf16> to vector<16x128xbf16>
    %148 = vector.shape_cast %145 : vector<16x128xbf16> to vector<1x16x128xbf16>
    tpu.vector_store %arg18[%c0_154, %c0_155, %c0_156], %148 {strides = array<i32>} : memref<9x16x128xbf16, #tpu.memory_space<vmem>>, vector<1x16x128xbf16>,
    %149 = vector.extract_strided_slice %144 {offsets = [16, 0], sizes = [16, 128], strides = [1, 1]} : vector<144x128xbf16> to vector<16x128xbf16>
    %c1_157 = arith.constant 1 : index
    %c0_158 = arith.constant 0 : index
    %c0_159 = arith.constant 0 : index
    %150 = vector.load %arg18[%c1_157, %c0_158, %c0_159] : memref<9x16x128xbf16, #tpu.memory_space<vmem>>, vector<1x16x128xbf16>
    %151 = vector.shape_cast %150 : vector<1x16x128xbf16> to vector<16x128xbf16>
    %152 = vector.shape_cast %149 : vector<16x128xbf16> to vector<1x16x128xbf16>
    tpu.vector_store %arg18[%c1_157, %c0_158, %c0_159], %152 {strides = array<i32>} : memref<9x16x128xbf16, #tpu.memory_space<vmem>>, vector<1x16x128xbf16>,
    %153 = vector.extract_strided_slice %144 {offsets = [32, 0], sizes = [16, 128], strides = [1, 1]} : vector<144x128xbf16> to vector<16x128xbf16>
    %c2_160 = arith.constant 2 : index
    %c0_161 = arith.constant 0 : index
    %c0_162 = arith.constant 0 : index
    %154 = vector.load %arg18[%c2_160, %c0_161, %c0_162] : memref<9x16x128xbf16, #tpu.memory_space<vmem>>, vector<1x16x128xbf16>
    %155 = vector.shape_cast %154 : vector<1x16x128xbf16> to vector<16x128xbf16>
    %156 = vector.shape_cast %153 : vector<16x128xbf16> to vector<1x16x128xbf16>
    tpu.vector_store %arg18[%c2_160, %c0_161, %c0_162], %156 {strides = array<i32>} : memref<9x16x128xbf16, #tpu.memory_space<vmem>>, vector<1x16x128xbf16>,
    %157 = vector.extract_strided_slice %144 {offsets = [48, 0], sizes = [16, 128], strides = [1, 1]} : vector<144x128xbf16> to vector<16x128xbf16>
    %c3_163 = arith.constant 3 : index
    %c0_164 = arith.constant 0 : index
    %c0_165 = arith.constant 0 : index
    %158 = vector.load %arg18[%c3_163, %c0_164, %c0_165] : memref<9x16x128xbf16, #tpu.memory_space<vmem>>, vector<1x16x128xbf16>
    %159 = vector.shape_cast %158 : vector<1x16x128xbf16> to vector<16x128xbf16>
    %160 = vector.shape_cast %157 : vector<16x128xbf16> to vector<1x16x128xbf16>
    tpu.vector_store %arg18[%c3_163, %c0_164, %c0_165], %160 {strides = array<i32>} : memref<9x16x128xbf16, #tpu.memory_space<vmem>>, vector<1x16x128xbf16>,
    %161 = vector.extract_strided_slice %144 {offsets = [64, 0], sizes = [16, 128], strides = [1, 1]} : vector<144x128xbf16> to vector<16x128xbf16>
    %c4_166 = arith.constant 4 : index
    %c0_167 = arith.constant 0 : index
    %c0_168 = arith.constant 0 : index
    %162 = vector.load %arg18[%c4_166, %c0_167, %c0_168] : memref<9x16x128xbf16, #tpu.memory_space<vmem>>, vector<1x16x128xbf16>
    %163 = vector.shape_cast %162 : vector<1x16x128xbf16> to vector<16x128xbf16>
    %164 = vector.shape_cast %161 : vector<16x128xbf16> to vector<1x16x128xbf16>
    tpu.vector_store %arg18[%c4_166, %c0_167, %c0_168], %164 {strides = array<i32>} : memref<9x16x128xbf16, #tpu.memory_space<vmem>>, vector<1x16x128xbf16>,
    %165 = vector.extract_strided_slice %144 {offsets = [80, 0], sizes = [16, 128], strides = [1, 1]} : vector<144x128xbf16> to vector<16x128xbf16>
    %c5_169 = arith.constant 5 : index
    %c0_170 = arith.constant 0 : index
    %c0_171 = arith.constant 0 : index
    %166 = vector.load %arg18[%c5_169, %c0_170, %c0_171] : memref<9x16x128xbf16, #tpu.memory_space<vmem>>, vector<1x16x128xbf16>
    %167 = vector.shape_cast %166 : vector<1x16x128xbf16> to vector<16x128xbf16>
    %168 = vector.shape_cast %165 : vector<16x128xbf16> to vector<1x16x128xbf16>
    tpu.vector_store %arg18[%c5_169, %c0_170, %c0_171], %168 {strides = array<i32>} : memref<9x16x128xbf16, #tpu.memory_space<vmem>>, vector<1x16x128xbf16>,
    %169 = vector.extract_strided_slice %144 {offsets = [96, 0], sizes = [16, 128], strides = [1, 1]} : vector<144x128xbf16> to vector<16x128xbf16>
    %c6_172 = arith.constant 6 : index
    %c0_173 = arith.constant 0 : index
    %c0_174 = arith.constant 0 : index
    %170 = vector.load %arg18[%c6_172, %c0_173, %c0_174] : memref<9x16x128xbf16, #tpu.memory_space<vmem>>, vector<1x16x128xbf16>
    %171 = vector.shape_cast %170 : vector<1x16x128xbf16> to vector<16x128xbf16>
    %172 = vector.shape_cast %169 : vector<16x128xbf16> to vector<1x16x128xbf16>
    tpu.vector_store %arg18[%c6_172, %c0_173, %c0_174], %172 {strides = array<i32>} : memref<9x16x128xbf16, #tpu.memory_space<vmem>>, vector<1x16x128xbf16>,
    %173 = vector.extract_strided_slice %144 {offsets = [112, 0], sizes = [16, 128], strides = [1, 1]} : vector<144x128xbf16> to vector<16x128xbf16>
    %c7_175 = arith.constant 7 : index
    %c0_176 = arith.constant 0 : index
    %c0_177 = arith.constant 0 : index
    %174 = vector.load %arg18[%c7_175, %c0_176, %c0_177] : memref<9x16x128xbf16, #tpu.memory_space<vmem>>, vector<1x16x128xbf16>
    %175 = vector.shape_cast %174 : vector<1x16x128xbf16> to vector<16x128xbf16>
    %176 = vector.shape_cast %173 : vector<16x128xbf16> to vector<1x16x128xbf16>
    tpu.vector_store %arg18[%c7_175, %c0_176, %c0_177], %176 {strides = array<i32>} : memref<9x16x128xbf16, #tpu.memory_space<vmem>>, vector<1x16x128xbf16>,
    %177 = vector.extract_strided_slice %144 {offsets = [128, 0], sizes = [16, 128], strides = [1, 1]} : vector<144x128xbf16> to vector<16x128xbf16>
    %c8_178 = arith.constant 8 : index
    %c0_179 = arith.constant 0 : index
    %c0_180 = arith.constant 0 : index
    %178 = vector.load %arg18[%c8_178, %c0_179, %c0_180] : memref<9x16x128xbf16, #tpu.memory_space<vmem>>, vector<1x16x128xbf16>
    %179 = vector.shape_cast %178 : vector<1x16x128xbf16> to vector<16x128xbf16>
    %180 = vector.shape_cast %177 : vector<16x128xbf16> to vector<1x16x128xbf16>
    tpu.vector_store %arg18[%c8_178, %c0_179, %c0_180], %180 {strides = array<i32>} : memref<9x16x128xbf16, #tpu.memory_space<vmem>>, vector<1x16x128xbf16>,
    %cst_181 = arith.constant 0.000000e+00 : f32
    %181 = vector.broadcast %cst_181 : f32 to vector<16x256xf32>
    %c0_182 = arith.constant 0 : index
    %c0_183 = arith.constant 0 : index
    %182 = vector.load %arg11[%c0_182, %c0_183] : memref<1x256xf32, #tpu.memory_space<vmem>>, vector<1x256xf32>
    %183 = vector.broadcast %182 : vector<1x256xf32> to vector<16x256xf32>
    %184 = arith.addf %181, %183 : vector<16x256xf32>
    %c0_184 = arith.constant 0 : index
    %c0_185 = arith.constant 0 : index
    %185 = vector.load %arg19[%c0_184, %c0_185] : memref<16x256xf32, #tpu.memory_space<vmem>>, vector<16x256xf32>
    tpu.vector_store %arg19[%c0_184, %c0_185], %184 {strides = array<i32>} : memref<16x256xf32, #tpu.memory_space<vmem>>, vector<16x256xf32>,
    %c0_186 = arith.constant 0 : index
    %c0_187 = arith.constant 0 : index
    %186 = vector.load %arg19[%c0_186, %c0_187] : memref<16x256xf32, #tpu.memory_space<vmem>>, vector<16x256xf32>
    %c0_188 = arith.constant 0 : index
    %c0_189 = arith.constant 0 : index
    %c0_190 = arith.constant 0 : index
    %187 = vector.load %arg18[%c0_188, %c0_189, %c0_190] : memref<9x16x128xbf16, #tpu.memory_space<vmem>>, vector<1x16x128xbf16>
    %188 = vector.shape_cast %187 : vector<1x16x128xbf16> to vector<16x128xbf16>
    %c0_191 = arith.constant 0 : index
    %c0_192 = arith.constant 0 : index
    %c0_193 = arith.constant 0 : index
    %189 = vector.load %arg10[%c0_191, %c0_192, %c0_193] : memref<9x128x256xbf16, #tpu.memory_space<vmem>>, vector<1x128x256xbf16>
    %190 = vector.shape_cast %189 : vector<1x128x256xbf16> to vector<128x256xbf16>
    %cst_194 = arith.constant dense<0.000000e+00> : vector<16x256xf32>
    %191 = tpu.matmul %188, %190, %cst_194 {dimension_numbers = #tpu.dot_dimension_numbers<[1], [0], [0], [1], [0, 0, 1, 1], [], []>} : vector<16x128xbf16>, vector<128x256xbf16>, vector<16x256xf32> -> vector<16x256xf32>
    %192 = arith.addf %186, %191 : vector<16x256xf32>
    %c0_195 = arith.constant 0 : index
    %c0_196 = arith.constant 0 : index
    %193 = vector.load %arg19[%c0_195, %c0_196] : memref<16x256xf32, #tpu.memory_space<vmem>>, vector<16x256xf32>
    tpu.vector_store %arg19[%c0_195, %c0_196], %192 {strides = array<i32>} : memref<16x256xf32, #tpu.memory_space<vmem>>, vector<16x256xf32>,
    %c0_197 = arith.constant 0 : index
    %c0_198 = arith.constant 0 : index
    %194 = vector.load %arg19[%c0_197, %c0_198] : memref<16x256xf32, #tpu.memory_space<vmem>>, vector<16x256xf32>
    %c1_199 = arith.constant 1 : index
    %c0_200 = arith.constant 0 : index
    %c0_201 = arith.constant 0 : index
    %195 = vector.load %arg18[%c1_199, %c0_200, %c0_201] : memref<9x16x128xbf16, #tpu.memory_space<vmem>>, vector<1x16x128xbf16>
    %196 = vector.shape_cast %195 : vector<1x16x128xbf16> to vector<16x128xbf16>
    %c1_202 = arith.constant 1 : index
    %c0_203 = arith.constant 0 : index
    %c0_204 = arith.constant 0 : index
    %197 = vector.load %arg10[%c1_202, %c0_203, %c0_204] : memref<9x128x256xbf16, #tpu.memory_space<vmem>>, vector<1x128x256xbf16>
    %198 = vector.shape_cast %197 : vector<1x128x256xbf16> to vector<128x256xbf16>
    %cst_205 = arith.constant dense<0.000000e+00> : vector<16x256xf32>
    %199 = tpu.matmul %196, %198, %cst_205 {dimension_numbers = #tpu.dot_dimension_numbers<[1], [0], [0], [1], [0, 0, 1, 1], [], []>} : vector<16x128xbf16>, vector<128x256xbf16>, vector<16x256xf32> -> vector<16x256xf32>
    %200 = arith.addf %194, %199 : vector<16x256xf32>
    %c0_206 = arith.constant 0 : index
    %c0_207 = arith.constant 0 : index
    %201 = vector.load %arg19[%c0_206, %c0_207] : memref<16x256xf32, #tpu.memory_space<vmem>>, vector<16x256xf32>
    tpu.vector_store %arg19[%c0_206, %c0_207], %200 {strides = array<i32>} : memref<16x256xf32, #tpu.memory_space<vmem>>, vector<16x256xf32>,
    %c0_208 = arith.constant 0 : index
    %c0_209 = arith.constant 0 : index
    %202 = vector.load %arg19[%c0_208, %c0_209] : memref<16x256xf32, #tpu.memory_space<vmem>>, vector<16x256xf32>
    %c2_210 = arith.constant 2 : index
    %c0_211 = arith.constant 0 : index
    %c0_212 = arith.constant 0 : index
    %203 = vector.load %arg18[%c2_210, %c0_211, %c0_212] : memref<9x16x128xbf16, #tpu.memory_space<vmem>>, vector<1x16x128xbf16>
    %204 = vector.shape_cast %203 : vector<1x16x128xbf16> to vector<16x128xbf16>
    %c2_213 = arith.constant 2 : index
    %c0_214 = arith.constant 0 : index
    %c0_215 = arith.constant 0 : index
    %205 = vector.load %arg10[%c2_213, %c0_214, %c0_215] : memref<9x128x256xbf16, #tpu.memory_space<vmem>>, vector<1x128x256xbf16>
    %206 = vector.shape_cast %205 : vector<1x128x256xbf16> to vector<128x256xbf16>
    %cst_216 = arith.constant dense<0.000000e+00> : vector<16x256xf32>
    %207 = tpu.matmul %204, %206, %cst_216 {dimension_numbers = #tpu.dot_dimension_numbers<[1], [0], [0], [1], [0, 0, 1, 1], [], []>} : vector<16x128xbf16>, vector<128x256xbf16>, vector<16x256xf32> -> vector<16x256xf32>
    %208 = arith.addf %202, %207 : vector<16x256xf32>
    %c0_217 = arith.constant 0 : index
    %c0_218 = arith.constant 0 : index
    %209 = vector.load %arg19[%c0_217, %c0_218] : memref<16x256xf32, #tpu.memory_space<vmem>>, vector<16x256xf32>
    tpu.vector_store %arg19[%c0_217, %c0_218], %208 {strides = array<i32>} : memref<16x256xf32, #tpu.memory_space<vmem>>, vector<16x256xf32>,
    %c0_219 = arith.constant 0 : index
    %c0_220 = arith.constant 0 : index
    %210 = vector.load %arg19[%c0_219, %c0_220] : memref<16x256xf32, #tpu.memory_space<vmem>>, vector<16x256xf32>
    %c3_221 = arith.constant 3 : index
    %c0_222 = arith.constant 0 : index
    %c0_223 = arith.constant 0 : index
    %211 = vector.load %arg18[%c3_221, %c0_222, %c0_223] : memref<9x16x128xbf16, #tpu.memory_space<vmem>>, vector<1x16x128xbf16>
    %212 = vector.shape_cast %211 : vector<1x16x128xbf16> to vector<16x128xbf16>
    %c3_224 = arith.constant 3 : index
    %c0_225 = arith.constant 0 : index
    %c0_226 = arith.constant 0 : index
    %213 = vector.load %arg10[%c3_224, %c0_225, %c0_226] : memref<9x128x256xbf16, #tpu.memory_space<vmem>>, vector<1x128x256xbf16>
    %214 = vector.shape_cast %213 : vector<1x128x256xbf16> to vector<128x256xbf16>
    %cst_227 = arith.constant dense<0.000000e+00> : vector<16x256xf32>
    %215 = tpu.matmul %212, %214, %cst_227 {dimension_numbers = #tpu.dot_dimension_numbers<[1], [0], [0], [1], [0, 0, 1, 1], [], []>} : vector<16x128xbf16>, vector<128x256xbf16>, vector<16x256xf32> -> vector<16x256xf32>
    %216 = arith.addf %210, %215 : vector<16x256xf32>
    %c0_228 = arith.constant 0 : index
    %c0_229 = arith.constant 0 : index
    %217 = vector.load %arg19[%c0_228, %c0_229] : memref<16x256xf32, #tpu.memory_space<vmem>>, vector<16x256xf32>
    tpu.vector_store %arg19[%c0_228, %c0_229], %216 {strides = array<i32>} : memref<16x256xf32, #tpu.memory_space<vmem>>, vector<16x256xf32>,
    %c0_230 = arith.constant 0 : index
    %c0_231 = arith.constant 0 : index
    %218 = vector.load %arg19[%c0_230, %c0_231] : memref<16x256xf32, #tpu.memory_space<vmem>>, vector<16x256xf32>
    %c4_232 = arith.constant 4 : index
    %c0_233 = arith.constant 0 : index
    %c0_234 = arith.constant 0 : index
    %219 = vector.load %arg18[%c4_232, %c0_233, %c0_234] : memref<9x16x128xbf16, #tpu.memory_space<vmem>>, vector<1x16x128xbf16>
    %220 = vector.shape_cast %219 : vector<1x16x128xbf16> to vector<16x128xbf16>
    %c4_235 = arith.constant 4 : index
    %c0_236 = arith.constant 0 : index
    %c0_237 = arith.constant 0 : index
    %221 = vector.load %arg10[%c4_235, %c0_236, %c0_237] : memref<9x128x256xbf16, #tpu.memory_space<vmem>>, vector<1x128x256xbf16>
    %222 = vector.shape_cast %221 : vector<1x128x256xbf16> to vector<128x256xbf16>
    %cst_238 = arith.constant dense<0.000000e+00> : vector<16x256xf32>
    %223 = tpu.matmul %220, %222, %cst_238 {dimension_numbers = #tpu.dot_dimension_numbers<[1], [0], [0], [1], [0, 0, 1, 1], [], []>} : vector<16x128xbf16>, vector<128x256xbf16>, vector<16x256xf32> -> vector<16x256xf32>
    %224 = arith.addf %218, %223 : vector<16x256xf32>
    %c0_239 = arith.constant 0 : index
    %c0_240 = arith.constant 0 : index
    %225 = vector.load %arg19[%c0_239, %c0_240] : memref<16x256xf32, #tpu.memory_space<vmem>>, vector<16x256xf32>
    tpu.vector_store %arg19[%c0_239, %c0_240], %224 {strides = array<i32>} : memref<16x256xf32, #tpu.memory_space<vmem>>, vector<16x256xf32>,
    %c0_241 = arith.constant 0 : index
    %c0_242 = arith.constant 0 : index
    %226 = vector.load %arg19[%c0_241, %c0_242] : memref<16x256xf32, #tpu.memory_space<vmem>>, vector<16x256xf32>
    %c5_243 = arith.constant 5 : index
    %c0_244 = arith.constant 0 : index
    %c0_245 = arith.constant 0 : index
    %227 = vector.load %arg18[%c5_243, %c0_244, %c0_245] : memref<9x16x128xbf16, #tpu.memory_space<vmem>>, vector<1x16x128xbf16>
    %228 = vector.shape_cast %227 : vector<1x16x128xbf16> to vector<16x128xbf16>
    %c5_246 = arith.constant 5 : index
    %c0_247 = arith.constant 0 : index
    %c0_248 = arith.constant 0 : index
    %229 = vector.load %arg10[%c5_246, %c0_247, %c0_248] : memref<9x128x256xbf16, #tpu.memory_space<vmem>>, vector<1x128x256xbf16>
    %230 = vector.shape_cast %229 : vector<1x128x256xbf16> to vector<128x256xbf16>
    %cst_249 = arith.constant dense<0.000000e+00> : vector<16x256xf32>
    %231 = tpu.matmul %228, %230, %cst_249 {dimension_numbers = #tpu.dot_dimension_numbers<[1], [0], [0], [1], [0, 0, 1, 1], [], []>} : vector<16x128xbf16>, vector<128x256xbf16>, vector<16x256xf32> -> vector<16x256xf32>
    %232 = arith.addf %226, %231 : vector<16x256xf32>
    %c0_250 = arith.constant 0 : index
    %c0_251 = arith.constant 0 : index
    %233 = vector.load %arg19[%c0_250, %c0_251] : memref<16x256xf32, #tpu.memory_space<vmem>>, vector<16x256xf32>
    tpu.vector_store %arg19[%c0_250, %c0_251], %232 {strides = array<i32>} : memref<16x256xf32, #tpu.memory_space<vmem>>, vector<16x256xf32>,
    %c0_252 = arith.constant 0 : index
    %c0_253 = arith.constant 0 : index
    %234 = vector.load %arg19[%c0_252, %c0_253] : memref<16x256xf32, #tpu.memory_space<vmem>>, vector<16x256xf32>
    %c6_254 = arith.constant 6 : index
    %c0_255 = arith.constant 0 : index
    %c0_256 = arith.constant 0 : index
    %235 = vector.load %arg18[%c6_254, %c0_255, %c0_256] : memref<9x16x128xbf16, #tpu.memory_space<vmem>>, vector<1x16x128xbf16>
    %236 = vector.shape_cast %235 : vector<1x16x128xbf16> to vector<16x128xbf16>
    %c6_257 = arith.constant 6 : index
    %c0_258 = arith.constant 0 : index
    %c0_259 = arith.constant 0 : index
    %237 = vector.load %arg10[%c6_257, %c0_258, %c0_259] : memref<9x128x256xbf16, #tpu.memory_space<vmem>>, vector<1x128x256xbf16>
    %238 = vector.shape_cast %237 : vector<1x128x256xbf16> to vector<128x256xbf16>
    %cst_260 = arith.constant dense<0.000000e+00> : vector<16x256xf32>
    %239 = tpu.matmul %236, %238, %cst_260 {dimension_numbers = #tpu.dot_dimension_numbers<[1], [0], [0], [1], [0, 0, 1, 1], [], []>} : vector<16x128xbf16>, vector<128x256xbf16>, vector<16x256xf32> -> vector<16x256xf32>
    %240 = arith.addf %234, %239 : vector<16x256xf32>
    %c0_261 = arith.constant 0 : index
    %c0_262 = arith.constant 0 : index
    %241 = vector.load %arg19[%c0_261, %c0_262] : memref<16x256xf32, #tpu.memory_space<vmem>>, vector<16x256xf32>
    tpu.vector_store %arg19[%c0_261, %c0_262], %240 {strides = array<i32>} : memref<16x256xf32, #tpu.memory_space<vmem>>, vector<16x256xf32>,
    %c0_263 = arith.constant 0 : index
    %c0_264 = arith.constant 0 : index
    %242 = vector.load %arg19[%c0_263, %c0_264] : memref<16x256xf32, #tpu.memory_space<vmem>>, vector<16x256xf32>
    %c7_265 = arith.constant 7 : index
    %c0_266 = arith.constant 0 : index
    %c0_267 = arith.constant 0 : index
    %243 = vector.load %arg18[%c7_265, %c0_266, %c0_267] : memref<9x16x128xbf16, #tpu.memory_space<vmem>>, vector<1x16x128xbf16>
    %244 = vector.shape_cast %243 : vector<1x16x128xbf16> to vector<16x128xbf16>
    %c7_268 = arith.constant 7 : index
    %c0_269 = arith.constant 0 : index
    %c0_270 = arith.constant 0 : index
    %245 = vector.load %arg10[%c7_268, %c0_269, %c0_270] : memref<9x128x256xbf16, #tpu.memory_space<vmem>>, vector<1x128x256xbf16>
    %246 = vector.shape_cast %245 : vector<1x128x256xbf16> to vector<128x256xbf16>
    %cst_271 = arith.constant dense<0.000000e+00> : vector<16x256xf32>
    %247 = tpu.matmul %244, %246, %cst_271 {dimension_numbers = #tpu.dot_dimension_numbers<[1], [0], [0], [1], [0, 0, 1, 1], [], []>} : vector<16x128xbf16>, vector<128x256xbf16>, vector<16x256xf32> -> vector<16x256xf32>
    %248 = arith.addf %242, %247 : vector<16x256xf32>
    %c0_272 = arith.constant 0 : index
    %c0_273 = arith.constant 0 : index
    %249 = vector.load %arg19[%c0_272, %c0_273] : memref<16x256xf32, #tpu.memory_space<vmem>>, vector<16x256xf32>
    tpu.vector_store %arg19[%c0_272, %c0_273], %248 {strides = array<i32>} : memref<16x256xf32, #tpu.memory_space<vmem>>, vector<16x256xf32>,
    %c0_274 = arith.constant 0 : index
    %c0_275 = arith.constant 0 : index
    %250 = vector.load %arg19[%c0_274, %c0_275] : memref<16x256xf32, #tpu.memory_space<vmem>>, vector<16x256xf32>
    %c8_276 = arith.constant 8 : index
    %c0_277 = arith.constant 0 : index
    %c0_278 = arith.constant 0 : index
    %251 = vector.load %arg18[%c8_276, %c0_277, %c0_278] : memref<9x16x128xbf16, #tpu.memory_space<vmem>>, vector<1x16x128xbf16>
    %252 = vector.shape_cast %251 : vector<1x16x128xbf16> to vector<16x128xbf16>
    %c8_279 = arith.constant 8 : index
    %c0_280 = arith.constant 0 : index
    %c0_281 = arith.constant 0 : index
    %253 = vector.load %arg10[%c8_279, %c0_280, %c0_281] : memref<9x128x256xbf16, #tpu.memory_space<vmem>>, vector<1x128x256xbf16>
    %254 = vector.shape_cast %253 : vector<1x128x256xbf16> to vector<128x256xbf16>
    %cst_282 = arith.constant dense<0.000000e+00> : vector<16x256xf32>
    %255 = tpu.matmul %252, %254, %cst_282 {dimension_numbers = #tpu.dot_dimension_numbers<[1], [0], [0], [1], [0, 0, 1, 1], [], []>} : vector<16x128xbf16>, vector<128x256xbf16>, vector<16x256xf32> -> vector<16x256xf32>
    %256 = arith.addf %250, %255 : vector<16x256xf32>
    %c0_283 = arith.constant 0 : index
    %c0_284 = arith.constant 0 : index
    %257 = vector.load %arg19[%c0_283, %c0_284] : memref<16x256xf32, #tpu.memory_space<vmem>>, vector<16x256xf32>
    tpu.vector_store %arg19[%c0_283, %c0_284], %256 {strides = array<i32>} : memref<16x256xf32, #tpu.memory_space<vmem>>, vector<16x256xf32>,
    %c0_285 = arith.constant 0 : index
    %c0_286 = arith.constant 0 : index
    %258 = vector.load %arg19[%c0_285, %c0_286] : memref<16x256xf32, #tpu.memory_space<vmem>>, vector<16x256xf32>
    %cst_287 = arith.constant 0.000000e+00 : f32
    %259 = vector.broadcast %cst_287 : f32 to vector<16x256xf32>
    %260 = arith.maximumf %258, %259 : vector<16x256xf32>
    %c0_288 = arith.constant 0 : index
    %c0_289 = arith.constant 0 : index
    %261 = vector.load %arg13[%c0_288, %c0_289] : memref<16x256xf32, #tpu.memory_space<vmem>>, vector<16x256xf32>
    tpu.vector_store %arg13[%c0_288, %c0_289], %260 {strides = array<i32>} : memref<16x256xf32, #tpu.memory_space<vmem>>, vector<16x256xf32>,
    return
  }
  func.func @transform_0(%arg0: i32) -> (i32, i32) {
    %c0_i32 = arith.constant 0 : i32
    %c0_i32_0 = arith.constant 0 : i32
    return %arg0, %c0_i32 : i32, i32
  }
  func.func @transform_1(%arg0: i32) -> (i32, i32) {
    %c0_i32 = arith.constant 0 : i32
    %c0_i32_0 = arith.constant 0 : i32
    %c0_i32_1 = arith.constant 0 : i32
    return %c0_i32, %c0_i32_0 : i32, i32
  }
  func.func @transform_2(%arg0: i32) -> (i32, i32) {
    %c0_i32 = arith.constant 0 : i32
    %c0_i32_0 = arith.constant 0 : i32
    %c0_i32_1 = arith.constant 0 : i32
    return %c0_i32, %c0_i32_0 : i32, i32
  }
  func.func @transform_3(%arg0: i32) -> (i32, i32) {
    %c0_i32 = arith.constant 0 : i32
    %c0_i32_0 = arith.constant 0 : i32
    %c0_i32_1 = arith.constant 0 : i32
    return %c0_i32, %c0_i32_0 : i32, i32
  }
  func.func @transform_4(%arg0: i32) -> (i32, i32, i32) {
    %c0_i32 = arith.constant 0 : i32
    %c0_i32_0 = arith.constant 0 : i32
    %c0_i32_1 = arith.constant 0 : i32
    %c0_i32_2 = arith.constant 0 : i32
    return %c0_i32, %c0_i32_0, %c0_i32_1 : i32, i32, i32
  }
  func.func @transform_5(%arg0: i32) -> (i32, i32) {
    %c0_i32 = arith.constant 0 : i32
    %c0_i32_0 = arith.constant 0 : i32
    %c0_i32_1 = arith.constant 0 : i32
    return %c0_i32, %c0_i32_0 : i32, i32
  }
  func.func @transform_6(%arg0: i32) -> (i32, i32) {
    %c0_i32 = arith.constant 0 : i32
    %c0_i32_0 = arith.constant 0 : i32
    %c0_i32_1 = arith.constant 0 : i32
    return %c0_i32, %c0_i32_0 : i32, i32
  }
  func.func @transform_7(%arg0: i32) -> (i32, i32) {
    %c0_i32 = arith.constant 0 : i32
    %c0_i32_0 = arith.constant 0 : i32
    %c0_i32_1 = arith.constant 0 : i32
    return %c0_i32, %c0_i32_0 : i32, i32
  }
  func.func @transform_8(%arg0: i32) -> (i32, i32) {
    %c0_i32 = arith.constant 0 : i32
    %c0_i32_0 = arith.constant 0 : i32
    %c0_i32_1 = arith.constant 0 : i32
    return %c0_i32, %c0_i32_0 : i32, i32
  }
  func.func @transform_9(%arg0: i32) -> (i32, i32, i32) {
    %c0_i32 = arith.constant 0 : i32
    %c0_i32_0 = arith.constant 0 : i32
    %c0_i32_1 = arith.constant 0 : i32
    %c0_i32_2 = arith.constant 0 : i32
    return %c0_i32, %c0_i32_0, %c0_i32_1 : i32, i32, i32
  }
  func.func @transform_10(%arg0: i32) -> (i32, i32) {
    %c0_i32 = arith.constant 0 : i32
    %c0_i32_0 = arith.constant 0 : i32
    %c0_i32_1 = arith.constant 0 : i32
    return %c0_i32, %c0_i32_0 : i32, i32
  }
  func.func @transform_11(%arg0: i32) -> (i32, i32) {
    %c0_i32 = arith.constant 0 : i32
    %c0_i32_0 = arith.constant 0 : i32
    return %arg0, %c0_i32 : i32, i32
  }
  func.func @transform_12(%arg0: i32) -> (i32, i32) {
    %c0_i32 = arith.constant 0 : i32
    %c0_i32_0 = arith.constant 0 : i32
    return %arg0, %c0_i32 : i32, i32
  }
}

</mosaic_0001>

<bundles_post_ra>
// kernel: extra_conv_layers_forward.1
= control target key start
LH: loop header
LB: loop body
LE: loop exit
PB: predicated region body
PF: predicated region fallthrough
CT: control target
= control target key end

     0   :  { %18 = vsyncpa [#allocation9], 0  ;;  %s16910_s0 = inlined_call_operand.vmem [shape: bf16[512,128], index: 0, kind: input, shape index: {}]   ;;  %s16911_s1 = inlined_call_operand.vmem [shape: bf16[128,256], index: 1, kind: input, shape index: {}]   ;;  %s16912_s2 = inlined_call_operand.vmem [shape: f32[1,256], index: 2, kind: input, shape index: {}]   ;;  %s16913_s3 = inlined_call_operand.vmem [shape: bf16[576,256], index: 3, kind: input, shape index: {}]   ;;  %s16914_s4 = inlined_call_operand.vmem [shape: bf16[9,256,512], index: 4, kind: input, shape index: {}]   ;;  %s16915_s5 = inlined_call_operand.vmem [shape: f32[1,512], index: 5, kind: input, shape index: {}]   ;;  %s16916_s6 = inlined_call_operand.vmem [shape: bf16[512,128], index: 6, kind: input, shape index: {}]   ;;  %s16917_s7 = inlined_call_operand.vmem [shape: f32[1,128], index: 7, kind: input, shape index: {}]   ;;  %s16918_s8 = inlined_call_operand.vmem [shape: bf16[144,64], index: 8, kind: input, shape index: {}]   ;;  %s16919_s9 = inlined_call_operand.vmem [shape: bf16[9,128,256], index: 9, kind: input, shape index: {}]   ;;  %s16920_s10 = inlined_call_operand.vmem [shape: f32[1,256], index: 10, kind: input, shape index: {}]   ;;  %s16921_s11 = inlined_call_operand.hbm [shape: f32[128,512], index: 11, kind: output, shape index: {0}]   ;;  %s16922_s12 = inlined_call_operand.vmem [shape: f32[32,256], index: 12, kind: output, shape index: {1}]  }
   0x1   :  { %20 = vsyncpa [#allocation9 + $0x1], 0  ;;  %s13495_s21 = smov 0   ;;  %s13497_s22 = smov 0  }
   0x2   :  { %s13499_s23 = smov 0   ;;  %s13501_s24 = smov 0  }
   0x3 LB: > { %16928 = sst [smem:[#allocation11_spill]] %s13418_s23  ;;  %s13516_s25 = sadd.s32 4294967295, %s13422_s24   ;;  %s13422_s24 = sphi %s13501_s24, %s16954_s24   ;;  %s13418_s23 = sphi %s13499_s23, %s16956_s23   ;;  %s13414_s22 = sphi %s13497_s22, %s16958_s22   ;;  %s13410_s21 = sphi %s13495_s21, %s16957_s21  }
   0x4   : > { %s10036_s26 = sadd.s32 4294967294, %s13422_s24   ;;  %s13520_s27 = sadd.s32 1, %s13422_s24  }
   0x5   : > { %16929 = sst [smem:[#allocation12_spill]] %s13520_s27  ;;  %s269_s28 = sadd.s32 1, %s13418_s23 }
   0x6   : > { %s266_s29 = ssub.s32 %s13422_s24, %s13520_s27  ;;  %p279_p0 = scmp.ne.s32.totalorder %s13418_s23, %s13414_s22 }
   0x7   : > { %p267_p1 = scmp.eq.s32.totalorder %s266_s29, 0  ;;  %p280_p2 = scmp.eq.s32.totalorder %s13516_s25, 1 }
   0x8   : > { %p285_p3 = scmp.ne.s32.totalorder %s13414_s22, %s13410_s21  ;;  %p286_p4 = scmp.eq.s32.totalorder %s10036_s26, 1 }
   0x9   : > { %s13531_s30 = scalar_select %p267_p1, %s13418_s23, %s269_s28  }
   0xa   : > { %p13533_p5 = por %p280_p2, %p279_p0  ;;  %p13537_p6 = por %p286_p4, %p285_p3 }
   0xb   : > { %16930 = sst [smem:[#allocation13_spill]] %s13531_s30  ;;  %p10039_p7 = scmp.ge.s32.totalorder %s13422_s24, 1 }
   0xc   : > { %p369_p8 = scmp.lt.s32.totalorder %s13422_s24, 3 }
   0xe   : > { %p370_p9 = pnand %p10039_p7, %p369_p8 }
  0x10   : > { %373 = sbr.rel (%p370_p9) target bundleno = 2711 (0xa97), region = 64 }
  0x17   : > { %v12091_v0 = vld [vmem:[%s16911_s1 + $0x4] ss:$8 sps:$4 sm:$0xff]   ;;  %s10041_s17 = sshll.u32 %s13516_s25, 5  ;;  %v12093_v1 = vld [vmem:[%s16911_s1] ss:$8 sps:$4 sm:$0xff]   ;;  %v16926_v2 = vmov 0   ;;  %v482_v33 = vlaneseq }
  0x18   : > { %700 = vmatprep.mubr.bf16.mxu1 %v16926_v2  ;;  %p418_p10 = scmp.lt.s32.totalorder %s10041_s17, 63  ;;  %668 = vmatprep.subr.bf16.mxu1 %v12091_v0  ;;  %v12094_v3 = vld [vmem:[%s16911_s1 + $0x14] ss:$8 sps:$4 sm:$0xff]   ;;  %v12096_v4 = vld [vmem:[%s16911_s1 + $0x10] ss:$8 sps:$4 sm:$0xff]   ;;  %s406_s16 = sand.u32 1, %s13414_s22  }
  0x19   : > { %669 = vmatpush1.bf16.msra.mxu1 %v12093_v1  ;;  %v12097_v5 = vld [vmem:[%s16911_s1 + $0x24] ss:$8 sps:$4 sm:$0xff]   ;;  %v12099_v6 = vld [vmem:[%s16911_s1 + $0x20] ss:$8 sps:$4 sm:$0xff]   ;;  %v12100_v7 = vld [vmem:[%s16911_s1 + $0x34] ss:$8 sps:$4 sm:$0xff]  }
  0x1a   : > { %s16960_s17 = smov (!%p418_p10, %s10041_s17), 63  ;;  %670 = vmatprep.subr.bf16.mxu1 %v12094_v3  ;;  %v12102_v8 = vld [vmem:[%s16911_s1 + $0x30] ss:$8 sps:$4 sm:$0xff]   ;;  %v12103_v9 = vld [vmem:[%s16911_s1 + $0x44] ss:$8 sps:$4 sm:$0xff]   ;;  %v13629_v34 = vshrl.u32 %v482_v33, 7 }
  0x1b   : > { %s10042_s18 = sshll.u32 %s16960_s17, 2  ;;  %v12105_v10 = vld [vmem:[%s16911_s1 + $0x40] ss:$8 sps:$4 sm:$0xff]   ;;  %v12106_v11 = vld [vmem:[%s16911_s1 + $0x54] ss:$8 sps:$4 sm:$0xff]   ;;  %s10040_s30 = sshll.u32 %s406_s16, 8 }
  0x1c   : > { %s13569_s29 = scalar_lea.vmem %s16910_s0, %s10042_s18  ;;  %v12108_v12 = vld [vmem:[%s16911_s1 + $0x50] ss:$8 sps:$4 sm:$0xff]   ;;  %v12109_v13 = vld [vmem:[%s16911_s1 + $0x64] ss:$8 sps:$4 sm:$0xff]   ;;  %v12111_v14 = vld [vmem:[%s16911_s1 + $0x60] ss:$8 sps:$4 sm:$0xff]  }
  0x1d   : > { %671 = vmatpush1.bf16.msra.mxu1 %v12096_v4  ;;  %v12112_v15 = vld [vmem:[%s16911_s1 + $0x74] ss:$8 sps:$4 sm:$0xff]   ;;  %v12114_v16 = vld [vmem:[%s16911_s1 + $0x70] ss:$8 sps:$4 sm:$0xff]   ;;  %v12115_v17 = vld [vmem:[%s13569_s29] sm:$0xff]   ;;  %v13635_v36 = vsub.s32 0, %v13629_v34 }
  0x1e   : > { %672 = vmatprep.subr.bf16.mxu1 %v12097_v5  ;;  %v12116_v18 = vld [vmem:[%s13569_s29 + $0x8] sm:$0xff]   ;;  %v12117_v19 = vld [vmem:[%s13569_s29 + $0x10] sm:$0xff]   ;;  %v12118_v20 = vld [vmem:[%s13569_s29 + $0x18] sm:$0xff]   ;;  %v13638_v37 = vsub.s32 1, %v13629_v34  ;;  %s16171_s19 = scalar_lea.vmem [#allocation8], %s10040_s30  ;;  %vm13426_vm0 = vmmov 0  }
  0x1f   : > { %v12119_v21 = vld [vmem:[%s13569_s29 + $0x20] sm:$0xff]   ;;  %v12120_v22 = vld [vmem:[%s13569_s29 + $0x28] sm:$0xff]   ;;  %v12121_v23 = vld [vmem:[%s13569_s29 + $0x30] sm:$0xff]   ;;  %vm8358_vm1 = vcmask 523264   ;;  %s11569_s17 = sshll.u32 %s13516_s25, 12  ;;  %s9944_s30 = sshll.u32 %s16171_s19, 4  ;;  %s16856_s30 = int_to_ptr.vmem [resolvable:$true] %s9944_s30 }
  0x20   : > { %v12122_v24 = vld [vmem:[%s13569_s29 + $0x38] sm:$0xff]   ;;  %v12123_v25 = vld [vmem:[%s13569_s29 + $0x40] sm:$0xff]   ;;  %v12124_v26 = vld [vmem:[%s13569_s29 + $0x48] sm:$0xff]   ;;  %s16854_s27 = scalar_lea.hbm %s16921_s11, %s11569_s17  ;;  %s13360_s20 = scalar_lea.vmem %s16856_s30, 4096 }
  0x21   : > { %673 = vmatpush1.bf16.msra.mxu1 %v12099_v6  ;;  %v12125_v27 = vld [vmem:[%s13569_s29 + $0x50] sm:$0xff]   ;;  %v12126_v28 = vld [vmem:[%s13569_s29 + $0x58] sm:$0xff]   ;;  %v12127_v29 = vld [vmem:[%s13569_s29 + $0x60] sm:$0xff]   ;;  %p13361_p11 = scmp.ne.s32.totalorder %s16856_s30, %s13360_s20  ;;  %s13427_s26 = smov [#allocation8]  }
  0x22   : > { %674 = vmatprep.subr.bf16.mxu1 %v12100_v7  ;;  %v12128_v30 = vld [vmem:[%s13569_s29 + $0x68] sm:$0xff]   ;;  %v12129_v31 = vld [vmem:[%s13569_s29 + $0x70] sm:$0xff]   ;;  %v12130_v32 = vld [vmem:[%s13569_s29 + $0x78] sm:$0xff]   ;;  %s16860_s29 = scalar_lea.sflag [#allocation9], %s406_s16 }
  0x23   : > { %v480_v35 = vld [vmem:[%s16912_s2] sm:$0x3]  ;;  %v12133_v47 = vld [vmem:[%s16913_s3 + $0x4] ss:$8 sps:$4 sm:$0xff]   ;;  %p13362_p12 = pnand %p13361_p11, %p13533_p5 }
  0x24   : > { %v13641_v38 = vrot.slane %v480_v35, %v13635_v36  ;;  %v13644_v39 = vrot.slane %v480_v35, %v13638_v37 }
  0x25   : > { %675 = vmatpush1.bf16.msra.mxu1 %v12102_v8  ;;  %p13363_p13 = pneg %p13362_p12 }
  0x26   : > { %676 = vmatprep.subr.bf16.mxu1 %v12103_v9 }
  0x29   : > { %677 = vmatpush1.bf16.msra.mxu1 %v12105_v10 }
  0x2a   : > { %678 = vmatprep.subr.bf16.mxu1 %v12106_v11 }
  0x2d   : > { %679 = vmatpush1.bf16.msra.mxu1 %v12108_v12 }
  0x2e   : > { %680 = vmatprep.subr.bf16.mxu1 %v12109_v13 }
  0x31   : > { %681 = vmatpush1.bf16.msra.mxu1 %v12111_v14 }
  0x32   : > { %682 = vmatprep.subr.bf16.mxu1 %v12112_v15 }
  0x35   : > { %683 = vmatpush1.bf16.msra.mxu1 %v12114_v16 }
  0x38   : > { %701 = vmatmul.mubr.bf16.vlgmr.msra.gmra.mrb[0].mxu1 %v12115_v17 }
  0x39   : > { %710 = vmatprep.mubr.bf16.mxu1 %v16926_v2 }
  0x40   : > { %711 = vmatmul.mubr.bf16.gmra.mrb[4].mxu1 %v12116_v18 }
  0x41   : > { %720 = vmatprep.mubr.bf16.mxu1 %v16926_v2 }
  0x48   : > { %721 = vmatmul.mubr.bf16.gmra.mrb[8].mxu1 %v12117_v19 }
  0x49   : > { %730 = vmatprep.mubr.bf16.mxu1 %v16926_v2 }
  0x50   : > { %731 = vmatmul.mubr.bf16.gmra.mrb[12].mxu1 %v12118_v20 }
  0x51   : > { %740 = vmatprep.mubr.bf16.mxu1 %v16926_v2 }
  0x58   : > { %741 = vmatmul.mubr.bf16.gmra.mrb[16].mxu1 %v12119_v21 }
  0x59   : > { %750 = vmatprep.mubr.bf16.mxu1 %v16926_v2 }
  0x60   : > { %751 = vmatmul.mubr.bf16.gmra.mrb[20].mxu1 %v12120_v22 }
  0x61   : > { %760 = vmatprep.mubr.bf16.mxu1 %v16926_v2 }
  0x68   : > { %761 = vmatmul.mubr.bf16.gmra.mrb[24].mxu1 %v12121_v23 }
  0x69   : > { %770 = vmatprep.mubr.bf16.mxu1 %v16926_v2 }
  0x70   : > { %771 = vmatmul.mubr.bf16.gmra.mrb[28].mxu1 %v12122_v24 }
  0x71   : > { %780 = vmatprep.mubr.bf16.mxu1 %v16926_v2 }
  0x78   : > { %781 = vmatmul.mubr.bf16.gmra.mrb[32].mxu1 %v12123_v25 }
  0x79   : > { %790 = vmatprep.mubr.bf16.mxu1 %v16926_v2 }
  0x80   : > { %791 = vmatmul.mubr.bf16.gmra.mrb[36].mxu1 %v12124_v26 }
  0x81   : > { %800 = vmatprep.mubr.bf16.mxu1 %v16926_v2 }
  0x88   : > { %801 = vmatmul.mubr.bf16.gmra.mrb[40].mxu1 %v12125_v27 }
  0x89   : > { %810 = vmatprep.mubr.bf16.mxu1 %v16926_v2 }
  0x90   : > { %811 = vmatmul.mubr.bf16.gmra.mrb[44].mxu1 %v12126_v28 }
  0x91   : > { %820 = vmatprep.mubr.bf16.mxu1 %v16926_v2 }
  0x98   : > { %821 = vmatmul.mubr.bf16.gmra.mrb[48].mxu1 %v12127_v29 }
  0x99   : > { %830 = vmatprep.mubr.bf16.mxu1 %v16926_v2 }
  0xa0   : > { %831 = vmatmul.mubr.bf16.gmra.mrb[52].mxu1 %v12128_v30 }
  0xa1   : > { %840 = vmatprep.mubr.bf16.mxu1 %v16926_v2 }
  0xa8   : > { %841 = vmatmul.mubr.bf16.gmra.mrb[56].mxu1 %v12129_v31 }
  0xa9   : > { %850 = vmatprep.mubr.bf16.mxu1 %v16926_v2  ;;  %v12694_v2 = vld [vmem:[%s16914_s4 + $0x8ec] ss:$16 sps:$4 sm:$0xff]  }
  0xb0   : > { %851 = vmatmul.mubr.bf16.gmra.mrb[60].mxu1 %v12130_v32 }
  0xb1   : > { %1485 = vmatprep.mubr.bf16.mxu1 %v12133_v47 }
 0x10b   : > { %v702_v40 = vpop.f32.mrb[0].mxu1 }
 0x10c   : > { %v703_v41 = vadd.f32 %v702_v40, %v13641_v38  ;;  %v704_v42 = vpop.f32.mrb[1].mxu1 }
 0x10d   : > { %v705_v43 = vadd.f32 %v704_v42, %v13644_v39  ;;  %v706_v44 = vpop.f32.mrb[2].mxu1 }
 0x10e   : > { %v707_v45 = vadd.f32 %v706_v44, %v13641_v38  ;;  %v708_v46 = vpop.f32.mrb[3].mxu1  ;;  %v861_v48 = vmax.f32 %v703_v41, 0.0 }
 0x10f   : > { %v709_v49 = vadd.f32 %v708_v46, %v13644_v39  ;;  %v862_v51 = vmax.f32 %v705_v43, 0.0 }
 0x110   : > { %v863_v50 = vmax.f32 %v707_v45, 0.0 }
 0x111   : > { %v864_v52 = vmax.f32 %v709_v49, 0.0 }
 0x112   : > { %v925_v53 = vpack.c.bf16 %v863_v50, %v861_v48 }
 0x113   : > { %v712_v54 = vpop.f32.mrb[4].mxu1  ;;  %v926_v55 = vpack.c.bf16 %v864_v52, %v862_v51 }
 0x114   : > { %v713_v56 = vadd.f32 %v712_v54, %v13641_v38  ;;  %v714_v57 = vpop.f32.mrb[5].mxu1 }
 0x115   : > { %v715_v58 = vadd.f32 %v714_v57, %v13644_v39  ;;  %v716_v59 = vpop.f32.mrb[6].mxu1  ;;  %1453 = vmatprep.subr.bf16.mxu1 %v926_v55 }
 0x116   : > { %v717_v60 = vadd.f32 %v716_v59, %v13641_v38  ;;  %v718_v61 = vpop.f32.mrb[7].mxu1  ;;  %1454 = vmatpush1.bf16.msra.mxu1 %v925_v53  ;;  %v865_v62 = vmax.f32 %v713_v56, 0.0 }
 0x117   : > { %v719_v63 = vadd.f32 %v718_v61, %v13644_v39  ;;  %v866_v1 = vmax.f32 %v715_v58, 0.0 }
 0x118   : > { %v867_v0 = vmax.f32 %v717_v60, 0.0 }
 0x119   : > { %v868_v3 = vmax.f32 %v719_v63, 0.0 }
 0x11a   : > { %v927_v4 = vpack.c.bf16 %v867_v0, %v865_v62 }
 0x11b   : > { %v722_v5 = vpop.f32.mrb[8].mxu1  ;;  %v928_v6 = vpack.c.bf16 %v868_v3, %v866_v1 }
 0x11c   : > { %v723_v7 = vadd.f32 %v722_v5, %v13641_v38  ;;  %v724_v8 = vpop.f32.mrb[9].mxu1 }
 0x11d   : > { %v725_v9 = vadd.f32 %v724_v8, %v13644_v39  ;;  %v726_v10 = vpop.f32.mrb[10].mxu1  ;;  %1455 = vmatprep.subr.bf16.mxu1 %v928_v6 }
 0x11e   : > { %v727_v11 = vadd.f32 %v726_v10, %v13641_v38  ;;  %v728_v12 = vpop.f32.mrb[11].mxu1  ;;  %1456 = vmatpush1.bf16.msra.mxu1 %v927_v4  ;;  %v869_v13 = vmax.f32 %v723_v7, 0.0 }
 0x11f   : > { %v729_v14 = vadd.f32 %v728_v12, %v13644_v39  ;;  %v870_v16 = vmax.f32 %v725_v9, 0.0 }
 0x120   : > { %v871_v15 = vmax.f32 %v727_v11, 0.0 }
 0x121   : > { %v872_v17 = vmax.f32 %v729_v14, 0.0 }
 0x122   : > { %v929_v18 = vpack.c.bf16 %v871_v15, %v869_v13 }
 0x123   : > { %v732_v19 = vpop.f32.mrb[12].mxu1  ;;  %v930_v20 = vpack.c.bf16 %v872_v17, %v870_v16 }
 0x124   : > { %v733_v21 = vadd.f32 %v732_v19, %v13641_v38  ;;  %v734_v22 = vpop.f32.mrb[13].mxu1 }
 0x125   : > { %v735_v23 = vadd.f32 %v734_v22, %v13644_v39  ;;  %v736_v24 = vpop.f32.mrb[14].mxu1  ;;  %1457 = vmatprep.subr.bf16.mxu1 %v930_v20 }
 0x126   : > { %v737_v25 = vadd.f32 %v736_v24, %v13641_v38  ;;  %v738_v26 = vpop.f32.mrb[15].mxu1  ;;  %1458 = vmatpush1.bf16.msra.mxu1 %v929_v18  ;;  %v873_v27 = vmax.f32 %v733_v21, 0.0 }
 0x127   : > { %v739_v28 = vadd.f32 %v738_v26, %v13644_v39  ;;  %v874_v30 = vmax.f32 %v735_v23, 0.0 }
 0x128   : > { %v875_v29 = vmax.f32 %v737_v25, 0.0 }
 0x129   : > { %v876_v31 = vmax.f32 %v739_v28, 0.0 }
 0x12a   : > { %v931_v32 = vpack.c.bf16 %v875_v29, %v873_v27 }
 0x12b   : > { %v742_v33 = vpop.f32.mrb[16].mxu1  ;;  %v932_v35 = vpack.c.bf16 %v876_v31, %v874_v30 }
 0x12c   : > { %v743_v40 = vadd.f32 %v742_v33, %v13641_v38  ;;  %v744_v41 = vpop.f32.mrb[17].mxu1 }
 0x12d   : > { %v745_v42 = vadd.f32 %v744_v41, %v13644_v39  ;;  %v746_v43 = vpop.f32.mrb[18].mxu1  ;;  %1459 = vmatprep.subr.bf16.mxu1 %v932_v35 }
 0x12e   : > { %v747_v44 = vadd.f32 %v746_v43, %v13641_v38  ;;  %v748_v45 = vpop.f32.mrb[19].mxu1  ;;  %1460 = vmatpush1.bf16.msra.mxu1 %v931_v32  ;;  %v877_v46 = vmax.f32 %v743_v40, 0.0 }
 0x12f   : > { %v749_v47 = vadd.f32 %v748_v45, %v13644_v39  ;;  %v878_v49 = vmax.f32 %v745_v42, 0.0 }
 0x130   : > { %v879_v48 = vmax.f32 %v747_v44, 0.0 }
 0x131   : > { %v880_v50 = vmax.f32 %v749_v47, 0.0 }
 0x132   : > { %v933_v51 = vpack.c.bf16 %v879_v48, %v877_v46 }
 0x133   : > { %v752_v52 = vpop.f32.mrb[20].mxu1  ;;  %v934_v53 = vpack.c.bf16 %v880_v50, %v878_v49 }
 0x134   : > { %v753_v54 = vadd.f32 %v752_v52, %v13641_v38  ;;  %v754_v55 = vpop.f32.mrb[21].mxu1 }
 0x135   : > { %v755_v56 = vadd.f32 %v754_v55, %v13644_v39  ;;  %v756_v57 = vpop.f32.mrb[22].mxu1  ;;  %1461 = vmatprep.subr.bf16.mxu1 %v934_v53 }
 0x136   : > { %v757_v58 = vadd.f32 %v756_v57, %v13641_v38  ;;  %v758_v59 = vpop.f32.mrb[23].mxu1  ;;  %1462 = vmatpush1.bf16.msra.mxu1 %v933_v51  ;;  %v881_v61 = vmax.f32 %v753_v54, 0.0 }
 0x137   : > { %v759_v60 = vadd.f32 %v758_v59, %v13644_v39  ;;  %v882_v63 = vmax.f32 %v755_v56, 0.0 }
 0x138   : > { %v883_v62 = vmax.f32 %v757_v58, 0.0 }
 0x139   : > { %v884_v0 = vmax.f32 %v759_v60, 0.0 }
 0x13a   : > { %v935_v1 = vpack.c.bf16 %v883_v62, %v881_v61 }
 0x13b   : > { %v762_v3 = vpop.f32.mrb[24].mxu1  ;;  %v936_v4 = vpack.c.bf16 %v884_v0, %v882_v63 }
 0x13c   : > { %v763_v5 = vadd.f32 %v762_v3, %v13641_v38  ;;  %v764_v6 = vpop.f32.mrb[25].mxu1 }
 0x13d   : > { %v765_v7 = vadd.f32 %v764_v6, %v13644_v39  ;;  %v766_v8 = vpop.f32.mrb[26].mxu1  ;;  %1463 = vmatprep.subr.bf16.mxu1 %v936_v4 }
 0x13e   : > { %v767_v9 = vadd.f32 %v766_v8, %v13641_v38  ;;  %v768_v10 = vpop.f32.mrb[27].mxu1  ;;  %1464 = vmatpush1.bf16.msra.mxu1 %v935_v1  ;;  %v885_v12 = vmax.f32 %v763_v5, 0.0 }
 0x13f   : > { %v769_v11 = vadd.f32 %v768_v10, %v13644_v39  ;;  %v886_v14 = vmax.f32 %v765_v7, 0.0 }
 0x140   : > { %v887_v13 = vmax.f32 %v767_v9, 0.0 }
 0x141   : > { %v888_v15 = vmax.f32 %v769_v11, 0.0 }
 0x142   : > { %v937_v16 = vpack.c.bf16 %v887_v13, %v885_v12 }
 0x143   : > { %v772_v17 = vpop.f32.mrb[28].mxu1  ;;  %v938_v18 = vpack.c.bf16 %v888_v15, %v886_v14 }
 0x144   : > { %v773_v19 = vadd.f32 %v772_v17, %v13641_v38  ;;  %v774_v20 = vpop.f32.mrb[29].mxu1 }
 0x145   : > { %v775_v21 = vadd.f32 %v774_v20, %v13644_v39  ;;  %v776_v22 = vpop.f32.mrb[30].mxu1  ;;  %1465 = vmatprep.subr.bf16.mxu1 %v938_v18 }
 0x146   : > { %v777_v23 = vadd.f32 %v776_v22, %v13641_v38  ;;  %v778_v24 = vpop.f32.mrb[31].mxu1  ;;  %1466 = vmatpush1.bf16.msra.mxu1 %v937_v16  ;;  %v889_v26 = vmax.f32 %v773_v19, 0.0 }
 0x147   : > { %v779_v25 = vadd.f32 %v778_v24, %v13644_v39  ;;  %v890_v28 = vmax.f32 %v775_v21, 0.0 }
 0x148   : > { %v891_v27 = vmax.f32 %v777_v23, 0.0 }
 0x149   : > { %v892_v29 = vmax.f32 %v779_v25, 0.0 }
 0x14a   : > { %v939_v30 = vpack.c.bf16 %v891_v27, %v889_v26 }
 0x14b   : > { %v782_v31 = vpop.f32.mrb[32].mxu1  ;;  %v940_v32 = vpack.c.bf16 %v892_v29, %v890_v28 }
 0x14c   : > { %v783_v33 = vadd.f32 %v782_v31, %v13641_v38  ;;  %v784_v35 = vpop.f32.mrb[33].mxu1 }
 0x14d   : > { %v785_v40 = vadd.f32 %v784_v35, %v13644_v39  ;;  %v786_v41 = vpop.f32.mrb[34].mxu1  ;;  %1467 = vmatprep.subr.bf16.mxu1 %v940_v32 }
 0x14e   : > { %v787_v42 = vadd.f32 %v786_v41, %v13641_v38  ;;  %v788_v43 = vpop.f32.mrb[35].mxu1  ;;  %1468 = vmatpush1.bf16.msra.mxu1 %v939_v30  ;;  %v893_v45 = vmax.f32 %v783_v33, 0.0 }
 0x14f   : > { %v789_v44 = vadd.f32 %v788_v43, %v13644_v39  ;;  %v894_v47 = vmax.f32 %v785_v40, 0.0 }
 0x150   : > { %v895_v46 = vmax.f32 %v787_v42, 0.0 }
 0x151   : > { %v896_v48 = vmax.f32 %v789_v44, 0.0 }
 0x152   : > { %v941_v49 = vpack.c.bf16 %v895_v46, %v893_v45 }
 0x153   : > { %v792_v50 = vpop.f32.mrb[36].mxu1  ;;  %v942_v51 = vpack.c.bf16 %v896_v48, %v894_v47 }
 0x154   : > { %v793_v52 = vadd.f32 %v792_v50, %v13641_v38  ;;  %v794_v53 = vpop.f32.mrb[37].mxu1 }
 0x155   : > { %v795_v54 = vadd.f32 %v794_v53, %v13644_v39  ;;  %v796_v55 = vpop.f32.mrb[38].mxu1  ;;  %1469 = vmatprep.subr.bf16.mxu1 %v942_v51 }
 0x156   : > { %v797_v56 = vadd.f32 %v796_v55, %v13641_v38  ;;  %v798_v57 = vpop.f32.mrb[39].mxu1  ;;  %1470 = vmatpush1.bf16.msra.mxu1 %v941_v49  ;;  %v897_v59 = vmax.f32 %v793_v52, 0.0 }
 0x157   : > { %v799_v58 = vadd.f32 %v798_v57, %v13644_v39  ;;  %v898_v61 = vmax.f32 %v795_v54, 0.0 }
 0x158   : > { %v899_v60 = vmax.f32 %v797_v56, 0.0 }
 0x159   : > { %v900_v62 = vmax.f32 %v799_v58, 0.0 }
 0x15a   : > { %v943_v63 = vpack.c.bf16 %v899_v60, %v897_v59 }
 0x15b   : > { %v802_v0 = vpop.f32.mrb[40].mxu1  ;;  %v944_v1 = vpack.c.bf16 %v900_v62, %v898_v61 }
 0x15c   : > { %v803_v3 = vadd.f32 %v802_v0, %v13641_v38  ;;  %v804_v4 = vpop.f32.mrb[41].mxu1 }
 0x15d   : > { %v805_v5 = vadd.f32 %v804_v4, %v13644_v39  ;;  %v806_v6 = vpop.f32.mrb[42].mxu1  ;;  %1471 = vmatprep.subr.bf16.mxu1 %v944_v1 }
 0x15e   : > { %v807_v7 = vadd.f32 %v806_v6, %v13641_v38  ;;  %v808_v8 = vpop.f32.mrb[43].mxu1  ;;  %1472 = vmatpush1.bf16.msra.mxu1 %v943_v63  ;;  %v901_v10 = vmax.f32 %v803_v3, 0.0 }
 0x15f   : > { %v809_v9 = vadd.f32 %v808_v8, %v13644_v39  ;;  %v902_v12 = vmax.f32 %v805_v5, 0.0 }
 0x160   : > { %v903_v11 = vmax.f32 %v807_v7, 0.0 }
 0x161   : > { %v904_v13 = vmax.f32 %v809_v9, 0.0 }
 0x162   : > { %v945_v14 = vpack.c.bf16 %v903_v11, %v901_v10 }
 0x163   : > { %v812_v15 = vpop.f32.mrb[44].mxu1  ;;  %v946_v16 = vpack.c.bf16 %v904_v13, %v902_v12 }
 0x164   : > { %v813_v17 = vadd.f32 %v812_v15, %v13641_v38  ;;  %v814_v18 = vpop.f32.mrb[45].mxu1 }
 0x165   : > { %v815_v19 = vadd.f32 %v814_v18, %v13644_v39  ;;  %v816_v20 = vpop.f32.mrb[46].mxu1  ;;  %1473 = vmatprep.subr.bf16.mxu1 %v946_v16 }
 0x166   : > { %v817_v21 = vadd.f32 %v816_v20, %v13641_v38  ;;  %v818_v22 = vpop.f32.mrb[47].mxu1  ;;  %1474 = vmatpush1.bf16.msra.mxu1 %v945_v14  ;;  %v905_v24 = vmax.f32 %v813_v17, 0.0 }
 0x167   : > { %v819_v23 = vadd.f32 %v818_v22, %v13644_v39  ;;  %v906_v26 = vmax.f32 %v815_v19, 0.0 }
 0x168   : > { %v907_v25 = vmax.f32 %v817_v21, 0.0 }
 0x169   : > { %v908_v27 = vmax.f32 %v819_v23, 0.0 }
 0x16a   : > { %v947_v28 = vpack.c.bf16 %v907_v25, %v905_v24 }
 0x16b   : > { %v822_v29 = vpop.f32.mrb[48].mxu1  ;;  %v948_v30 = vpack.c.bf16 %v908_v27, %v906_v26 }
 0x16c   : > { %v824_v31 = vpop.f32.mrb[49].mxu1  ;;  %v823_v32 = vadd.f32 %v822_v29, %v13641_v38  ;;  %v12137_v29 = vld [vmem:[%s16913_s3 + $0x24] ss:$8 sps:$4 sm:$0xff]  }
 0x16d   : > { %v826_v33 = vpop.f32.mrb[50].mxu1  ;;  %1475 = vmatprep.subr.bf16.mxu1 %v948_v30  ;;  %v825_v35 = vadd.f32 %v824_v31, %v13644_v39  ;;  %v12139_v30 = vld [vmem:[%s16913_s3 + $0x20] ss:$8 sps:$4 sm:$0xff]   ;;  %v12140_v31 = vld [vmem:[%s16913_s3 + $0x34] ss:$8 sps:$4 sm:$0xff]  }
 0x16e   : > { %v828_v40 = vpop.f32.mrb[51].mxu1  ;;  %1476 = vmatpush1.bf16.msra.mxu1 %v947_v28  ;;  %v827_v41 = vadd.f32 %v826_v33, %v13641_v38  ;;  %v909_v43 = vmax.f32 %v823_v32, 0.0  ;;  %v12131_v28 = vld [vmem:[%s16913_s3] ss:$8 sps:$4 sm:$0xff]   ;;  %v12142_v32 = vld [vmem:[%s16913_s3 + $0x30] ss:$8 sps:$4 sm:$0xff]  }
 0x16f   : > { %v829_v42 = vadd.f32 %v828_v40, %v13644_v39  ;;  %v910_v45 = vmax.f32 %v825_v35, 0.0  ;;  %v12143_v33 = vld [vmem:[%s16913_s3 + $0x44] ss:$8 sps:$4 sm:$0xff]   ;;  %v12145_v35 = vld [vmem:[%s16913_s3 + $0x40] ss:$8 sps:$4 sm:$0xff]  }
 0x170   : > { %v911_v44 = vmax.f32 %v827_v41, 0.0  ;;  %v12146_v40 = vld [vmem:[%s16913_s3 + $0x54] ss:$8 sps:$4 sm:$0xff]   ;;  %v12148_v41 = vld [vmem:[%s16913_s3 + $0x50] ss:$8 sps:$4 sm:$0xff]  }
 0x171   : > { %v912_v46 = vmax.f32 %v829_v42, 0.0  ;;  %v12149_v42 = vld [vmem:[%s16913_s3 + $0x64] ss:$8 sps:$4 sm:$0xff]  }
 0x172   : > { %v949_v47 = vpack.c.bf16 %v911_v44, %v909_v43  ;;  %v12151_v43 = vld [vmem:[%s16913_s3 + $0x60] ss:$8 sps:$4 sm:$0xff]   ;;  %v12152_v44 = vld [vmem:[%s16913_s3 + $0x74] ss:$8 sps:$4 sm:$0xff]  }
 0x173   : > { %v832_v48 = vpop.f32.mrb[52].mxu1  ;;  %v950_v49 = vpack.c.bf16 %v912_v46, %v910_v45  ;;  %v12154_v45 = vld [vmem:[%s16913_s3 + $0x70] ss:$8 sps:$4 sm:$0xff]   ;;  %v12155_v46 = vld [vmem:[%s16913_s3 + $0x84] ss:$8 sps:$4 sm:$0xff]  }
 0x174   : > { %v833_v50 = vadd.f32 %v832_v48, %v13641_v38  ;;  %v834_v51 = vpop.f32.mrb[53].mxu1  ;;  %v12205_v48 = vld [vmem:[%s16914_s4 + $0x208] ss:$16 sps:$4 sm:$0xff]  }
 0x175   : > { %v835_v52 = vadd.f32 %v834_v51, %v13644_v39  ;;  %v836_v53 = vpop.f32.mrb[54].mxu1  ;;  %1477 = vmatprep.subr.bf16.mxu1 %v950_v49  ;;  %v12206_v49 = vld [vmem:[%s16914_s4 + $0x22c] ss:$16 sps:$4 sm:$0xff]   ;;  %v12157_v51 = vld [vmem:[%s16913_s3 + $0x80] ss:$8 sps:$4 sm:$0xff]  }
 0x176   : > { %v837_v54 = vadd.f32 %v836_v53, %v13641_v38  ;;  %v838_v55 = vpop.f32.mrb[55].mxu1  ;;  %1478 = vmatpush1.bf16.msra.mxu1 %v949_v47  ;;  %v913_v57 = vmax.f32 %v833_v50, 0.0  ;;  %v12203_v47 = vld [vmem:[%s16914_s4 + $0x20c] ss:$16 sps:$4 sm:$0xff]   ;;  %v12208_v50 = vld [vmem:[%s16914_s4 + $0x228] ss:$16 sps:$4 sm:$0xff]  }
 0x177   : > { %v839_v56 = vadd.f32 %v838_v55, %v13644_v39  ;;  %v914_v59 = vmax.f32 %v835_v52, 0.0  ;;  %3188 = vmatprep.subr.bf16.mxu0 %v12203_v47  ;;  %v12158_v52 = vld [vmem:[%s16913_s3 + $0x94] ss:$8 sps:$4 sm:$0xff]  }
 0x178   : > { %v915_v58 = vmax.f32 %v837_v54, 0.0  ;;  %3189 = vmatpush1.bf16.msra.mxu0 %v12205_v48  ;;  %v12212_v53 = vld [vmem:[%s16914_s4 + $0x24c] ss:$16 sps:$4 sm:$0xff]   ;;  %v12214_v54 = vld [vmem:[%s16914_s4 + $0x248] ss:$16 sps:$4 sm:$0xff]  }
 0x179   : > { %v916_v60 = vmax.f32 %v839_v56, 0.0  ;;  %3190 = vmatprep.subr.bf16.mxu0 %v12206_v49  ;;  %v12215_v55 = vld [vmem:[%s16914_s4 + $0x26c] ss:$16 sps:$4 sm:$0xff]   ;;  %v12217_v56 = vld [vmem:[%s16914_s4 + $0x268] ss:$16 sps:$4 sm:$0xff]  }
 0x17a   : > { %v951_v61 = vpack.c.bf16 %v915_v58, %v913_v57  ;;  %v12160_v57 = vld [vmem:[%s16913_s3 + $0x90] ss:$8 sps:$4 sm:$0xff]   ;;  %v12161_v58 = vld [vmem:[%s16913_s3 + $0xa4] ss:$8 sps:$4 sm:$0xff]  }
 0x17b   : > { %v952_v62 = vpack.c.bf16 %v916_v60, %v914_v59  ;;  %v842_v63 = vpop.f32.mrb[56].mxu1  ;;  %v12221_v59 = vld [vmem:[%s16914_s4 + $0x28c] ss:$16 sps:$4 sm:$0xff]   ;;  %v12223_v60 = vld [vmem:[%s16914_s4 + $0x288] ss:$16 sps:$4 sm:$0xff]  }
 0x17c   : > { %v843_v0 = vadd.f32 %v842_v63, %v13641_v38  ;;  %v844_v1 = vpop.f32.mrb[57].mxu1  ;;  %3191 = vmatpush1.bf16.msra.mxu0 %v12208_v50  ;;  %v12163_v63 = vld [vmem:[%s16913_s3 + $0xa0] ss:$8 sps:$4 sm:$0xff]   ;;  %v12294_v47 = vld [vmem:[%s16914_s4 + $0xc4] ss:$16 sps:$4 sm:$0xff]  }
 0x17d   : > { %v845_v3 = vadd.f32 %v844_v1, %v13644_v39  ;;  %v846_v4 = vpop.f32.mrb[58].mxu1  ;;  %1479 = vmatprep.subr.bf16.mxu1 %v952_v62  ;;  %3192 = vmatprep.subr.bf16.mxu0 %v12212_v53  ;;  %v12226_v62 = vld [vmem:[%s16914_s4 + $0x2a8] ss:$16 sps:$4 sm:$0xff]   ;;  %v12230_v1 = vld [vmem:[%s16914_s4 + $0x2cc] ss:$16 sps:$4 sm:$0xff]  }
 0x17e   : > { %v847_v5 = vadd.f32 %v846_v4, %v13641_v38  ;;  %v848_v6 = vpop.f32.mrb[59].mxu1  ;;  %1480 = vmatpush1.bf16.msra.mxu1 %v951_v61  ;;  %v917_v8 = vmax.f32 %v843_v0, 0.0  ;;  %v12224_v61 = vld [vmem:[%s16914_s4 + $0x2ac] ss:$16 sps:$4 sm:$0xff]   ;;  %v12292_v48 = vld [vmem:[%s16914_s4 + $0xc0] ss:$16 sps:$4 sm:$0xff]  }
 0x17f   : > { %v849_v7 = vadd.f32 %v848_v6, %v13644_v39  ;;  %v918_v10 = vmax.f32 %v845_v3, 0.0  ;;  %v12164_v0 = vld [vmem:[%s16913_s3 + $0xb4] ss:$8 sps:$4 sm:$0xff]   ;;  %v12232_v3 = vld [vmem:[%s16914_s4 + $0x2c8] ss:$16 sps:$4 sm:$0xff]  }
 0x180   : > { %v919_v9 = vmax.f32 %v847_v5, 0.0  ;;  %3193 = vmatpush1.bf16.msra.mxu0 %v12214_v54  ;;  %v12233_v4 = vld [vmem:[%s16914_s4 + $0x2ec] ss:$16 sps:$4 sm:$0xff]   ;;  %v12166_v5 = vld [vmem:[%s16913_s3 + $0xb0] ss:$8 sps:$4 sm:$0xff]  }
 0x181   : > { %v920_v11 = vmax.f32 %v849_v7, 0.0  ;;  %3194 = vmatprep.subr.bf16.mxu0 %v12215_v55  ;;  %v12235_v6 = vld [vmem:[%s16914_s4 + $0x2e8] ss:$16 sps:$4 sm:$0xff]   ;;  %v12167_v7 = vld [vmem:[%s16913_s3 + $0xc4] ss:$8 sps:$4 sm:$0xff]  }
 0x182   : > { %v953_v12 = vpack.c.bf16 %v919_v9, %v917_v8  ;;  %v12239_v8 = vld [vmem:[%s16914_s4 + $0x30c] ss:$16 sps:$4 sm:$0xff]   ;;  %v12241_v9 = vld [vmem:[%s16914_s4 + $0x308] ss:$16 sps:$4 sm:$0xff]   ;;  %v12298_v49 = vld [vmem:[%s16914_s4 + $0x404] ss:$16 sps:$4 sm:$0xff]  }
 0x183   : > { %v954_v13 = vpack.c.bf16 %v920_v11, %v918_v10  ;;  %v852_v14 = vpop.f32.mrb[60].mxu1  ;;  %v12242_v10 = vld [vmem:[%s16914_s4 + $0x32c] ss:$16 sps:$4 sm:$0xff]   ;;  %v12169_v11 = vld [vmem:[%s16913_s3 + $0xc0] ss:$8 sps:$4 sm:$0xff]  }
 0x184   : > { %v853_v15 = vadd.f32 %v852_v14, %v13641_v38  ;;  %v854_v16 = vpop.f32.mrb[61].mxu1  ;;  %3195 = vmatpush1.bf16.msra.mxu0 %v12217_v56  ;;  %v12249_v14 = vld [vmem:[%s16914_s4 + $0x4] ss:$16 sps:$4 sm:$0xff]   ;;  %v12307_v55 = vld [vmem:[%s16914_s4 + $0x100] ss:$16 sps:$4 sm:$0xff]  }
 0x185   : > { %v855_v17 = vadd.f32 %v854_v16, %v13644_v39  ;;  %v856_v18 = vpop.f32.mrb[62].mxu1  ;;  %1481 = vmatprep.subr.bf16.mxu1 %v954_v13  ;;  %3196 = vmatprep.subr.bf16.mxu0 %v12221_v59  ;;  %v12170_v13 = vld [vmem:[%s16913_s3 + $0xd4] ss:$8 sps:$4 sm:$0xff]   ;;  %v12185_v59 = vld [vmem:[%s16913_s3 + $0x124] ss:$8 sps:$4 sm:$0xff]  }
 0x186   : > { %v857_v19 = vadd.f32 %v856_v18, %v13641_v38  ;;  %v858_v20 = vpop.f32.mrb[63].mxu1  ;;  %1482 = vmatpush1.bf16.msra.mxu1 %v953_v12  ;;  %v921_v22 = vmax.f32 %v853_v15, 0.0  ;;  %v12134_v38 = vld [vmem:[%s16913_s3 + $0x14] ss:$8 sps:$4 sm:$0xff]   ;;  %v12244_v12 = vld [vmem:[%s16914_s4 + $0x328] ss:$16 sps:$4 sm:$0xff]  }
 0x187   : > { %v859_v21 = vadd.f32 %v858_v20, %v13644_v39  ;;  %v922_v24 = vmax.f32 %v855_v17, 0.0  ;;  %v12136_v39 = vld [vmem:[%s16913_s3 + $0x10] ss:$8 sps:$4 sm:$0xff]   ;;  %v12251_v16 = vld [vmem:[%s16914_s4 + $0x34c] ss:$16 sps:$4 sm:$0xff]  }
 0x188   : > { %v923_v23 = vmax.f32 %v857_v19, 0.0  ;;  %3197 = vmatpush1.bf16.msra.mxu0 %v12223_v60  ;;  %v12247_v15 = vld [vmem:[%s16914_s4] ss:$16 sps:$4 sm:$0xff]   ;;  %v12253_v17 = vld [vmem:[%s16914_s4 + $0x348] ss:$16 sps:$4 sm:$0xff]  }
 0x189   : > { %v924_v25 = vmax.f32 %v859_v21, 0.0  ;;  %3198 = vmatprep.subr.bf16.mxu0 %v12224_v61  ;;  %v12256_v18 = vld [vmem:[%s16914_s4 + $0x24] ss:$16 sps:$4 sm:$0xff]   ;;  %v12254_v19 = vld [vmem:[%s16914_s4 + $0x20] ss:$16 sps:$4 sm:$0xff]  }
 0x18a   : > { %v955_v26 = vpack.c.bf16 %v923_v23, %v921_v22  ;;  %v12257_v20 = vld [vmem:[%s16914_s4 + $0x36c] ss:$16 sps:$4 sm:$0xff]   ;;  %v12172_v21 = vld [vmem:[%s16913_s3 + $0xd0] ss:$8 sps:$4 sm:$0xff]   ;;  %v12301_v50 = vld [vmem:[%s16914_s4 + $0xe4] ss:$16 sps:$4 sm:$0xff]  }
 0x18b   : > { %v956_v27 = vpack.c.bf16 %v924_v25, %v922_v24  ;;  %v12259_v22 = vld [vmem:[%s16914_s4 + $0x368] ss:$16 sps:$4 sm:$0xff]   ;;  %v12173_v23 = vld [vmem:[%s16913_s3 + $0xe4] ss:$8 sps:$4 sm:$0xff]   ;;  %v12262_v25 = vld [vmem:[%s16914_s4 + $0x40] ss:$16 sps:$4 sm:$0xff]  }
 0x18c   : > { %3199 = vmatpush1.bf16.msra.mxu0 %v12226_v62  ;;  %v12264_v24 = vld [vmem:[%s16914_s4 + $0x44] ss:$16 sps:$4 sm:$0xff]   ;;  %v12322_v61 = vld [vmem:[%s16914_s4 + $0x140] ss:$16 sps:$4 sm:$0xff]  }
 0x18d   : > { %1483 = vmatprep.subr.bf16.mxu1 %v956_v27  ;;  %3200 = vmatprep.subr.bf16.mxu0 %v12230_v1  ;;  %v12268_v27 = vld [vmem:[%s16914_s4 + $0x388] ss:$16 sps:$4 sm:$0xff]   ;;  %v12182_v53 = vld [vmem:[%s16913_s3 + $0x114] ss:$8 sps:$4 sm:$0xff]  }
 0x18e   : > { %1484 = vmatpush1.bf16.msra.mxu1 %v955_v26  ;;  %v12266_v26 = vld [vmem:[%s16914_s4 + $0x38c] ss:$16 sps:$4 sm:$0xff]   ;;  %v12309_v54 = vld [vmem:[%s16914_s4 + $0x104] ss:$16 sps:$4 sm:$0xff]  }
 0x18f   : > { %2480 = vmatprep.subr.bf16.mxu1 %v12249_v14  ;;  %v12316_v56 = vld [vmem:[%s16914_s4 + $0x124] ss:$16 sps:$4 sm:$0xff]  }
 0x190   : > { %3201 = vmatpush1.bf16.msra.mxu0 %v12232_v3  ;;  %v12324_v60 = vld [vmem:[%s16914_s4 + $0x144] ss:$16 sps:$4 sm:$0xff]  }
 0x191   : > { %1486 = vmatmul.mubr.bf16.vlgmr.msra.gmra.mrb[64].mxu1 %v12131_v28  ;;  %3202 = vmatprep.subr.bf16.mxu0 %v12233_v4  ;;  %v12271_v28 = vld [vmem:[%s16914_s4 + $0x64] ss:$16 sps:$4 sm:$0xff]   ;;  %v12337_v4 = vld [vmem:[%s16914_s4 + $0x180] ss:$16 sps:$4 sm:$0xff]  }
 0x192   : > { %1495 = vmatprep.mubr.bf16.mxu1 %v12134_v38  ;;  %2481 = vmatpush1.bf16.msra.mxu1 %v12247_v15  ;;  %v12269_v38 = vld [vmem:[%s16914_s4 + $0x60] ss:$16 sps:$4 sm:$0xff]   ;;  %v12331_v62 = vld [vmem:[%s16914_s4 + $0x164] ss:$16 sps:$4 sm:$0xff]   ;;  %v12367_v15 = vld [vmem:[%s16914_s4 + $0xc] ss:$16 sps:$4 sm:$0xff]  }
 0x193   : > { %2482 = vmatprep.subr.bf16.mxu1 %v12256_v18  ;;  %v12188_v1 = vld [vmem:[%s16913_s3 + $0x134] ss:$8 sps:$4 sm:$0xff]   ;;  %v12199_v18 = vld [vmem:[%s16913_s3 + $0x160] ss:$8 sps:$4 sm:$0xff]  }
 0x194   : > { %3203 = vmatpush1.bf16.msra.mxu0 %v12235_v6  ;;  %v12339_v3 = vld [vmem:[%s16914_s4 + $0x184] ss:$16 sps:$4 sm:$0xff]   ;;  %v12344_v6 = vld [vmem:[%s16914_s4 + $0x1a0] ss:$16 sps:$4 sm:$0xff]  }
 0x195   : > { %3204 = vmatprep.subr.bf16.mxu0 %v12239_v8  ;;  %v12191_v8 = vld [vmem:[%s16913_s3 + $0x144] ss:$8 sps:$4 sm:$0xff]   ;;  %v12194_v14 = vld [vmem:[%s16913_s3 + $0x154] ss:$8 sps:$4 sm:$0xff]  }
 0x196   : > { %2483 = vmatpush1.bf16.msra.mxu1 %v12254_v19  ;;  %v12200_v19 = vld [vmem:[%s16913_s3 + $0x174] ss:$8 sps:$4 sm:$0xff]  }
 0x197   : > { %2484 = vmatprep.subr.bf16.mxu1 %v12264_v24  ;;  %v12220_v24 = vld [vmem:[%s16913_s3 + $0x190] ss:$8 sps:$4 sm:$0xff]  }
 0x198   : > { %3205 = vmatpush1.bf16.msra.mxu0 %v12241_v9  ;;  %v12354_v9 = vld [vmem:[%s16914_s4 + $0x1c4] ss:$16 sps:$4 sm:$0xff]  }
 0x199   : > { %1496 = vmatmul.mubr.bf16.gmra.mrb[68].mxu1 %v12136_v39  ;;  %3206 = vmatprep.subr.bf16.mxu0 %v12242_v10  ;;  %v12272_v39 = vld [vmem:[%s16914_s4 + $0x3ac] ss:$16 sps:$4 sm:$0xff]   ;;  %v12352_v10 = vld [vmem:[%s16914_s4 + $0x1c0] ss:$16 sps:$4 sm:$0xff]  }
 0x19a   : > { %1505 = vmatprep.mubr.bf16.mxu1 %v12137_v29  ;;  %2485 = vmatpush1.bf16.msra.mxu1 %v12262_v25  ;;  %v12175_v29 = vld [vmem:[%s16913_s3 + $0xe0] ss:$8 sps:$4 sm:$0xff]   ;;  %v12227_v25 = vld [vmem:[%s16913_s3 + $0x1a4] ss:$8 sps:$4 sm:$0xff]  }
 0x19b   : > { %2486 = vmatprep.subr.bf16.mxu1 %v12271_v28 }
 0x19c   : > { %3207 = vmatpush1.bf16.msra.mxu0 %v12244_v12  ;;  %v12359_v12 = vld [vmem:[%s16914_s4 + $0x1e0] ss:$16 sps:$4 sm:$0xff]  }
 0x19d   : > { %3208 = vmatprep.subr.bf16.mxu0 %v12251_v16  ;;  %v12196_v16 = vld [vmem:[%s16913_s3 + $0x150] ss:$8 sps:$4 sm:$0xff]  }
 0x19e   : > { %2487 = vmatpush1.bf16.msra.mxu1 %v12269_v38 }
 0x1a0   : > { %3209 = vmatpush1.bf16.msra.mxu0 %v12253_v17  ;;  %v12197_v17 = vld [vmem:[%s16913_s3 + $0x164] ss:$8 sps:$4 sm:$0xff]  }
 0x1a1   : > { %1506 = vmatmul.mubr.bf16.gmra.mrb[72].mxu1 %v12139_v30  ;;  %3210 = vmatprep.subr.bf16.mxu0 %v12257_v20  ;;  %v12274_v30 = vld [vmem:[%s16914_s4 + $0x3a8] ss:$16 sps:$4 sm:$0xff]  }
 0x1a2   : > { %1515 = vmatprep.mubr.bf16.mxu1 %v12140_v31  ;;  %v12176_v31 = vld [vmem:[%s16913_s3 + $0xf4] ss:$8 sps:$4 sm:$0xff]   ;;  %v12202_v20 = vld [vmem:[%s16913_s3 + $0x170] ss:$8 sps:$4 sm:$0xff]  }
 0x1a4   : > { %3211 = vmatpush1.bf16.msra.mxu0 %v12259_v22  ;;  %v12211_v22 = vld [vmem:[%s16913_s3 + $0x180] ss:$8 sps:$4 sm:$0xff]  }
 0x1a5   : > { %3212 = vmatprep.subr.bf16.mxu0 %v12266_v26  ;;  %v12229_v26 = vld [vmem:[%s16913_s3 + $0x1a0] ss:$8 sps:$4 sm:$0xff]  }
 0x1a8   : > { %3213 = vmatpush1.bf16.msra.mxu0 %v12268_v27  ;;  %v12236_v27 = vld [vmem:[%s16913_s3 + $0x1b4] ss:$8 sps:$4 sm:$0xff]  }
 0x1a9   : > { %1516 = vmatmul.mubr.bf16.gmra.mrb[76].mxu1 %v12142_v32  ;;  %3214 = vmatprep.subr.bf16.mxu0 %v12272_v39  ;;  %v12279_v32 = vld [vmem:[%s16914_s4 + $0x84] ss:$16 sps:$4 sm:$0xff]   ;;  %v12238_v39 = vld [vmem:[%s16913_s3 + $0x1b0] ss:$8 sps:$4 sm:$0xff]  }
 0x1aa   : > { %1525 = vmatprep.mubr.bf16.mxu1 %v12143_v33  ;;  %v12277_v33 = vld [vmem:[%s16914_s4 + $0x80] ss:$16 sps:$4 sm:$0xff]   ;;  %2488 = vmatprep.subr.bf16.mxu1 %v12279_v32 }
 0x1ab   : > { %2489 = vmatpush1.bf16.msra.mxu1 %v12277_v33 }
 0x1ac   : > { %3215 = vmatpush1.bf16.msra.mxu0 %v12274_v30  ;;  %v12245_v30 = vld [vmem:[%s16913_s3 + $0x1c4] ss:$8 sps:$4 sm:$0xff]  }
 0x1b1   : > { %1526 = vmatmul.mubr.bf16.gmra.mrb[80].mxu1 %v12145_v35  ;;  %v12281_v35 = vld [vmem:[%s16914_s4 + $0x3cc] ss:$16 sps:$4 sm:$0xff]  }
 0x1b2   : > { %1535 = vmatprep.mubr.bf16.mxu1 %v12146_v40  ;;  %v12283_v40 = vld [vmem:[%s16914_s4 + $0x3c8] ss:$16 sps:$4 sm:$0xff]   ;;  %3216 = vmatprep.subr.bf16.mxu0 %v12281_v35 }
 0x1b3   : > { %3217 = vmatpush1.bf16.msra.mxu0 %v12283_v40 }
 0x1b9   : > { %1536 = vmatmul.mubr.bf16.gmra.mrb[84].mxu1 %v12148_v41  ;;  %v12286_v41 = vld [vmem:[%s16914_s4 + $0xa4] ss:$16 sps:$4 sm:$0xff]  }
 0x1ba   : > { %1545 = vmatprep.mubr.bf16.mxu1 %v12149_v42  ;;  %v12284_v42 = vld [vmem:[%s16914_s4 + $0xa0] ss:$16 sps:$4 sm:$0xff]   ;;  %2490 = vmatprep.subr.bf16.mxu1 %v12286_v41 }
 0x1bb   : > { %2491 = vmatpush1.bf16.msra.mxu1 %v12284_v42  ;;  %v12250_v41 = vld [vmem:[%s16913_s3 + $0x1c0] ss:$8 sps:$4 sm:$0xff]  }
 0x1bc   : > { %2492 = vmatprep.subr.bf16.mxu1 %v12294_v47 }
 0x1bf   : > { %2493 = vmatpush1.bf16.msra.mxu1 %v12292_v48 }
 0x1c0   : > { %2494 = vmatprep.subr.bf16.mxu1 %v12301_v50 }
 0x1c1   : > { %1546 = vmatmul.mubr.bf16.gmra.mrb[88].mxu1 %v12151_v43  ;;  %v12287_v43 = vld [vmem:[%s16914_s4 + $0x3ec] ss:$16 sps:$4 sm:$0xff]  }
 0x1c2   : > { %1555 = vmatprep.mubr.bf16.mxu1 %v12152_v44  ;;  %v12178_v44 = vld [vmem:[%s16913_s3 + $0xf0] ss:$8 sps:$4 sm:$0xff]   ;;  %3218 = vmatprep.subr.bf16.mxu0 %v12287_v43  ;;  %v12260_v43 = vld [vmem:[%s16913_s3 + $0x1d4] ss:$8 sps:$4 sm:$0xff]  }
 0x1c9   : > { %1556 = vmatmul.mubr.bf16.gmra.mrb[92].mxu1 %v12154_v45  ;;  %v12289_v45 = vld [vmem:[%s16914_s4 + $0x3e8] ss:$16 sps:$4 sm:$0xff]  }
 0x1ca   : > { %1565 = vmatprep.mubr.bf16.mxu1 %v12155_v46  ;;  %v12179_v46 = vld [vmem:[%s16913_s3 + $0x104] ss:$8 sps:$4 sm:$0xff]   ;;  %3219 = vmatpush1.bf16.msra.mxu0 %v12289_v45 }
 0x1cb   : > { %3750 = vmatprep.subr.bf16.mxu0 %v12298_v49  ;;  %v12265_v49 = vld [vmem:[%s16913_s3 + $0x1d0] ss:$8 sps:$4 sm:$0xff]  }
 0x1d1   : > { %1566 = vmatmul.mubr.bf16.gmra.mrb[96].mxu1 %v12157_v51  ;;  %v12299_v51 = vld [vmem:[%s16914_s4 + $0xe0] ss:$16 sps:$4 sm:$0xff]  }
 0x1d2   : > { %1575 = vmatprep.mubr.bf16.mxu1 %v12158_v52  ;;  %v12181_v52 = vld [vmem:[%s16913_s3 + $0x100] ss:$8 sps:$4 sm:$0xff]   ;;  %2495 = vmatpush1.bf16.msra.mxu1 %v12299_v51  ;;  %v12275_v51 = vld [vmem:[%s16913_s3 + $0x1e4] ss:$8 sps:$4 sm:$0xff]  }
 0x1d3   : > { %2496 = vmatprep.subr.bf16.mxu1 %v12309_v54 }
 0x1d6   : > { %2497 = vmatpush1.bf16.msra.mxu1 %v12307_v55 }
 0x1d7   : > { %2498 = vmatprep.subr.bf16.mxu1 %v12316_v56 }
 0x1d9   : > { %1576 = vmatmul.mubr.bf16.gmra.mrb[100].mxu1 %v12160_v57  ;;  %v12314_v57 = vld [vmem:[%s16914_s4 + $0x120] ss:$16 sps:$4 sm:$0xff]  }
 0x1da   : > { %1585 = vmatprep.mubr.bf16.mxu1 %v12161_v58  ;;  %v12184_v58 = vld [vmem:[%s16913_s3 + $0x110] ss:$8 sps:$4 sm:$0xff]   ;;  %2499 = vmatpush1.bf16.msra.mxu1 %v12314_v57  ;;  %v12280_v57 = vld [vmem:[%s16913_s3 + $0x1e0] ss:$8 sps:$4 sm:$0xff]  }
 0x1db   : > { %2500 = vmatprep.subr.bf16.mxu1 %v12324_v60 }
 0x1de   : > { %2501 = vmatpush1.bf16.msra.mxu1 %v12322_v61 }
 0x1df   : > { %2502 = vmatprep.subr.bf16.mxu1 %v12331_v62 }
 0x1e1   : > { %1586 = vmatmul.mubr.bf16.gmra.mrb[104].mxu1 %v12163_v63  ;;  %v12329_v63 = vld [vmem:[%s16914_s4 + $0x160] ss:$16 sps:$4 sm:$0xff]  }
 0x1e2   : > { %1595 = vmatprep.mubr.bf16.mxu1 %v12164_v0  ;;  %v12187_v0 = vld [vmem:[%s16913_s3 + $0x120] ss:$8 sps:$4 sm:$0xff]   ;;  %2503 = vmatpush1.bf16.msra.mxu1 %v12329_v63 }
 0x1e3   : > { %2504 = vmatprep.subr.bf16.mxu1 %v12339_v3 }
 0x1e6   : > { %2505 = vmatpush1.bf16.msra.mxu1 %v12337_v4  ;;  %v12305_v4 = vld [vmem:[%s16913_s3 + $0x204] ss:$8 sps:$4 sm:$0xff]  }
 0x1e9   : > { %1596 = vmatmul.mubr.bf16.gmra.mrb[108].mxu1 %v12166_v5  ;;  %v12346_v5 = vld [vmem:[%s16914_s4 + $0x1a4] ss:$16 sps:$4 sm:$0xff]  }
 0x1ea   : > { %1605 = vmatprep.mubr.bf16.mxu1 %v12167_v7  ;;  %v12190_v7 = vld [vmem:[%s16913_s3 + $0x130] ss:$8 sps:$4 sm:$0xff]   ;;  %2506 = vmatprep.subr.bf16.mxu1 %v12346_v5 }
 0x1eb   : > { %2507 = vmatpush1.bf16.msra.mxu1 %v12344_v6 }
 0x1ec   : > { %2508 = vmatprep.subr.bf16.mxu1 %v12354_v9  ;;  %v12304_v9 = vld [vmem:[%s16914_s4 + $0x424] ss:$16 sps:$4 sm:$0xff]  }
 0x1ef   : > { %2509 = vmatpush1.bf16.msra.mxu1 %v12352_v10  ;;  %v12302_v10 = vld [vmem:[%s16914_s4 + $0x420] ss:$16 sps:$4 sm:$0xff]  }
 0x1f1   : > { %1606 = vmatmul.mubr.bf16.gmra.mrb[112].mxu1 %v12169_v11  ;;  %v12361_v11 = vld [vmem:[%s16914_s4 + $0x1e4] ss:$16 sps:$4 sm:$0xff]  }
 0x1f2   : > { %1615 = vmatprep.mubr.bf16.mxu1 %v12170_v13  ;;  %v12193_v13 = vld [vmem:[%s16913_s3 + $0x140] ss:$8 sps:$4 sm:$0xff]   ;;  %2510 = vmatprep.subr.bf16.mxu1 %v12361_v11 }
 0x1f3   : > { %2511 = vmatpush1.bf16.msra.mxu1 %v12359_v12  ;;  %v12310_v12 = vld [vmem:[%s16913_s3 + $0x200] ss:$8 sps:$4 sm:$0xff]  }
 0x1f4   : > { %2553 = vmatprep.subr.bf16.mxu1 %v12367_v15  ;;  %v12320_v15 = vld [vmem:[%s16913_s3 + $0x214] ss:$8 sps:$4 sm:$0xff]  }
 0x1f9   : > { %1616 = vmatmul.mubr.bf16.gmra.mrb[116].mxu1 %v12172_v21  ;;  %v12209_v21 = vld [vmem:[%s16913_s3 + $0x184] ss:$8 sps:$4 sm:$0xff]  }
 0x1fa   : > { %1625 = vmatprep.mubr.bf16.mxu1 %v12173_v23  ;;  %v12218_v23 = vld [vmem:[%s16913_s3 + $0x194] ss:$8 sps:$4 sm:$0xff]  }
 0x201   : > { %1626 = vmatmul.mubr.bf16.gmra.mrb[120].mxu1 %v12175_v29 }
 0x202   : > { %1635 = vmatprep.mubr.bf16.mxu1 %v12176_v31 }
 0x209   : > { %1636 = vmatmul.mubr.bf16.gmra.mrb[124].mxu1 %v12178_v44 }
 0x20a   : > { %1645 = vmatprep.mubr.bf16.mxu1 %v12179_v46 }
 0x211   : > { %1646 = vmatmul.mubr.bf16.gmra.mrb[128].mxu1 %v12181_v52 }
 0x212   : > { %1655 = vmatprep.mubr.bf16.mxu1 %v12182_v53 }
 0x219   : > { %1656 = vmatmul.mubr.bf16.gmra.mrb[132].mxu1 %v12184_v58 }
 0x21a   : > { %1665 = vmatprep.mubr.bf16.mxu1 %v12185_v59  ;;  %v12290_v59 = vld [vmem:[%s16913_s3 + $0x1f4] ss:$8 sps:$4 sm:$0xff]  }
 0x221   : > { %1666 = vmatmul.mubr.bf16.gmra.mrb[136].mxu1 %v12187_v0 }
 0x222   : > { %1675 = vmatprep.mubr.bf16.mxu1 %v12188_v1  ;;  %v12295_v1 = vld [vmem:[%s16913_s3 + $0x1f0] ss:$8 sps:$4 sm:$0xff]  }
 0x229   : > { %1676 = vmatmul.mubr.bf16.gmra.mrb[140].mxu1 %v12190_v7 }
 0x22a   : > { %1685 = vmatprep.mubr.bf16.mxu1 %v12191_v8  ;;  %v12296_v8 = vld [vmem:[%s16914_s4 + $0x400] ss:$16 sps:$4 sm:$0xff]  }
 0x231   : > { %1686 = vmatmul.mubr.bf16.gmra.mrb[144].mxu1 %v12193_v13  ;;  %v12313_v13 = vld [vmem:[%s16914_s4 + $0x444] ss:$16 sps:$4 sm:$0xff]  }
 0x232   : > { %1695 = vmatprep.mubr.bf16.mxu1 %v12194_v14 }
 0x239   : > { %1696 = vmatmul.mubr.bf16.gmra.mrb[148].mxu1 %v12196_v16 }
 0x23a   : > { %1705 = vmatprep.mubr.bf16.mxu1 %v12197_v17 }
 0x241   : > { %1706 = vmatmul.mubr.bf16.gmra.mrb[152].mxu1 %v12199_v18 }
 0x242   : > { %1715 = vmatprep.mubr.bf16.mxu1 %v12200_v19  ;;  %v12311_v19 = vld [vmem:[%s16914_s4 + $0x440] ss:$16 sps:$4 sm:$0xff]  }
 0x249   : > { %1716 = vmatmul.mubr.bf16.gmra.mrb[156].mxu1 %v12202_v20 }
 0x24a   : > { %1725 = vmatprep.mubr.bf16.mxu1 %v12209_v21  ;;  %v12319_v21 = vld [vmem:[%s16914_s4 + $0x464] ss:$16 sps:$4 sm:$0xff]  }
 0x251   : > { %1726 = vmatmul.mubr.bf16.gmra.mrb[160].mxu1 %v12211_v22  ;;  %v12317_v22 = vld [vmem:[%s16914_s4 + $0x460] ss:$16 sps:$4 sm:$0xff]  }
 0x252   : > { %1735 = vmatprep.mubr.bf16.mxu1 %v12218_v23 }
 0x259   : > { %1736 = vmatmul.mubr.bf16.gmra.mrb[164].mxu1 %v12220_v24  ;;  %v12325_v24 = vld [vmem:[%s16913_s3 + $0x210] ss:$8 sps:$4 sm:$0xff]  }
 0x25a   : > { %1745 = vmatprep.mubr.bf16.mxu1 %v12227_v25  ;;  %v12328_v25 = vld [vmem:[%s16914_s4 + $0x484] ss:$16 sps:$4 sm:$0xff]  }
 0x261   : > { %1746 = vmatmul.mubr.bf16.gmra.mrb[168].mxu1 %v12229_v26 }
 0x262   : > { %1755 = vmatprep.mubr.bf16.mxu1 %v12236_v27  ;;  %v12335_v27 = vld [vmem:[%s16913_s3 + $0x224] ss:$8 sps:$4 sm:$0xff]  }
 0x264   : > { %v1487_v28 = vpop.f32.mrb[64].mxu1 }
 0x265   : > { %v1489_v38 = vpop.f32.mrb[65].mxu1 }
 0x266   : > { %v1491_v29 = vpop.f32.mrb[66].mxu1 }
 0x267   : > { %v14079_v31 = vpack.c.bf16 %v1491_v29, %v1487_v28  ;;  %v1493_v32 = vpop.f32.mrb[67].mxu1  ;;  %v12326_v29 = vld [vmem:[%s16914_s4 + $0x480] ss:$16 sps:$4 sm:$0xff]  }
 0x268   : > { %v14081_v33 = vpack.c.bf16 %v1493_v32, %v1489_v38  ;;  %v12334_v32 = vld [vmem:[%s16914_s4 + $0x4a4] ss:$16 sps:$4 sm:$0xff]  }
 0x269   : > { %1756 = vmatmul.mubr.bf16.gmra.mrb[172].mxu1 %v12238_v39 }
 0x26a   : > { %1765 = vmatprep.mubr.bf16.mxu1 %v12245_v30 }
 0x26c   : > { %v1497_v35 = vpop.f32.mrb[68].mxu1 }
 0x26d   : > { %v1499_v40 = vpop.f32.mrb[69].mxu1 }
 0x26e   : > { %v1501_v42 = vpop.f32.mrb[70].mxu1 }
 0x26f   : > { %v14089_v44 = vpack.c.bf16 %v1501_v42, %v1497_v35  ;;  %v1503_v45 = vpop.f32.mrb[71].mxu1  ;;  %v12332_v35 = vld [vmem:[%s16914_s4 + $0x4a0] ss:$16 sps:$4 sm:$0xff]   ;;  %v12343_v42 = vld [vmem:[%s16914_s4 + $0x4c4] ss:$16 sps:$4 sm:$0xff]  }
 0x270   : > { %v14091_v46 = vpack.c.bf16 %v1503_v45, %v1499_v40  ;;  %v12350_v45 = vld [vmem:[%s16913_s3 + $0x234] ss:$8 sps:$4 sm:$0xff]  }
 0x271   : > { %1766 = vmatmul.mubr.bf16.gmra.mrb[176].mxu1 %v12250_v41  ;;  %v12340_v41 = vld [vmem:[%s16913_s3 + $0x220] ss:$8 sps:$4 sm:$0xff]  }
 0x272   : > { %1775 = vmatprep.mubr.bf16.mxu1 %v12260_v43 }
 0x274   : > { %v1507_v47 = vpop.f32.mrb[72].mxu1 }
 0x275   : > { %v1509_v48 = vpop.f32.mrb[73].mxu1 }
 0x276   : > { %v1511_v50 = vpop.f32.mrb[74].mxu1 }
 0x277   : > { %v14099_v52 = vpack.c.bf16 %v1511_v50, %v1507_v47  ;;  %v1513_v53 = vpop.f32.mrb[75].mxu1  ;;  %v12341_v50 = vld [vmem:[%s16914_s4 + $0x4c0] ss:$16 sps:$4 sm:$0xff]  }
 0x278   : > { %v14101_v54 = vpack.c.bf16 %v1513_v53, %v1509_v48  ;;  %v12349_v53 = vld [vmem:[%s16914_s4 + $0x4e4] ss:$16 sps:$4 sm:$0xff]  }
 0x279   : > { %1776 = vmatmul.mubr.bf16.gmra.mrb[180].mxu1 %v12265_v49 }
 0x27a   : > { %1785 = vmatprep.mubr.bf16.mxu1 %v12275_v51 }
 0x27c   : > { %v1517_v55 = vpop.f32.mrb[76].mxu1 }
 0x27d   : > { %v1519_v56 = vpop.f32.mrb[77].mxu1 }
 0x27e   : > { %v1521_v58 = vpop.f32.mrb[78].mxu1 }
 0x27f   : > { %v14109_v60 = vpack.c.bf16 %v1521_v58, %v1517_v55  ;;  %v1523_v61 = vpop.f32.mrb[79].mxu1  ;;  %v12347_v55 = vld [vmem:[%s16914_s4 + $0x4e0] ss:$16 sps:$4 sm:$0xff]   ;;  %v12358_v58 = vld [vmem:[%s16914_s4 + $0x504] ss:$16 sps:$4 sm:$0xff]  }
 0x280   : > { %v14111_v62 = vpack.c.bf16 %v1523_v61, %v1519_v56 }
 0x281   : > { %1786 = vmatmul.mubr.bf16.gmra.mrb[184].mxu1 %v12280_v57  ;;  %v12355_v57 = vld [vmem:[%s16913_s3 + $0x230] ss:$8 sps:$4 sm:$0xff]  }
 0x282   : > { %1795 = vmatprep.mubr.bf16.mxu1 %v12290_v59 }
 0x284   : > { %v1527_v63 = vpop.f32.mrb[80].mxu1 }
 0x285   : > { %v1529_v0 = vpop.f32.mrb[81].mxu1 }
 0x286   : > { %v1531_v3 = vpop.f32.mrb[82].mxu1 }
 0x287   : > { %v14119_v5 = vpack.c.bf16 %v1531_v3, %v1527_v63  ;;  %v1533_v6 = vpop.f32.mrb[83].mxu1 }
 0x288   : > { %v14121_v7 = vpack.c.bf16 %v1533_v6, %v1529_v0  ;;  %v12362_v6 = vld [vmem:[%s16914_s4 + $0x520] ss:$16 sps:$4 sm:$0xff]  }
 0x289   : > { %1796 = vmatmul.mubr.bf16.gmra.mrb[188].mxu1 %v12295_v1  ;;  %v12356_v1 = vld [vmem:[%s16914_s4 + $0x500] ss:$16 sps:$4 sm:$0xff]  }
 0x28a   : > { %3220 = vmatprep.mubr.bf16.mxu0 %v14121_v7  ;;  %1805 = vmatprep.mubr.bf16.mxu1 %v12305_v4  ;;  %v12364_v4 = vld [vmem:[%s16914_s4 + $0x524] ss:$16 sps:$4 sm:$0xff]  }
 0x28b   : > { %3221 = vmatmul.mubr.bf16.vlgmr.msra.gmra.mrb[0].mxu0 %v14119_v5 }
 0x28c   : > { %3751 = vmatpush1.bf16.msra.mxu0 %v12296_v8  ;;  %v1537_v11 = vpop.f32.mrb[84].mxu1 }
 0x28d   : > { %3752 = vmatprep.subr.bf16.mxu0 %v12304_v9  ;;  %v1539_v14 = vpop.f32.mrb[85].mxu1  ;;  %v12370_v9 = vld [vmem:[%s16914_s4 + $0x544] ss:$16 sps:$4 sm:$0xff]  }
 0x28e   : > { %v1541_v16 = vpop.f32.mrb[86].mxu1 }
 0x28f   : > { %v14143_v17 = vpack.c.bf16 %v1541_v16, %v1537_v11  ;;  %v1543_v18 = vpop.f32.mrb[87].mxu1  ;;  %v12365_v11 = vld [vmem:[%s16914_s4 + $0x8] ss:$16 sps:$4 sm:$0xff]   ;;  %v12368_v16 = vld [vmem:[%s16914_s4 + $0x540] ss:$16 sps:$4 sm:$0xff]  }
 0x290   : > { %3753 = vmatpush1.bf16.msra.mxu0 %v12302_v10  ;;  %v14148_v20 = vpack.c.bf16 %v1543_v18, %v1539_v14 }
 0x291   : > { %1806 = vmatmul.mubr.bf16.gmra.mrb[192].mxu1 %v12310_v12  ;;  %3754 = vmatprep.subr.bf16.mxu0 %v12313_v13  ;;  %v12373_v13 = vld [vmem:[%s16914_s4 + $0x2c] ss:$16 sps:$4 sm:$0xff]  }
 0x292   : > { %1815 = vmatprep.mubr.bf16.mxu1 %v12320_v15  ;;  %3230 = vmatprep.mubr.bf16.mxu0 %v14148_v20 }
 0x293   : > { %3231 = vmatmul.mubr.bf16.gmra.mrb[4].mxu0 %v14143_v17 }
 0x294   : > { %3755 = vmatpush1.bf16.msra.mxu0 %v12311_v19  ;;  %v1547_v23 = vpop.f32.mrb[88].mxu1  ;;  %v12376_v19 = vld [vmem:[%s16914_s4 + $0x564] ss:$16 sps:$4 sm:$0xff]  }
 0x295   : > { %3756 = vmatprep.subr.bf16.mxu0 %v12319_v21  ;;  %v1549_v26 = vpop.f32.mrb[89].mxu1  ;;  %v12371_v21 = vld [vmem:[%s16914_s4 + $0x28] ss:$16 sps:$4 sm:$0xff]  }
 0x296   : > { %v1551_v28 = vpop.f32.mrb[90].mxu1 }
 0x297   : > { %v14167_v38 = vpack.c.bf16 %v1551_v28, %v1547_v23  ;;  %v1553_v39 = vpop.f32.mrb[91].mxu1  ;;  %v12374_v23 = vld [vmem:[%s16914_s4 + $0x560] ss:$16 sps:$4 sm:$0xff]  }
 0x298   : > { %3757 = vmatpush1.bf16.msra.mxu0 %v12317_v22  ;;  %v14172_v30 = vpack.c.bf16 %v1553_v39, %v1549_v26  ;;  %v12379_v22 = vld [vmem:[%s16914_s4 + $0x4c] ss:$16 sps:$4 sm:$0xff]  }
 0x299   : > { %1816 = vmatmul.mubr.bf16.gmra.mrb[196].mxu1 %v12325_v24  ;;  %3758 = vmatprep.subr.bf16.mxu0 %v12328_v25  ;;  %v12382_v25 = vld [vmem:[%s16914_s4 + $0x584] ss:$16 sps:$4 sm:$0xff]   ;;  %v12385_v39 = vld [vmem:[%s16914_s4 + $0x6c] ss:$16 sps:$4 sm:$0xff]  }
 0x29a   : > { %1825 = vmatprep.mubr.bf16.mxu1 %v12335_v27  ;;  %3240 = vmatprep.mubr.bf16.mxu0 %v14172_v30  ;;  %v12377_v27 = vld [vmem:[%s16914_s4 + $0x48] ss:$16 sps:$4 sm:$0xff]  }
 0x29b   : > { %3241 = vmatmul.mubr.bf16.gmra.mrb[8].mxu0 %v14167_v38 }
 0x29c   : > { %3759 = vmatpush1.bf16.msra.mxu0 %v12326_v29  ;;  %v1557_v40 = vpop.f32.mrb[92].mxu1 }
 0x29d   : > { %3760 = vmatprep.subr.bf16.mxu0 %v12334_v32  ;;  %v1559_v43 = vpop.f32.mrb[93].mxu1 }
 0x29e   : > { %v1561_v47 = vpop.f32.mrb[94].mxu1 }
 0x29f   : > { %v14191_v48 = vpack.c.bf16 %v1561_v47, %v1557_v40  ;;  %v1563_v49 = vpop.f32.mrb[95].mxu1 }
 0x2a0   : > { %3761 = vmatpush1.bf16.msra.mxu0 %v12332_v35  ;;  %v14196_v51 = vpack.c.bf16 %v1563_v49, %v1559_v43  ;;  %v12380_v35 = vld [vmem:[%s16914_s4 + $0x580] ss:$16 sps:$4 sm:$0xff]   ;;  %v12391_v43 = vld [vmem:[%s16914_s4 + $0x8c] ss:$16 sps:$4 sm:$0xff]   ;;  %v12394_v49 = vld [vmem:[%s16914_s4 + $0x5c4] ss:$16 sps:$4 sm:$0xff]  }
 0x2a1   : > { %1826 = vmatmul.mubr.bf16.gmra.mrb[200].mxu1 %v12340_v41  ;;  %3762 = vmatprep.subr.bf16.mxu0 %v12343_v42  ;;  %v12388_v41 = vld [vmem:[%s16914_s4 + $0x5a4] ss:$16 sps:$4 sm:$0xff]   ;;  %v12383_v42 = vld [vmem:[%s16914_s4 + $0x68] ss:$16 sps:$4 sm:$0xff]  }
 0x2a2   : > { %1835 = vmatprep.mubr.bf16.mxu1 %v12350_v45  ;;  %3250 = vmatprep.mubr.bf16.mxu0 %v14196_v51  ;;  %v12386_v45 = vld [vmem:[%s16914_s4 + $0x5a0] ss:$16 sps:$4 sm:$0xff]  }
 0x2a3   : > { %3251 = vmatmul.mubr.bf16.gmra.mrb[12].mxu0 %v14191_v48 }
 0x2a4   : > { %3763 = vmatpush1.bf16.msra.mxu0 %v12341_v50  ;;  %v1567_v56 = vpop.f32.mrb[96].mxu1 }
 0x2a5   : > { %3764 = vmatprep.subr.bf16.mxu0 %v12349_v53  ;;  %v1569_v59 = vpop.f32.mrb[97].mxu1  ;;  %v12389_v53 = vld [vmem:[%s16914_s4 + $0x88] ss:$16 sps:$4 sm:$0xff]  }
 0x2a6   : > { %v1571_v61 = vpop.f32.mrb[98].mxu1 }
 0x2a7   : > { %v14212_v63 = vpack.c.bf16 %v1571_v61, %v1567_v56  ;;  %v1573_v0 = vpop.f32.mrb[99].mxu1  ;;  %v12397_v56 = vld [vmem:[%s16914_s4 + $0xac] ss:$16 sps:$4 sm:$0xff]  }
 0x2a8   : > { %3765 = vmatpush1.bf16.msra.mxu0 %v12347_v55  ;;  %v14217_v3 = vpack.c.bf16 %v1573_v0, %v1569_v59  ;;  %v12392_v59 = vld [vmem:[%s16914_s4 + $0x5c0] ss:$16 sps:$4 sm:$0xff]   ;;  %v12400_v0 = vld [vmem:[%s16914_s4 + $0x5e4] ss:$16 sps:$4 sm:$0xff]  }
 0x2a9   : > { %1836 = vmatmul.mubr.bf16.gmra.mrb[204].mxu1 %v12355_v57  ;;  %3766 = vmatprep.subr.bf16.mxu0 %v12358_v58 }
 0x2aa   : > { %2512 = vmatprep.mubr.bf16.mxu1 %v14081_v33  ;;  %3782 = vmatprep.mubr.bf16.mxu0 %v14217_v3 }
 0x2ac   : > { %3767 = vmatpush1.bf16.msra.mxu0 %v12356_v1  ;;  %v1577_v8 = vpop.f32.mrb[100].mxu1  ;;  %v12395_v1 = vld [vmem:[%s16914_s4 + $0xa8] ss:$16 sps:$4 sm:$0xff]  }
 0x2ad   : > { %3768 = vmatprep.subr.bf16.mxu0 %v12364_v4  ;;  %v1579_v10 = vpop.f32.mrb[101].mxu1  ;;  %v12403_v4 = vld [vmem:[%s16914_s4 + $0xcc] ss:$16 sps:$4 sm:$0xff]  }
 0x2ae   : > { %v1581_v12 = vpop.f32.mrb[102].mxu1 }
 0x2af   : > { %v14236_v14 = vpack.c.bf16 %v1581_v12, %v1577_v8  ;;  %v1583_v15 = vpop.f32.mrb[103].mxu1 }
 0x2b0   : > { %3769 = vmatpush1.bf16.msra.mxu0 %v12362_v6  ;;  %v14241_v18 = vpack.c.bf16 %v1583_v15, %v1579_v10  ;;  %v12398_v6 = vld [vmem:[%s16914_s4 + $0x5e0] ss:$16 sps:$4 sm:$0xff]  }
 0x2b1   : > { %2513 = vmatmul.mubr.bf16.vlgmr.msra.gmra.mrb[208].mxu1 %v14079_v31  ;;  %3770 = vmatprep.subr.bf16.mxu0 %v12370_v9  ;;  %v12406_v9 = vld [vmem:[%s16914_s4 + $0x40c] ss:$16 sps:$4 sm:$0xff]  }
 0x2b2   : > { %2554 = vmatpush1.bf16.msra.mxu1 %v12365_v11  ;;  %2522 = vmatprep.mubr.bf16.mxu1 %v14091_v46  ;;  %v12401_v11 = vld [vmem:[%s16914_s4 + $0xc8] ss:$16 sps:$4 sm:$0xff]  }
 0x2b3   : > { %2555 = vmatprep.subr.bf16.mxu1 %v12373_v13  ;;  %v12409_v13 = vld [vmem:[%s16914_s4 + $0xec] ss:$16 sps:$4 sm:$0xff]  }
 0x2b4   : > { %3771 = vmatpush1.bf16.msra.mxu0 %v12368_v16  ;;  %v1587_v24 = vpop.f32.mrb[104].mxu1 }
 0x2b5   : > { %3772 = vmatprep.subr.bf16.mxu0 %v12376_v19  ;;  %v1589_v26 = vpop.f32.mrb[105].mxu1  ;;  %v12404_v19 = vld [vmem:[%s16914_s4 + $0x408] ss:$16 sps:$4 sm:$0xff]  }
 0x2b6   : > { %2556 = vmatpush1.bf16.msra.mxu1 %v12371_v21  ;;  %v1591_v28 = vpop.f32.mrb[106].mxu1 }
 0x2b7   : > { %2557 = vmatprep.subr.bf16.mxu1 %v12379_v22  ;;  %v14266_v29 = vpack.c.bf16 %v1591_v28, %v1587_v24  ;;  %v1593_v32 = vpop.f32.mrb[107].mxu1  ;;  %v12412_v22 = vld [vmem:[%s16914_s4 + $0x42c] ss:$16 sps:$4 sm:$0xff]   ;;  %v12413_v28 = vld [vmem:[%s16914_s4 + $0x108] ss:$16 sps:$4 sm:$0xff]  }
 0x2b8   : > { %3773 = vmatpush1.bf16.msra.mxu0 %v12374_v23  ;;  %v14271_v40 = vpack.c.bf16 %v1593_v32, %v1589_v26  ;;  %v12407_v23 = vld [vmem:[%s16914_s4 + $0xe8] ss:$16 sps:$4 sm:$0xff]   ;;  %v12415_v24 = vld [vmem:[%s16914_s4 + $0x10c] ss:$16 sps:$4 sm:$0xff]  }
 0x2b9   : > { %2523 = vmatmul.mubr.bf16.gmra.mrb[212].mxu1 %v14089_v44  ;;  %3774 = vmatprep.subr.bf16.mxu0 %v12382_v25  ;;  %v12410_v25 = vld [vmem:[%s16914_s4 + $0x428] ss:$16 sps:$4 sm:$0xff]   ;;  %v12421_v32 = vld [vmem:[%s16914_s4 + $0x12c] ss:$16 sps:$4 sm:$0xff]  }
 0x2ba   : > { %2558 = vmatpush1.bf16.msra.mxu1 %v12377_v27  ;;  %2532 = vmatprep.mubr.bf16.mxu1 %v14101_v54 }
 0x2bb   : > { %2559 = vmatprep.subr.bf16.mxu1 %v12385_v39 }
 0x2bc   : > { %3775 = vmatpush1.bf16.msra.mxu0 %v12380_v35  ;;  %v1597_v47 = vpop.f32.mrb[108].mxu1 }
 0x2bd   : > { %3776 = vmatprep.subr.bf16.mxu0 %v12388_v41  ;;  %v1599_v50 = vpop.f32.mrb[109].mxu1 }
 0x2be   : > { %2560 = vmatpush1.bf16.msra.mxu1 %v12383_v42  ;;  %v1601_v55 = vpop.f32.mrb[110].mxu1  ;;  %v12416_v42 = vld [vmem:[%s16914_s4 + $0x448] ss:$16 sps:$4 sm:$0xff]  }
 0x2bf   : > { %2561 = vmatprep.subr.bf16.mxu1 %v12391_v43  ;;  %v14296_v57 = vpack.c.bf16 %v1601_v55, %v1597_v47  ;;  %v1603_v58 = vpop.f32.mrb[111].mxu1  ;;  %v12419_v47 = vld [vmem:[%s16914_s4 + $0x128] ss:$16 sps:$4 sm:$0xff]   ;;  %v12430_v55 = vld [vmem:[%s16914_s4 + $0x48c] ss:$16 sps:$4 sm:$0xff]  }
 0x2c0   : > { %3777 = vmatpush1.bf16.msra.mxu0 %v12386_v45  ;;  %v14301_v61 = vpack.c.bf16 %v1603_v58, %v1599_v50  ;;  %v12424_v45 = vld [vmem:[%s16914_s4 + $0x46c] ss:$16 sps:$4 sm:$0xff]   ;;  %v12422_v50 = vld [vmem:[%s16914_s4 + $0x468] ss:$16 sps:$4 sm:$0xff]  }
 0x2c1   : > { %2533 = vmatmul.mubr.bf16.gmra.mrb[216].mxu1 %v14099_v52  ;;  %3778 = vmatprep.subr.bf16.mxu0 %v12394_v49  ;;  %v12427_v49 = vld [vmem:[%s16914_s4 + $0x14c] ss:$16 sps:$4 sm:$0xff]   ;;  %v12425_v58 = vld [vmem:[%s16914_s4 + $0x148] ss:$16 sps:$4 sm:$0xff]  }
 0x2c2   : > { %2562 = vmatpush1.bf16.msra.mxu1 %v12389_v53  ;;  %2542 = vmatprep.mubr.bf16.mxu1 %v14111_v62 }
 0x2c3   : > { %2563 = vmatprep.subr.bf16.mxu1 %v12397_v56 }
 0x2c4   : > { %3779 = vmatpush1.bf16.msra.mxu0 %v12392_v59  ;;  %v1607_v8 = vpop.f32.mrb[112].mxu1 }
 0x2c5   : > { %3780 = vmatprep.subr.bf16.mxu0 %v12400_v0  ;;  %v1609_v10 = vpop.f32.mrb[113].mxu1  ;;  %v12433_v0 = vld [vmem:[%s16914_s4 + $0x16c] ss:$16 sps:$4 sm:$0xff]  }
 0x2c6   : > { %2564 = vmatpush1.bf16.msra.mxu1 %v12395_v1  ;;  %v1611_v12 = vpop.f32.mrb[114].mxu1 }
 0x2c7   : > { %2565 = vmatprep.subr.bf16.mxu1 %v12403_v4  ;;  %v14326_v15 = vpack.c.bf16 %v1611_v12, %v1607_v8  ;;  %v1613_v16 = vpop.f32.mrb[115].mxu1  ;;  %v12434_v12 = vld [vmem:[%s16914_s4 + $0x4a8] ss:$16 sps:$4 sm:$0xff]  }
 0x2c8   : > { %3781 = vmatpush1.bf16.msra.mxu0 %v12398_v6  ;;  %v14331_v21 = vpack.c.bf16 %v1613_v16, %v1609_v10  ;;  %v12428_v6 = vld [vmem:[%s16914_s4 + $0x488] ss:$16 sps:$4 sm:$0xff]   ;;  %v12442_v16 = vld [vmem:[%s16914_s4 + $0x4cc] ss:$16 sps:$4 sm:$0xff]  }
 0x2c9   : > { %2543 = vmatmul.mubr.bf16.gmra.mrb[220].mxu1 %v14109_v60  ;;  %3823 = vmatprep.subr.bf16.mxu0 %v12406_v9  ;;  %v12436_v9 = vld [vmem:[%s16914_s4 + $0x4ac] ss:$16 sps:$4 sm:$0xff]   ;;  %v12431_v10 = vld [vmem:[%s16914_s4 + $0x168] ss:$16 sps:$4 sm:$0xff]  }
 0x2ca   : > { %2566 = vmatpush1.bf16.msra.mxu1 %v12401_v11  ;;  %2585 = vmatprep.mubr.bf16.mxu1 %v14081_v33  ;;  %v12418_v33 = vld [vmem:[%s16914_s4 + $0x44c] ss:$16 sps:$4 sm:$0xff]  }
 0x2cb   : > { %3783 = vmatmul.mubr.bf16.vlgmr.msra.gmra.mrb[16].mxu0 %v14212_v63  ;;  %2567 = vmatprep.subr.bf16.mxu1 %v12409_v13  ;;  %v12439_v11 = vld [vmem:[%s16914_s4 + $0x18c] ss:$16 sps:$4 sm:$0xff]  }
 0x2cc   : > { %3824 = vmatpush1.bf16.msra.mxu0 %v12404_v19  ;;  %3792 = vmatprep.mubr.bf16.mxu0 %v14241_v18  ;;  %v1617_v26 = vpop.f32.mrb[116].mxu1 }
 0x2cd   : > { %3825 = vmatprep.subr.bf16.mxu0 %v12412_v22  ;;  %v1619_v27 = vpop.f32.mrb[117].mxu1  ;;  %v12437_v22 = vld [vmem:[%s16914_s4 + $0x188] ss:$16 sps:$4 sm:$0xff]  }
 0x2ce   : > { %2568 = vmatpush1.bf16.msra.mxu1 %v12407_v23  ;;  %v1621_v39 = vpop.f32.mrb[118].mxu1 }
 0x2cf   : > { %2569 = vmatprep.subr.bf16.mxu1 %v12415_v24  ;;  %v14358_v35 = vpack.c.bf16 %v1621_v39, %v1617_v26  ;;  %v1623_v41 = vpop.f32.mrb[119].mxu1  ;;  %v12445_v24 = vld [vmem:[%s16914_s4 + $0x1ac] ss:$16 sps:$4 sm:$0xff]   ;;  %v12443_v39 = vld [vmem:[%s16914_s4 + $0x1a8] ss:$16 sps:$4 sm:$0xff]  }
 0x2d0   : > { %3826 = vmatpush1.bf16.msra.mxu0 %v12410_v25  ;;  %v14363_v43 = vpack.c.bf16 %v1623_v41, %v1619_v27  ;;  %v12446_v41 = vld [vmem:[%s16914_s4 + $0x4e8] ss:$16 sps:$4 sm:$0xff]  }
 0x2d1   : > { %3827 = vmatprep.subr.bf16.mxu0 %v12418_v33  ;;  %v12440_v33 = vld [vmem:[%s16914_s4 + $0x4c8] ss:$16 sps:$4 sm:$0xff]  }
 0x2d2   : > { %2570 = vmatpush1.bf16.msra.mxu1 %v12413_v28  ;;  %v12448_v28 = vld [vmem:[%s16914_s4 + $0x4ec] ss:$16 sps:$4 sm:$0xff]  }
 0x2d3   : > { %3793 = vmatmul.mubr.bf16.gmra.mrb[20].mxu0 %v14236_v14  ;;  %2571 = vmatprep.subr.bf16.mxu1 %v12421_v32  ;;  %v12451_v32 = vld [vmem:[%s16914_s4 + $0x1cc] ss:$16 sps:$4 sm:$0xff]  }
 0x2d4   : > { %3828 = vmatpush1.bf16.msra.mxu0 %v12416_v42  ;;  %3802 = vmatprep.mubr.bf16.mxu0 %v14271_v40  ;;  %v1627_v53 = vpop.f32.mrb[120].mxu1  ;;  %v12454_v42 = vld [vmem:[%s16914_s4 + $0x50c] ss:$16 sps:$4 sm:$0xff]  }
 0x2d5   : > { %3829 = vmatprep.subr.bf16.mxu0 %v12424_v45  ;;  %v1629_v56 = vpop.f32.mrb[121].mxu1  ;;  %v12449_v45 = vld [vmem:[%s16914_s4 + $0x1c8] ss:$16 sps:$4 sm:$0xff]  }
 0x2d6   : > { %2572 = vmatpush1.bf16.msra.mxu1 %v12419_v47  ;;  %v1631_v59 = vpop.f32.mrb[122].mxu1  ;;  %v12457_v47 = vld [vmem:[%s16914_s4 + $0x1ec] ss:$16 sps:$4 sm:$0xff]  }
 0x2d7   : > { %2573 = vmatprep.subr.bf16.mxu1 %v12427_v49  ;;  %v14388_v1 = vpack.c.bf16 %v1631_v59, %v1627_v53  ;;  %v1633_v4 = vpop.f32.mrb[123].mxu1  ;;  %v12460_v49 = vld [vmem:[%s16914_s4 + $0x52c] ss:$16 sps:$4 sm:$0xff]   ;;  %v12463_v53 = vld [vmem:[%s16914_s4 + $0x204] ss:$16 sps:$4 sm:$0xff]  }
 0x2d8   : > { %3830 = vmatpush1.bf16.msra.mxu0 %v12422_v50  ;;  %v14393_v8 = vpack.c.bf16 %v1633_v4, %v1629_v56  ;;  %v12455_v50 = vld [vmem:[%s16914_s4 + $0x1e8] ss:$16 sps:$4 sm:$0xff]   ;;  %v12466_v56 = vld [vmem:[%s16914_s4 + $0x54c] ss:$16 sps:$4 sm:$0xff]   ;;  %v12469_v59 = vld [vmem:[%s16914_s4 + $0x224] ss:$16 sps:$4 sm:$0xff]  }
 0x2d9   : > { %3831 = vmatprep.subr.bf16.mxu0 %v12430_v55  ;;  %v12458_v55 = vld [vmem:[%s16914_s4 + $0x528] ss:$16 sps:$4 sm:$0xff]   ;;  %v12472_v4 = vld [vmem:[%s16914_s4 + $0x56c] ss:$16 sps:$4 sm:$0xff]  }
 0x2da   : > { %2574 = vmatpush1.bf16.msra.mxu1 %v12425_v58  ;;  %v12461_v58 = vld [vmem:[%s16914_s4 + $0x200] ss:$16 sps:$4 sm:$0xff]  }
 0x2db   : > { %3803 = vmatmul.mubr.bf16.gmra.mrb[24].mxu0 %v14266_v29  ;;  %2575 = vmatprep.subr.bf16.mxu1 %v12433_v0  ;;  %v12464_v0 = vld [vmem:[%s16914_s4 + $0x548] ss:$16 sps:$4 sm:$0xff]  }
 0x2dc   : > { %3832 = vmatpush1.bf16.msra.mxu0 %v12428_v6  ;;  %3812 = vmatprep.mubr.bf16.mxu0 %v14301_v61  ;;  %v1637_v13 = vpop.f32.mrb[124].mxu1 }
 0x2dd   : > { %3833 = vmatprep.subr.bf16.mxu0 %v12436_v9  ;;  %v1639_v19 = vpop.f32.mrb[125].mxu1  ;;  %v12467_v9 = vld [vmem:[%s16914_s4 + $0x220] ss:$16 sps:$4 sm:$0xff]  }
 0x2de   : > { %2576 = vmatpush1.bf16.msra.mxu1 %v12431_v10  ;;  %v1641_v23 = vpop.f32.mrb[126].mxu1  ;;  %v12475_v10 = vld [vmem:[%s16914_s4 + $0x244] ss:$16 sps:$4 sm:$0xff]  }
 0x2df   : > { %2577 = vmatprep.subr.bf16.mxu1 %v12439_v11  ;;  %v14418_v25 = vpack.c.bf16 %v1641_v23, %v1637_v13  ;;  %v1643_v26 = vpop.f32.mrb[127].mxu1  ;;  %v12473_v13 = vld [vmem:[%s16914_s4 + $0x240] ss:$16 sps:$4 sm:$0xff]  }
 0x2e0   : > { %3834 = vmatpush1.bf16.msra.mxu0 %v12434_v12  ;;  %v14423_v27 = vpack.c.bf16 %v1643_v26, %v1639_v19  ;;  %v12476_v26 = vld [vmem:[%s16914_s4 + $0x588] ss:$16 sps:$4 sm:$0xff]  }
 0x2e1   : > { %3835 = vmatprep.subr.bf16.mxu0 %v12442_v16 }
 0x2e2   : > { %2578 = vmatpush1.bf16.msra.mxu1 %v12437_v22  ;;  %v12481_v22 = vld [vmem:[%s16914_s4 + $0x264] ss:$16 sps:$4 sm:$0xff]  }
 0x2e3   : > { %3813 = vmatmul.mubr.bf16.gmra.mrb[28].mxu0 %v14296_v57  ;;  %2579 = vmatprep.subr.bf16.mxu1 %v12445_v24 }
 0x2e4   : > { %3836 = vmatpush1.bf16.msra.mxu0 %v12440_v33  ;;  %3855 = vmatprep.mubr.bf16.mxu0 %v14217_v3  ;;  %v12452_v3 = vld [vmem:[%s16914_s4 + $0x508] ss:$16 sps:$4 sm:$0xff]   ;;  %v1647_v6 = vpop.f32.mrb[128].mxu1 }
 0x2e5   : > { %3837 = vmatprep.subr.bf16.mxu0 %v12448_v28  ;;  %v1649_v11 = vpop.f32.mrb[129].mxu1  ;;  %v12484_v28 = vld [vmem:[%s16914_s4 + $0x5ac] ss:$16 sps:$4 sm:$0xff]  }
 0x2e6   : > { %2580 = vmatpush1.bf16.msra.mxu1 %v12443_v39  ;;  %v1651_v12 = vpop.f32.mrb[130].mxu1 }
 0x2e7   : > { %2581 = vmatprep.subr.bf16.mxu1 %v12451_v32  ;;  %v14495_v16 = vpack.c.bf16 %v1651_v12, %v1647_v6  ;;  %v1653_v19 = vpop.f32.mrb[131].mxu1  ;;  %v12479_v32 = vld [vmem:[%s16914_s4 + $0x260] ss:$16 sps:$4 sm:$0xff]  }
 0x2e8   : > { %3838 = vmatpush1.bf16.msra.mxu0 %v12446_v41  ;;  %v14500_v23 = vpack.c.bf16 %v1653_v19, %v1649_v11  ;;  %v12502_v19 = vld [vmem:[%s16914_s4 + $0x604] ss:$16 sps:$4 sm:$0xff]  }
 0x2e9   : > { %3839 = vmatprep.subr.bf16.mxu0 %v12454_v42 }
 0x2ea   : > { %2582 = vmatpush1.bf16.msra.mxu1 %v12449_v45 }
 0x2eb   : > { %2583 = vmatprep.subr.bf16.mxu1 %v12457_v47 }
 0x2ec   : > { %3840 = vmatpush1.bf16.msra.mxu0 %v12452_v3  ;;  %v1657_v24 = vpop.f32.mrb[132].mxu1 }
 0x2ed   : > { %3841 = vmatprep.subr.bf16.mxu0 %v12460_v49  ;;  %v1659_v33 = vpop.f32.mrb[133].mxu1  ;;  %v12490_v49 = vld [vmem:[%s16914_s4 + $0x5cc] ss:$16 sps:$4 sm:$0xff]  }
 0x2ee   : > { %2584 = vmatpush1.bf16.msra.mxu1 %v12455_v50  ;;  %v1661_v39 = vpop.f32.mrb[134].mxu1 }
 0x2ef   : > { %3115 = vmatprep.subr.bf16.mxu1 %v12463_v53  ;;  %v14513_v41 = vpack.c.bf16 %v1661_v39, %v1657_v24  ;;  %v1663_v42 = vpop.f32.mrb[135].mxu1  ;;  %v12485_v53 = vld [vmem:[%s16914_s4 + $0x280] ss:$16 sps:$4 sm:$0xff]  }
 0x2f0   : > { %3842 = vmatpush1.bf16.msra.mxu0 %v12458_v55  ;;  %v14518_v45 = vpack.c.bf16 %v1663_v42, %v1659_v33  ;;  %v12497_v24 = vld [vmem:[%s16914_s4 + $0x2c0] ss:$16 sps:$4 sm:$0xff]   ;;  %v12505_v33 = vld [vmem:[%s16914_s4 + $0x2e4] ss:$16 sps:$4 sm:$0xff]  }
 0x2f1   : > { %2586 = vmatmul.mubr.bf16.vlgmr.msra.gmra.mrb[224].mxu1 %v14079_v31  ;;  %3843 = vmatprep.subr.bf16.mxu0 %v12466_v56  ;;  %v12470_v31 = vld [vmem:[%s16914_s4 + $0x568] ss:$16 sps:$4 sm:$0xff]  }
 0x2f2   : > { %2595 = vmatprep.mubr.bf16.mxu1 %v14091_v46  ;;  %3116 = vmatpush1.bf16.msra.mxu1 %v12461_v58  ;;  %v12478_v46 = vld [vmem:[%s16914_s4 + $0x58c] ss:$16 sps:$4 sm:$0xff]   ;;  %v12493_v58 = vld [vmem:[%s16914_s4 + $0x2a4] ss:$16 sps:$4 sm:$0xff]  }
 0x2f3   : > { %3117 = vmatprep.subr.bf16.mxu1 %v12469_v59 }
 0x2f4   : > { %3844 = vmatpush1.bf16.msra.mxu0 %v12464_v0  ;;  %v1667_v47 = vpop.f32.mrb[136].mxu1 }
 0x2f5   : > { %3845 = vmatprep.subr.bf16.mxu0 %v12472_v4  ;;  %v1669_v3 = vpop.f32.mrb[137].mxu1  ;;  %v12488_v4 = vld [vmem:[%s16914_s4 + $0x5c8] ss:$16 sps:$4 sm:$0xff]  }
 0x2f6   : > { %3118 = vmatpush1.bf16.msra.mxu1 %v12467_v9  ;;  %v1671_v50 = vpop.f32.mrb[138].mxu1  ;;  %v12496_v9 = vld [vmem:[%s16914_s4 + $0x5ec] ss:$16 sps:$4 sm:$0xff]  }
 0x2f7   : > { %3119 = vmatprep.subr.bf16.mxu1 %v12475_v10  ;;  %v14529_v55 = vpack.c.bf16 %v1671_v50, %v1667_v47  ;;  %v1673_v56 = vpop.f32.mrb[139].mxu1  ;;  %v12503_v47 = vld [vmem:[%s16914_s4 + $0x2e0] ss:$16 sps:$4 sm:$0xff]  }
 0x2f8   : > { %3846 = vmatpush1.bf16.msra.mxu0 %v12470_v31  ;;  %v14534_v59 = vpack.c.bf16 %v1673_v56, %v1669_v3  ;;  %v12491_v31 = vld [vmem:[%s16914_s4 + $0x2a0] ss:$16 sps:$4 sm:$0xff]  }
 0x2f9   : > { %2596 = vmatmul.mubr.bf16.gmra.mrb[228].mxu1 %v14089_v44  ;;  %3847 = vmatprep.subr.bf16.mxu0 %v12478_v46  ;;  %v12487_v44 = vld [vmem:[%s16914_s4 + $0x284] ss:$16 sps:$4 sm:$0xff]  }
 0x2fa   : > { %2605 = vmatprep.mubr.bf16.mxu1 %v14101_v54  ;;  %3120 = vmatpush1.bf16.msra.mxu1 %v12473_v13  ;;  %v12482_v54 = vld [vmem:[%s16914_s4 + $0x5a8] ss:$16 sps:$4 sm:$0xff]  }
 0x2fb   : > { %3121 = vmatprep.subr.bf16.mxu1 %v12481_v22 }
 0x2fc   : > { %3848 = vmatpush1.bf16.msra.mxu0 %v12476_v26  ;;  %v1677_v0 = vpop.f32.mrb[140].mxu1 }
 0x2fd   : > { %3849 = vmatprep.subr.bf16.mxu0 %v12484_v28  ;;  %v1679_v6 = vpop.f32.mrb[141].mxu1 }
 0x2fe   : > { %3122 = vmatpush1.bf16.msra.mxu1 %v12479_v32  ;;  %v1681_v10 = vpop.f32.mrb[142].mxu1  ;;  %v12500_v32 = vld [vmem:[%s16914_s4 + $0x600] ss:$16 sps:$4 sm:$0xff]  }
 0x2ff   : > { %3123 = vmatprep.subr.bf16.mxu1 %v12487_v44  ;;  %v14547_v11 = vpack.c.bf16 %v1681_v10, %v1677_v0  ;;  %v1683_v46 = vpop.f32.mrb[143].mxu1  ;;  %v12508_v44 = vld [vmem:[%s16914_s4 + $0x624] ss:$16 sps:$4 sm:$0xff]   ;;  %v12518_v10 = vld [vmem:[%s16914_s4 + $0x660] ss:$16 sps:$4 sm:$0xff]  }
 0x300   : > { %3850 = vmatpush1.bf16.msra.mxu0 %v12482_v54  ;;  %v14552_v12 = vpack.c.bf16 %v1683_v46, %v1679_v6  ;;  %v12511_v54 = vld [vmem:[%s16914_s4 + $0x304] ss:$16 sps:$4 sm:$0xff]   ;;  %v12515_v6 = vld [vmem:[%s16914_s4 + $0x320] ss:$16 sps:$4 sm:$0xff]  }
 0x301   : > { %2606 = vmatmul.mubr.bf16.gmra.mrb[232].mxu1 %v14099_v52  ;;  %3851 = vmatprep.subr.bf16.mxu0 %v12490_v49  ;;  %v12499_v52 = vld [vmem:[%s16914_s4 + $0x2c4] ss:$16 sps:$4 sm:$0xff]  }
 0x302   : > { %2615 = vmatprep.mubr.bf16.mxu1 %v14111_v62  ;;  %3124 = vmatpush1.bf16.msra.mxu1 %v12485_v53  ;;  %v12494_v62 = vld [vmem:[%s16914_s4 + $0x5e8] ss:$16 sps:$4 sm:$0xff]   ;;  %v12526_v46 = vld [vmem:[%s16914_s4 + $0x684] ss:$16 sps:$4 sm:$0xff]  }
 0x303   : > { %3125 = vmatprep.subr.bf16.mxu1 %v12493_v58  ;;  %v12512_v58 = vld [vmem:[%s16914_s4 + $0x640] ss:$16 sps:$4 sm:$0xff]  }
 0x304   : > { %3852 = vmatpush1.bf16.msra.mxu0 %v12488_v4  ;;  %v1687_v13 = vpop.f32.mrb[144].mxu1  ;;  %v12520_v4 = vld [vmem:[%s16914_s4 + $0x664] ss:$16 sps:$4 sm:$0xff]  }
 0x305   : > { %3853 = vmatprep.subr.bf16.mxu0 %v12496_v9  ;;  %v1689_v22 = vpop.f32.mrb[145].mxu1  ;;  %v12523_v9 = vld [vmem:[%s16914_s4 + $0x344] ss:$16 sps:$4 sm:$0xff]  }
 0x306   : > { %3126 = vmatpush1.bf16.msra.mxu1 %v12491_v31  ;;  %v1691_v26 = vpop.f32.mrb[146].mxu1 }
 0x307   : > { %3127 = vmatprep.subr.bf16.mxu1 %v12499_v52  ;;  %v14566_v28 = vpack.c.bf16 %v1691_v26, %v1687_v13  ;;  %v1693_v39 = vpop.f32.mrb[147].mxu1  ;;  %v12532_v26 = vld [vmem:[%s16914_s4 + $0x6a4] ss:$16 sps:$4 sm:$0xff]  }
 0x308   : > { %3854 = vmatpush1.bf16.msra.mxu0 %v12494_v62  ;;  %v14571_v42 = vpack.c.bf16 %v1693_v39, %v1689_v22  ;;  %v12524_v22 = vld [vmem:[%s16914_s4 + $0x680] ss:$16 sps:$4 sm:$0xff]   ;;  %v12535_v39 = vld [vmem:[%s16914_s4 + $0x384] ss:$16 sps:$4 sm:$0xff]  }
 0x309   : > { %2616 = vmatmul.mubr.bf16.gmra.mrb[236].mxu1 %v14109_v60  ;;  %4385 = vmatprep.subr.bf16.mxu0 %v12502_v19  ;;  %v12506_v60 = vld [vmem:[%s16914_s4 + $0x620] ss:$16 sps:$4 sm:$0xff]  }
 0x30a   : > { %3128 = vmatpush1.bf16.msra.mxu1 %v12497_v24  ;;  %3147 = vmatprep.mubr.bf16.mxu1 %v14121_v7  ;;  %v12514_v7 = vld [vmem:[%s16914_s4 + $0x644] ss:$16 sps:$4 sm:$0xff]  }
 0x30b   : > { %3856 = vmatmul.mubr.bf16.vlgmr.msra.gmra.mrb[0].mxu0 %v14212_v63  ;;  %3129 = vmatprep.subr.bf16.mxu1 %v12505_v33  ;;  %v12509_v63 = vld [vmem:[%s16914_s4 + $0x300] ss:$16 sps:$4 sm:$0xff]  }
 0x30c   : > { %3865 = vmatprep.mubr.bf16.mxu0 %v14241_v18  ;;  %4386 = vmatpush1.bf16.msra.mxu0 %v12500_v32  ;;  %v1697_v3 = vpop.f32.mrb[148].mxu1  ;;  %v12517_v18 = vld [vmem:[%s16914_s4 + $0x324] ss:$16 sps:$4 sm:$0xff]   ;;  %v12527_v33 = vld [vmem:[%s16914_s4 + $0x360] ss:$16 sps:$4 sm:$0xff]  }
 0x30d   : > { %4387 = vmatprep.subr.bf16.mxu0 %v12508_v44  ;;  %v1699_v49 = vpop.f32.mrb[149].mxu1  ;;  %v12530_v32 = vld [vmem:[%s16914_s4 + $0x6a0] ss:$16 sps:$4 sm:$0xff]  }
 0x30e   : > { %3130 = vmatpush1.bf16.msra.mxu1 %v12503_v47  ;;  %v1701_v50 = vpop.f32.mrb[150].mxu1  ;;  %v12538_v47 = vld [vmem:[%s16914_s4 + $0x6c4] ss:$16 sps:$4 sm:$0xff]  }
 0x30f   : > { %3131 = vmatprep.subr.bf16.mxu1 %v12511_v54  ;;  %v14598_v53 = vpack.c.bf16 %v1701_v50, %v1697_v3  ;;  %v1703_v56 = vpop.f32.mrb[151].mxu1  ;;  %v12544_v50 = vld [vmem:[%s16914_s4 + $0x6e4] ss:$16 sps:$4 sm:$0xff]  }
 0x310   : > { %4388 = vmatpush1.bf16.msra.mxu0 %v12506_v60  ;;  %v14603_v0 = vpack.c.bf16 %v1703_v56, %v1699_v49  ;;  %v12536_v49 = vld [vmem:[%s16914_s4 + $0x6c0] ss:$16 sps:$4 sm:$0xff]   ;;  %v12547_v56 = vld [vmem:[%s16914_s4 + $0x3c4] ss:$16 sps:$4 sm:$0xff]  }
 0x311   : > { %4389 = vmatprep.subr.bf16.mxu0 %v12514_v7 }
 0x312   : > { %3132 = vmatpush1.bf16.msra.mxu1 %v12509_v63 }
 0x313   : > { %3866 = vmatmul.mubr.bf16.gmra.mrb[4].mxu0 %v14236_v14  ;;  %3133 = vmatprep.subr.bf16.mxu1 %v12517_v18  ;;  %v12521_v14 = vld [vmem:[%s16914_s4 + $0x340] ss:$16 sps:$4 sm:$0xff]  }
 0x314   : > { %3875 = vmatprep.mubr.bf16.mxu0 %v14271_v40  ;;  %4390 = vmatpush1.bf16.msra.mxu0 %v12512_v58  ;;  %v1707_v31 = vpop.f32.mrb[152].mxu1  ;;  %v12529_v40 = vld [vmem:[%s16914_s4 + $0x364] ss:$16 sps:$4 sm:$0xff]   ;;  %v12539_v18 = vld [vmem:[%s16914_s4 + $0x3a0] ss:$16 sps:$4 sm:$0xff]  }
 0x315   : > { %4391 = vmatprep.subr.bf16.mxu0 %v12520_v4  ;;  %v1709_v52 = vpop.f32.mrb[153].mxu1  ;;  %v12542_v58 = vld [vmem:[%s16914_s4 + $0x6e0] ss:$16 sps:$4 sm:$0xff]  }
 0x316   : > { %3134 = vmatpush1.bf16.msra.mxu1 %v12515_v6  ;;  %v1711_v62 = vpop.f32.mrb[154].mxu1  ;;  %v12550_v6 = vld [vmem:[%s16914_s4 + $0x704] ss:$16 sps:$4 sm:$0xff]  }
 0x317   : > { %3135 = vmatprep.subr.bf16.mxu1 %v12523_v9  ;;  %v14628_v13 = vpack.c.bf16 %v1711_v62, %v1707_v31  ;;  %v1713_v19 = vpop.f32.mrb[155].mxu1  ;;  %v12553_v31 = vld [vmem:[%s16914_s4 + $0x3e4] ss:$16 sps:$4 sm:$0xff]  }
 0x318   : > { %4392 = vmatpush1.bf16.msra.mxu0 %v12518_v10  ;;  %v14633_v24 = vpack.c.bf16 %v1713_v19, %v1709_v52  ;;  %v12551_v19 = vld [vmem:[%s16914_s4 + $0x3e0] ss:$16 sps:$4 sm:$0xff]  }
 0x319   : > { %4393 = vmatprep.subr.bf16.mxu0 %v12526_v46 }
 0x31a   : > { %3136 = vmatpush1.bf16.msra.mxu1 %v12521_v14  ;;  %v12548_v14 = vld [vmem:[%s16914_s4 + $0x700] ss:$16 sps:$4 sm:$0xff]  }
 0x31b   : > { %3876 = vmatmul.mubr.bf16.gmra.mrb[8].mxu0 %v14266_v29  ;;  %3137 = vmatprep.subr.bf16.mxu1 %v12529_v40  ;;  %v12533_v29 = vld [vmem:[%s16914_s4 + $0x380] ss:$16 sps:$4 sm:$0xff]   ;;  %v12556_v40 = vld [vmem:[%s16914_s4 + $0x724] ss:$16 sps:$4 sm:$0xff]  }
 0x31c   : > { %3885 = vmatprep.mubr.bf16.mxu0 %v14301_v61  ;;  %4394 = vmatpush1.bf16.msra.mxu0 %v12524_v22  ;;  %v1717_v44 = vpop.f32.mrb[156].mxu1  ;;  %v12541_v61 = vld [vmem:[%s16914_s4 + $0x3a4] ss:$16 sps:$4 sm:$0xff]   ;;  %v12554_v22 = vld [vmem:[%s16914_s4 + $0x720] ss:$16 sps:$4 sm:$0xff]  }
 0x31d   : > { %4395 = vmatprep.subr.bf16.mxu0 %v12532_v26  ;;  %v1719_v54 = vpop.f32.mrb[157].mxu1 }
 0x31e   : > { %3138 = vmatpush1.bf16.msra.mxu1 %v12527_v33  ;;  %v1721_v60 = vpop.f32.mrb[158].mxu1  ;;  %v12559_v33 = vld [vmem:[%s16914_s4 + $0x744] ss:$16 sps:$4 sm:$0xff]  }
 0x31f   : > { %3139 = vmatprep.subr.bf16.mxu1 %v12535_v39  ;;  %v14658_v3 = vpack.c.bf16 %v1721_v60, %v1717_v44  ;;  %v1723_v7 = vpop.f32.mrb[159].mxu1  ;;  %v12562_v60 = vld [vmem:[%s16914_s4 + $0x764] ss:$16 sps:$4 sm:$0xff]  }
 0x320   : > { %4396 = vmatpush1.bf16.msra.mxu0 %v12530_v32  ;;  %v14663_v63 = vpack.c.bf16 %v1723_v7, %v1719_v54  ;;  %v12557_v54 = vld [vmem:[%s16914_s4 + $0x740] ss:$16 sps:$4 sm:$0xff]  }
 0x321   : > { %4397 = vmatprep.subr.bf16.mxu0 %v12538_v47 }
 0x322   : > { %3140 = vmatpush1.bf16.msra.mxu1 %v12533_v29 }
 0x323   : > { %3886 = vmatmul.mubr.bf16.gmra.mrb[12].mxu0 %v14296_v57  ;;  %3141 = vmatprep.subr.bf16.mxu1 %v12541_v61  ;;  %v12545_v57 = vld [vmem:[%s16914_s4 + $0x3c0] ss:$16 sps:$4 sm:$0xff]  }
 0x324   : > { %4398 = vmatpush1.bf16.msra.mxu0 %v12536_v49  ;;  %4417 = vmatprep.mubr.bf16.mxu0 %v14331_v21  ;;  %v1727_v4 = vpop.f32.mrb[160].mxu1  ;;  %v12560_v61 = vld [vmem:[%s16914_s4 + $0x760] ss:$16 sps:$4 sm:$0xff]   ;;  %v12565_v49 = vld [vmem:[%s16914_s4 + $0x784] ss:$16 sps:$4 sm:$0xff]  }
 0x325   : > { %4399 = vmatprep.subr.bf16.mxu0 %v12544_v50  ;;  %v1729_v9 = vpop.f32.mrb[161].mxu1 }
 0x326   : > { %3142 = vmatpush1.bf16.msra.mxu1 %v12539_v18  ;;  %v1731_v10 = vpop.f32.mrb[162].mxu1 }
 0x327   : > { %3143 = vmatprep.subr.bf16.mxu1 %v12547_v56  ;;  %v14688_v46 = vpack.c.bf16 %v1731_v10, %v1727_v4  ;;  %v1733_v52 = vpop.f32.mrb[163].mxu1  ;;  %v12568_v4 = vld [vmem:[%s16914_s4 + $0x7a4] ss:$16 sps:$4 sm:$0xff]  }
 0x328   : > { %4400 = vmatpush1.bf16.msra.mxu0 %v12542_v58  ;;  %v14693_v62 = vpack.c.bf16 %v1733_v52, %v1729_v9 }
 0x329   : > { %4401 = vmatprep.subr.bf16.mxu0 %v12550_v6  ;;  %v12566_v6 = vld [vmem:[%s16914_s4 + $0x7a0] ss:$16 sps:$4 sm:$0xff]  }
 0x32a   : > { %3144 = vmatpush1.bf16.msra.mxu1 %v12545_v57  ;;  %v12571_v57 = vld [vmem:[%s16914_s4 + $0x7c4] ss:$16 sps:$4 sm:$0xff]  }
 0x32b   : > { %3145 = vmatprep.subr.bf16.mxu1 %v12553_v31 }
 0x32c   : > { %4402 = vmatpush1.bf16.msra.mxu0 %v12548_v14  ;;  %v1737_v26 = vpop.f32.mrb[164].mxu1 }
 0x32d   : > { %4403 = vmatprep.subr.bf16.mxu0 %v12556_v40  ;;  %v1739_v39 = vpop.f32.mrb[165].mxu1  ;;  %v12574_v40 = vld [vmem:[%s16914_s4 + $0x7e4] ss:$16 sps:$4 sm:$0xff]  }
 0x32e   : > { %3146 = vmatpush1.bf16.msra.mxu1 %v12551_v19  ;;  %v1741_v32 = vpop.f32.mrb[166].mxu1  ;;  %v12572_v19 = vld [vmem:[%s16914_s4 + $0x7e0] ss:$16 sps:$4 sm:$0xff]  }
 0x32f   : > { %v14707_v44 = vpack.c.bf16 %v1741_v32, %v1737_v26  ;;  %v1743_v47 = vpop.f32.mrb[167].mxu1  ;;  %v12577_v26 = vld [vmem:[%s16914_s4 + $0x60c] ss:$16 sps:$4 sm:$0xff]  }
 0x330   : > { %4404 = vmatpush1.bf16.msra.mxu0 %v12554_v22  ;;  %v14712_v29 = vpack.c.bf16 %v1743_v47, %v1739_v39 }
 0x331   : > { %3148 = vmatmul.mubr.bf16.vlgmr.msra.gmra.mrb[208].mxu1 %v14119_v5  ;;  %4405 = vmatprep.subr.bf16.mxu0 %v12559_v33 }
 0x332   : > { %3157 = vmatprep.mubr.bf16.mxu1 %v14148_v20  ;;  %v12563_v20 = vld [vmem:[%s16914_s4 + $0x780] ss:$16 sps:$4 sm:$0xff]  }
 0x334   : > { %4406 = vmatpush1.bf16.msra.mxu0 %v12557_v54  ;;  %v1747_v7 = vpop.f32.mrb[168].mxu1  ;;  %v12580_v54 = vld [vmem:[%s16914_s4 + $0x62c] ss:$16 sps:$4 sm:$0xff]  }
 0x335   : > { %4407 = vmatprep.subr.bf16.mxu0 %v12562_v60  ;;  %v1749_v50 = vpop.f32.mrb[169].mxu1  ;;  %v12578_v60 = vld [vmem:[%s16914_s4 + $0x628] ss:$16 sps:$4 sm:$0xff]  }
 0x336   : > { %v1751_v5 = vpop.f32.mrb[170].mxu1 }
 0x337   : > { %v14725_v18 = vpack.c.bf16 %v1751_v5, %v1747_v7  ;;  %v1753_v56 = vpop.f32.mrb[171].mxu1 }
 0x338   : > { %4408 = vmatpush1.bf16.msra.mxu0 %v12560_v61  ;;  %v14730_v58 = vpack.c.bf16 %v1753_v56, %v1749_v50  ;;  %v12581_v56 = vld [vmem:[%s16914_s4 + $0x648] ss:$16 sps:$4 sm:$0xff]  }
 0x339   : > { %3158 = vmatmul.mubr.bf16.gmra.mrb[212].mxu1 %v14143_v17  ;;  %4409 = vmatprep.subr.bf16.mxu0 %v12565_v49 }
 0x33a   : > { %3167 = vmatprep.mubr.bf16.mxu1 %v14172_v30  ;;  %v12569_v30 = vld [vmem:[%s16914_s4 + $0x7c0] ss:$16 sps:$4 sm:$0xff]  }
 0x33c   : > { %4410 = vmatpush1.bf16.msra.mxu0 %v12563_v20  ;;  %v1757_v9 = vpop.f32.mrb[172].mxu1 }
 0x33d   : > { %4411 = vmatprep.subr.bf16.mxu0 %v12568_v4  ;;  %v1759_v10 = vpop.f32.mrb[173].mxu1  ;;  %v12586_v4 = vld [vmem:[%s16914_s4 + $0x66c] ss:$16 sps:$4 sm:$0xff]  }
 0x33e   : > { %v1761_v17 = vpop.f32.mrb[174].mxu1 }
 0x33f   : > { %v14743_v31 = vpack.c.bf16 %v1761_v17, %v1757_v9  ;;  %v1763_v52 = vpop.f32.mrb[175].mxu1 }
 0x340   : > { %4412 = vmatpush1.bf16.msra.mxu0 %v12566_v6  ;;  %v14748_v14 = vpack.c.bf16 %v1763_v52, %v1759_v10  ;;  %v12584_v6 = vld [vmem:[%s16914_s4 + $0x668] ss:$16 sps:$4 sm:$0xff]  }
 0x341   : > { %3168 = vmatmul.mubr.bf16.gmra.mrb[216].mxu1 %v14167_v38  ;;  %4413 = vmatprep.subr.bf16.mxu0 %v12571_v57  ;;  %v12589_v57 = vld [vmem:[%s16914_s4 + $0x68c] ss:$16 sps:$4 sm:$0xff]  }
 0x342   : > { %3177 = vmatprep.mubr.bf16.mxu1 %v14196_v51  ;;  %v12575_v51 = vld [vmem:[%s16914_s4 + $0x608] ss:$16 sps:$4 sm:$0xff]  }
 0x344   : > { %4414 = vmatpush1.bf16.msra.mxu0 %v12569_v30  ;;  %v1767_v22 = vpop.f32.mrb[176].mxu1 }
 0x345   : > { %4415 = vmatprep.subr.bf16.mxu0 %v12574_v40  ;;  %v1769_v33 = vpop.f32.mrb[177].mxu1  ;;  %v12587_v40 = vld [vmem:[%s16914_s4 + $0x688] ss:$16 sps:$4 sm:$0xff]  }
 0x346   : > { %v1771_v38 = vpop.f32.mrb[178].mxu1 }
 0x347   : > { %v14761_v39 = vpack.c.bf16 %v1771_v38, %v1767_v22  ;;  %v1773_v32 = vpop.f32.mrb[179].mxu1  ;;  %v12592_v22 = vld [vmem:[%s16914_s4 + $0x6ac] ss:$16 sps:$4 sm:$0xff]  }
 0x348   : > { %4416 = vmatpush1.bf16.msra.mxu0 %v12572_v19  ;;  %v14766_v47 = vpack.c.bf16 %v1773_v32, %v1769_v33  ;;  %v12595_v38 = vld [vmem:[%s16914_s4 + $0x6cc] ss:$16 sps:$4 sm:$0xff]  }
 0x349   : > { %3178 = vmatmul.mubr.bf16.gmra.mrb[220].mxu1 %v14191_v48  ;;  %4458 = vmatprep.subr.bf16.mxu0 %v12577_v26  ;;  %v12583_v48 = vld [vmem:[%s16914_s4 + $0x64c] ss:$16 sps:$4 sm:$0xff]   ;;  %v12590_v26 = vld [vmem:[%s16914_s4 + $0x6a8] ss:$16 sps:$4 sm:$0xff]  }
 0x34b   : > { %4418 = vmatmul.mubr.bf16.vlgmr.msra.gmra.mrb[16].mxu0 %v14326_v15 }
 0x34c   : > { %4459 = vmatpush1.bf16.msra.mxu0 %v12575_v51  ;;  %4427 = vmatprep.mubr.bf16.mxu0 %v14363_v43  ;;  %v1777_v61 = vpop.f32.mrb[180].mxu1 }
 0x34d   : > { %4460 = vmatprep.subr.bf16.mxu0 %v12580_v54  ;;  %v1779_v7 = vpop.f32.mrb[181].mxu1 }
 0x34e   : > { %v1781_v49 = vpop.f32.mrb[182].mxu1 }
 0x34f   : > { %v14780_v50 = vpack.c.bf16 %v1781_v49, %v1777_v61  ;;  %v1783_v5 = vpop.f32.mrb[183].mxu1  ;;  %v12593_v61 = vld [vmem:[%s16914_s4 + $0x6c8] ss:$16 sps:$4 sm:$0xff]  }
 0x350   : > { %4461 = vmatpush1.bf16.msra.mxu0 %v12578_v60  ;;  %v14785_v20 = vpack.c.bf16 %v1783_v5, %v1779_v7  ;;  %v12598_v7 = vld [vmem:[%s16914_s4 + $0x6ec] ss:$16 sps:$4 sm:$0xff]   ;;  %v12596_v49 = vld [vmem:[%s16914_s4 + $0x6e8] ss:$16 sps:$4 sm:$0xff]  }
 0x351   : > { %4462 = vmatprep.subr.bf16.mxu0 %v12583_v48 }
 0x353   : > { %4428 = vmatmul.mubr.bf16.gmra.mrb[20].mxu0 %v14358_v35 }
 0x354   : > { %4463 = vmatpush1.bf16.msra.mxu0 %v12581_v56  ;;  %4437 = vmatprep.mubr.bf16.mxu0 %v14393_v8  ;;  %v1787_v9 = vpop.f32.mrb[184].mxu1  ;;  %v12601_v56 = vld [vmem:[%s16914_s4 + $0x70c] ss:$16 sps:$4 sm:$0xff]  }
 0x355   : > { %4464 = vmatprep.subr.bf16.mxu0 %v12586_v4  ;;  %v1789_v10 = vpop.f32.mrb[185].mxu1 }
 0x356   : > { %v1791_v17 = vpop.f32.mrb[186].mxu1 }
 0x357   : > { %v14798_v52 = vpack.c.bf16 %v1791_v17, %v1787_v9  ;;  %v1793_v30 = vpop.f32.mrb[187].mxu1  ;;  %v12604_v17 = vld [vmem:[%s16914_s4 + $0x72c] ss:$16 sps:$4 sm:$0xff]  }
 0x358   : > { %4465 = vmatpush1.bf16.msra.mxu0 %v12584_v6  ;;  %v14803_v19 = vpack.c.bf16 %v1793_v30, %v1789_v10  ;;  %v12602_v30 = vld [vmem:[%s16914_s4 + $0x728] ss:$16 sps:$4 sm:$0xff]  }
 0x359   : > { %4466 = vmatprep.subr.bf16.mxu0 %v12589_v57 }
 0x35b   : > { %4438 = vmatmul.mubr.bf16.gmra.mrb[24].mxu0 %v14388_v1 }
 0x35c   : > { %4467 = vmatpush1.bf16.msra.mxu0 %v12587_v40  ;;  %4447 = vmatprep.mubr.bf16.mxu0 %v14423_v27  ;;  %v1797_v33 = vpop.f32.mrb[188].mxu1 }
 0x35d   : > { %4468 = vmatprep.subr.bf16.mxu0 %v12592_v22  ;;  %v1799_v32 = vpop.f32.mrb[189].mxu1  ;;  %v12607_v22 = vld [vmem:[%s16914_s4 + $0x74c] ss:$16 sps:$4 sm:$0xff]  }
 0x35e   : > { %v1801_v51 = vpop.f32.mrb[190].mxu1 }
 0x35f   : > { %v14816_v54 = vpack.c.bf16 %v1801_v51, %v1797_v33  ;;  %v1803_v60 = vpop.f32.mrb[191].mxu1  ;;  %v12605_v51 = vld [vmem:[%s16914_s4 + $0x748] ss:$16 sps:$4 sm:$0xff]  }
 0x360   : > { %4469 = vmatpush1.bf16.msra.mxu0 %v12590_v26  ;;  %v14821_v48 = vpack.c.bf16 %v1803_v60, %v1799_v32 }
 0x361   : > { %4470 = vmatprep.subr.bf16.mxu0 %v12595_v38 }
 0x363   : > { %4448 = vmatmul.mubr.bf16.gmra.mrb[28].mxu0 %v14418_v25 }
 0x364   : > { %4471 = vmatpush1.bf16.msra.mxu0 %v12593_v61  ;;  %4490 = vmatprep.mubr.bf16.mxu0 %v14331_v21  ;;  %v1807_v5 = vpop.f32.mrb[192].mxu1  ;;  %v12599_v21 = vld [vmem:[%s16914_s4 + $0x708] ss:$16 sps:$4 sm:$0xff]   ;;  %v12610_v61 = vld [vmem:[%s16914_s4 + $0x76c] ss:$16 sps:$4 sm:$0xff]  }
 0x365   : > { %4472 = vmatprep.subr.bf16.mxu0 %v12598_v7  ;;  %v1809_v4 = vpop.f32.mrb[193].mxu1  ;;  %v12608_v7 = vld [vmem:[%s16914_s4 + $0x768] ss:$16 sps:$4 sm:$0xff]  }
 0x366   : > { %v1811_v6 = vpop.f32.mrb[194].mxu1 }
 0x367   : > { %v14834_v9 = vpack.c.bf16 %v1811_v6, %v1807_v5  ;;  %v1813_v57 = vpop.f32.mrb[195].mxu1  ;;  %v12613_v5 = vld [vmem:[%s16914_s4 + $0x78c] ss:$16 sps:$4 sm:$0xff]  }
 0x368   : > { %4473 = vmatpush1.bf16.msra.mxu0 %v12596_v49  ;;  %v14839_v10 = vpack.c.bf16 %v1813_v57, %v1809_v4 }
 0x369   : > { %4474 = vmatprep.subr.bf16.mxu0 %v12601_v56 }
 0x36c   : > { %4475 = vmatpush1.bf16.msra.mxu0 %v12599_v21  ;;  %v1817_v40 = vpop.f32.mrb[196].mxu1  ;;  %v12611_v21 = vld [vmem:[%s16914_s4 + $0x788] ss:$16 sps:$4 sm:$0xff]  }
 0x36d   : > { %4476 = vmatprep.subr.bf16.mxu0 %v12604_v17  ;;  %v1819_v26 = vpop.f32.mrb[197].mxu1 }
 0x36e   : > { %v1821_v33 = vpop.f32.mrb[198].mxu1 }
 0x36f   : > { %v14850_v38 = vpack.c.bf16 %v1821_v33, %v1817_v40  ;;  %v1823_v32 = vpop.f32.mrb[199].mxu1  ;;  %v12614_v40 = vld [vmem:[%s16914_s4 + $0x7a8] ss:$16 sps:$4 sm:$0xff]  }
 0x370   : > { %4477 = vmatpush1.bf16.msra.mxu0 %v12602_v30  ;;  %v14855_v60 = vpack.c.bf16 %v1823_v32, %v1819_v26  ;;  %v12616_v30 = vld [vmem:[%s16914_s4 + $0x7ac] ss:$16 sps:$4 sm:$0xff]  }
 0x371   : > { %4478 = vmatprep.subr.bf16.mxu0 %v12607_v22  ;;  %v12619_v26 = vld [vmem:[%s16914_s4 + $0x7cc] ss:$16 sps:$4 sm:$0xff]  }
 0x374   : > { %4479 = vmatpush1.bf16.msra.mxu0 %v12605_v51  ;;  %v1827_v49 = vpop.f32.mrb[200].mxu1 }
 0x375   : > { %4480 = vmatprep.subr.bf16.mxu0 %v12610_v61  ;;  %v1829_v56 = vpop.f32.mrb[201].mxu1 }
 0x376   : > { %v1831_v4 = vpop.f32.mrb[202].mxu1 }
 0x377   : > { %v14866_v6 = vpack.c.bf16 %v1831_v4, %v1827_v49  ;;  %v1833_v57 = vpop.f32.mrb[203].mxu1  ;;  %v12625_v4 = vld [vmem:[%s16914_s4 + $0x804] ss:$16 sps:$4 sm:$0xff]  }
 0x378   : > { %4481 = vmatpush1.bf16.msra.mxu0 %v12608_v7  ;;  %v14871_v17 = vpack.c.bf16 %v1833_v57, %v1829_v56  ;;  %v12617_v7 = vld [vmem:[%s16914_s4 + $0x7c8] ss:$16 sps:$4 sm:$0xff]   ;;  %v12623_v57 = vld [vmem:[%s16914_s4 + $0x800] ss:$16 sps:$4 sm:$0xff]  }
 0x379   : > { %4482 = vmatprep.subr.bf16.mxu0 %v12613_v5  ;;  %v12622_v5 = vld [vmem:[%s16914_s4 + $0x7ec] ss:$16 sps:$4 sm:$0xff]   ;;  %v12620_v56 = vld [vmem:[%s16914_s4 + $0x7e8] ss:$16 sps:$4 sm:$0xff]  }
 0x37c   : > { %4483 = vmatpush1.bf16.msra.mxu0 %v12611_v21  ;;  %v1837_v22 = vpop.f32.mrb[204].mxu1  ;;  %v12628_v21 = vld [vmem:[%s16914_s4 + $0x824] ss:$16 sps:$4 sm:$0xff]  }
 0x37d   : > { %4484 = vmatprep.subr.bf16.mxu0 %v12616_v30  ;;  %v1839_v33 = vpop.f32.mrb[205].mxu1  ;;  %v12626_v30 = vld [vmem:[%s16914_s4 + $0x820] ss:$16 sps:$4 sm:$0xff]  }
 0x37e   : > { %v1841_v32 = vpop.f32.mrb[206].mxu1 }
 0x37f   : > { %v14882_v51 = vpack.c.bf16 %v1841_v32, %v1837_v22  ;;  %v1843_v61 = vpop.f32.mrb[207].mxu1  ;;  %v12629_v22 = vld [vmem:[%s16914_s4 + $0x840] ss:$16 sps:$4 sm:$0xff]   ;;  %v12643_v32 = vld [vmem:[%s16914_s4 + $0x8c4] ss:$16 sps:$4 sm:$0xff]  }
 0x380   : > { %4485 = vmatpush1.bf16.msra.mxu0 %v12614_v40  ;;  %v14887_v49 = vpack.c.bf16 %v1843_v61, %v1839_v33  ;;  %v12631_v40 = vld [vmem:[%s16914_s4 + $0x844] ss:$16 sps:$4 sm:$0xff]   ;;  %v12635_v33 = vld [vmem:[%s16914_s4 + $0x880] ss:$16 sps:$4 sm:$0xff]  }
 0x381   : > { %4486 = vmatprep.subr.bf16.mxu0 %v12619_v26  ;;  %v12637_v26 = vld [vmem:[%s16914_s4 + $0x884] ss:$16 sps:$4 sm:$0xff]   ;;  %v12641_v61 = vld [vmem:[%s16914_s4 + $0x8c0] ss:$16 sps:$4 sm:$0xff]  }
 0x384   : > { %4487 = vmatpush1.bf16.msra.mxu0 %v12617_v7  ;;  %v12649_v7 = vld [vmem:[%s16914_s4 + $0x904] ss:$16 sps:$4 sm:$0xff]  }
 0x385   : > { %4488 = vmatprep.subr.bf16.mxu0 %v12622_v5  ;;  %v12647_v5 = vld [vmem:[%s16914_s4 + $0x900] ss:$16 sps:$4 sm:$0xff]  }
 0x388   : > { %4489 = vmatpush1.bf16.msra.mxu0 %v12620_v56  ;;  %v12650_v56 = vld [vmem:[%s16914_s4 + $0x920] ss:$16 sps:$4 sm:$0xff]  }
 0x389   : > { %5020 = vmatprep.subr.bf16.mxu0 %v12625_v4  ;;  %v12655_v4 = vld [vmem:[%s16914_s4 + $0x944] ss:$16 sps:$4 sm:$0xff]  }
 0x38b   : > { %4491 = vmatmul.mubr.bf16.vlgmr.msra.gmra.mrb[0].mxu0 %v14326_v15  ;;  %v12634_v15 = vld [vmem:[%s16914_s4 + $0x864] ss:$16 sps:$4 sm:$0xff]  }
 0x38c   : > { %4500 = vmatprep.mubr.bf16.mxu0 %v14363_v43  ;;  %5021 = vmatpush1.bf16.msra.mxu0 %v12623_v57  ;;  %v12632_v43 = vld [vmem:[%s16914_s4 + $0x860] ss:$16 sps:$4 sm:$0xff]  }
 0x38d   : > { %5022 = vmatprep.subr.bf16.mxu0 %v12628_v21  ;;  %v12653_v57 = vld [vmem:[%s16914_s4 + $0x940] ss:$16 sps:$4 sm:$0xff]   ;;  %v12658_v21 = vld [vmem:[%s16914_s4 + $0x964] ss:$16 sps:$4 sm:$0xff]  }
 0x390   : > { %5023 = vmatpush1.bf16.msra.mxu0 %v12626_v30  ;;  %v12656_v30 = vld [vmem:[%s16914_s4 + $0x960] ss:$16 sps:$4 sm:$0xff]  }
 0x391   : > { %5024 = vmatprep.subr.bf16.mxu0 %v12631_v40  ;;  %v12661_v40 = vld [vmem:[%s16914_s4 + $0x984] ss:$16 sps:$4 sm:$0xff]  }
 0x393   : > { %4501 = vmatmul.mubr.bf16.gmra.mrb[4].mxu0 %v14358_v35  ;;  %v12640_v35 = vld [vmem:[%s16914_s4 + $0x8a4] ss:$16 sps:$4 sm:$0xff]  }
 0x394   : > { %4510 = vmatprep.mubr.bf16.mxu0 %v14393_v8  ;;  %5025 = vmatpush1.bf16.msra.mxu0 %v12629_v22  ;;  %v12638_v8 = vld [vmem:[%s16914_s4 + $0x8a0] ss:$16 sps:$4 sm:$0xff]  }
 0x395   : > { %5026 = vmatprep.subr.bf16.mxu0 %v12634_v15  ;;  %v12659_v22 = vld [vmem:[%s16914_s4 + $0x980] ss:$16 sps:$4 sm:$0xff]   ;;  %v12664_v15 = vld [vmem:[%s16914_s4 + $0x9a4] ss:$16 sps:$4 sm:$0xff]  }
 0x398   : > { %5027 = vmatpush1.bf16.msra.mxu0 %v12632_v43  ;;  %v12662_v43 = vld [vmem:[%s16914_s4 + $0x9a0] ss:$16 sps:$4 sm:$0xff]  }
 0x399   : > { %5028 = vmatprep.subr.bf16.mxu0 %v12637_v26  ;;  %v12667_v26 = vld [vmem:[%s16914_s4 + $0x9c4] ss:$16 sps:$4 sm:$0xff]  }
 0x39b   : > { %4511 = vmatmul.mubr.bf16.gmra.mrb[8].mxu0 %v14388_v1  ;;  %v12646_v1 = vld [vmem:[%s16914_s4 + $0x8e4] ss:$16 sps:$4 sm:$0xff]  }
 0x39c   : > { %4520 = vmatprep.mubr.bf16.mxu0 %v14423_v27  ;;  %5029 = vmatpush1.bf16.msra.mxu0 %v12635_v33  ;;  %v12644_v27 = vld [vmem:[%s16914_s4 + $0x8e0] ss:$16 sps:$4 sm:$0xff]  }
 0x39d   : > { %5030 = vmatprep.subr.bf16.mxu0 %v12640_v35  ;;  %v12665_v33 = vld [vmem:[%s16914_s4 + $0x9c0] ss:$16 sps:$4 sm:$0xff]   ;;  %v12670_v35 = vld [vmem:[%s16914_s4 + $0x9e4] ss:$16 sps:$4 sm:$0xff]  }
 0x3a0   : > { %5031 = vmatpush1.bf16.msra.mxu0 %v12638_v8 }
 0x3a1   : > { %5032 = vmatprep.subr.bf16.mxu0 %v12643_v32  ;;  %v12668_v32 = vld [vmem:[%s16914_s4 + $0x9e0] ss:$16 sps:$4 sm:$0xff]  }
 0x3a3   : > { %4521 = vmatmul.mubr.bf16.gmra.mrb[12].mxu0 %v14418_v25  ;;  %v12652_v25 = vld [vmem:[%s16914_s4 + $0x924] ss:$16 sps:$4 sm:$0xff]  }
 0x3a4   : > { %5033 = vmatpush1.bf16.msra.mxu0 %v12641_v61  ;;  %5052 = vmatprep.mubr.bf16.mxu0 %v14500_v23 }
 0x3a5   : > { %5034 = vmatprep.subr.bf16.mxu0 %v12646_v1  ;;  %v12673_v1 = vld [vmem:[%s16914_s4 + $0x80c] ss:$16 sps:$4 sm:$0xff]  }
 0x3a8   : > { %5035 = vmatpush1.bf16.msra.mxu0 %v12644_v27 }
 0x3a9   : > { %5036 = vmatprep.subr.bf16.mxu0 %v12649_v7 }
 0x3ac   : > { %5037 = vmatpush1.bf16.msra.mxu0 %v12647_v5  ;;  %v12671_v5 = vld [vmem:[%s16914_s4 + $0x808] ss:$16 sps:$4 sm:$0xff]  }
 0x3ad   : > { %5038 = vmatprep.subr.bf16.mxu0 %v12652_v25  ;;  %v12676_v25 = vld [vmem:[%s16914_s4 + $0x82c] ss:$16 sps:$4 sm:$0xff]  }
 0x3b0   : > { %5039 = vmatpush1.bf16.msra.mxu0 %v12650_v56 }
 0x3b1   : > { %5040 = vmatprep.subr.bf16.mxu0 %v12655_v4  ;;  %v12674_v4 = vld [vmem:[%s16914_s4 + $0x828] ss:$16 sps:$4 sm:$0xff]  }
 0x3b4   : > { %5041 = vmatpush1.bf16.msra.mxu0 %v12653_v57 }
 0x3b5   : > { %5042 = vmatprep.subr.bf16.mxu0 %v12658_v21  ;;  %v12679_v21 = vld [vmem:[%s16914_s4 + $0x84c] ss:$16 sps:$4 sm:$0xff]  }
 0x3b8   : > { %5043 = vmatpush1.bf16.msra.mxu0 %v12656_v30 }
 0x3b9   : > { %5044 = vmatprep.subr.bf16.mxu0 %v12661_v40 }
 0x3bc   : > { %5045 = vmatpush1.bf16.msra.mxu0 %v12659_v22  ;;  %v12677_v22 = vld [vmem:[%s16914_s4 + $0x848] ss:$16 sps:$4 sm:$0xff]  }
 0x3bd   : > { %5046 = vmatprep.subr.bf16.mxu0 %v12664_v15  ;;  %v12682_v15 = vld [vmem:[%s16914_s4 + $0x86c] ss:$16 sps:$4 sm:$0xff]  }
 0x3c0   : > { %5047 = vmatpush1.bf16.msra.mxu0 %v12662_v43 }
 0x3c1   : > { %5048 = vmatprep.subr.bf16.mxu0 %v12667_v26  ;;  %v12680_v26 = vld [vmem:[%s16914_s4 + $0x868] ss:$16 sps:$4 sm:$0xff]  }
 0x3c4   : > { %v14996_v8 = vpop.f32.mrb[224].mxu1  ;;  %5049 = vmatpush1.bf16.msra.mxu0 %v12665_v33 }
 0x3c5   : > { %v15001_v61 = vpop.f32.mrb[225].mxu1  ;;  %5050 = vmatprep.subr.bf16.mxu0 %v12670_v35  ;;  %v12685_v35 = vld [vmem:[%s16914_s4 + $0x88c] ss:$16 sps:$4 sm:$0xff]  }
 0x3c6   : > { %v15006_v27 = vpop.f32.mrb[226].mxu1 }
 0x3c7   : > { %v15008_v7 = vpop.f32.mrb[227].mxu1 }
 0x3c8   : > { %5051 = vmatpush1.bf16.msra.mxu0 %v12668_v32 }
 0x3c9   : > { %5093 = vmatprep.subr.bf16.mxu0 %v12673_v1 }
 0x3cb   : > { %5053 = vmatmul.mubr.bf16.vlgmr.msra.gmra.mrb[16].mxu0 %v14495_v16 }
 0x3cc   : > { %v15017_v56 = vpop.f32.mrb[228].mxu1  ;;  %5094 = vmatpush1.bf16.msra.mxu0 %v12671_v5  ;;  %5062 = vmatprep.mubr.bf16.mxu0 %v14518_v45  ;;  %v12683_v5 = vld [vmem:[%s16914_s4 + $0x888] ss:$16 sps:$4 sm:$0xff]  }
 0x3cd   : > { %v15023_v57 = vpop.f32.mrb[229].mxu1  ;;  %5095 = vmatprep.subr.bf16.mxu0 %v12676_v25  ;;  %v12688_v25 = vld [vmem:[%s16914_s4 + $0x8ac] ss:$16 sps:$4 sm:$0xff]  }
 0x3ce   : > { %v15028_v30 = vpop.f32.mrb[230].mxu1 }
 0x3cf   : > { %16933 = vst [vmem:[#allocation14_spill] sm:$0xff] %v15028_v30  ;;  %v15030_v40 = vpop.f32.mrb[231].mxu1 }
 0x3d0   : > { %16934 = vst [vmem:[#allocation15_spill] sm:$0xff] %v15030_v40  ;;  %5096 = vmatpush1.bf16.msra.mxu0 %v12674_v4 }
 0x3d1   : > { %5097 = vmatprep.subr.bf16.mxu0 %v12679_v21  ;;  %v12686_v21 = vld [vmem:[%s16914_s4 + $0x8a8] ss:$16 sps:$4 sm:$0xff]  }
 0x3d3   : > { %5063 = vmatmul.mubr.bf16.gmra.mrb[20].mxu0 %v14513_v41 }
 0x3d4   : > { %v15039_v43 = vpop.f32.mrb[232].mxu1  ;;  %5098 = vmatpush1.bf16.msra.mxu0 %v12677_v22  ;;  %5072 = vmatprep.mubr.bf16.mxu0 %v14534_v59 }
 0x3d5   : > { %16935 = vst [vmem:[#allocation16_spill] sm:$0xff] %v15039_v43  ;;  %v15045_v33 = vpop.f32.mrb[233].mxu1  ;;  %5099 = vmatprep.subr.bf16.mxu0 %v12682_v15  ;;  %v12691_v15 = vld [vmem:[%s16914_s4 + $0x8cc] ss:$16 sps:$4 sm:$0xff]  }
 0x3d6   : > { %16936 = vst [vmem:[#allocation17_spill] sm:$0xff] %v15045_v33  ;;  %v15050_v32 = vpop.f32.mrb[234].mxu1 }
 0x3d7   : > { %16937 = vst [vmem:[#allocation18_spill] sm:$0xff] %v15050_v32  ;;  %v15052_v1 = vpop.f32.mrb[235].mxu1 }
 0x3d8   : > { %16938 = vst [vmem:[#allocation19_spill] sm:$0xff] %v15052_v1  ;;  %5100 = vmatpush1.bf16.msra.mxu0 %v12680_v26 }
 0x3d9   : > { %5101 = vmatprep.subr.bf16.mxu0 %v12685_v35 }
 0x3db   : > { %5073 = vmatmul.mubr.bf16.gmra.mrb[24].mxu0 %v14529_v55 }
 0x3dc   : > { %v15061_v4 = vpop.f32.mrb[236].mxu1  ;;  %5102 = vmatpush1.bf16.msra.mxu0 %v12683_v5  ;;  %5082 = vmatprep.mubr.bf16.mxu0 %v14552_v12  ;;  %v12689_v5 = vld [vmem:[%s16914_s4 + $0x8c8] ss:$16 sps:$4 sm:$0xff]  }
 0x3dd   : > { %16939 = vst [vmem:[#allocation20_spill] sm:$0xff] %v15061_v4  ;;  %v15067_v22 = vpop.f32.mrb[237].mxu1  ;;  %5103 = vmatprep.subr.bf16.mxu0 %v12688_v25  ;;  %v12692_v25 = vld [vmem:[%s16914_s4 + $0x8e8] ss:$16 sps:$4 sm:$0xff]  }
 0x3de   : > { %16940 = vst [vmem:[#allocation21_spill] sm:$0xff] %v15067_v22  ;;  %v15072_v26 = vpop.f32.mrb[238].mxu1  ;;  %v12724_v22 = vld [vmem:[%s16914_s4 + $0xa24] ss:$16 sps:$4 sm:$0xff]  }
 0x3df   : > { %16941 = vst [vmem:[#allocation22_spill] sm:$0xff] %v15072_v26  ;;  %v15074_v35 = vpop.f32.mrb[239].mxu1 }
 0x3e0   : > { %16942 = vst [vmem:[#allocation23_spill] sm:$0xff] %v15074_v35  ;;  %5104 = vmatpush1.bf16.msra.mxu0 %v12686_v21  ;;  %v12697_v21 = vld [vmem:[%s16914_s4 + $0x90c] ss:$16 sps:$4 sm:$0xff]  }
 0x3e1   : > { %5105 = vmatprep.subr.bf16.mxu0 %v12691_v15  ;;  %v12695_v15 = vld [vmem:[%s16914_s4 + $0x908] ss:$16 sps:$4 sm:$0xff]  }
 0x3e3   : > { %5083 = vmatmul.mubr.bf16.gmra.mrb[28].mxu0 %v14547_v11 }
 0x3e4   : > { %5106 = vmatpush1.bf16.msra.mxu0 %v12689_v5  ;;  %5125 = vmatprep.mubr.bf16.mxu0 %v14500_v23  ;;  %v12700_v5 = vld [vmem:[%s16914_s4 + $0x92c] ss:$16 sps:$4 sm:$0xff]   ;;  %v12698_v23 = vld [vmem:[%s16914_s4 + $0x928] ss:$16 sps:$4 sm:$0xff]  }
 0x3e5   : > { %5107 = vmatprep.subr.bf16.mxu0 %v12694_v2  ;;  %v12703_v2 = vld [vmem:[%s16914_s4 + $0x94c] ss:$16 sps:$4 sm:$0xff]  }
 0x3e8   : > { %5108 = vmatpush1.bf16.msra.mxu0 %v12692_v25  ;;  %v12701_v25 = vld [vmem:[%s16914_s4 + $0x948] ss:$16 sps:$4 sm:$0xff]  }
 0x3e9   : > { %5109 = vmatprep.subr.bf16.mxu0 %v12697_v21  ;;  %v12706_v21 = vld [vmem:[%s16914_s4 + $0x96c] ss:$16 sps:$4 sm:$0xff]  }
 0x3ec   : > { %5110 = vmatpush1.bf16.msra.mxu0 %v12695_v15  ;;  %v12704_v15 = vld [vmem:[%s16914_s4 + $0x968] ss:$16 sps:$4 sm:$0xff]  }
 0x3ed   : > { %5111 = vmatprep.subr.bf16.mxu0 %v12700_v5  ;;  %v12709_v5 = vld [vmem:[%s16914_s4 + $0x98c] ss:$16 sps:$4 sm:$0xff]  }
 0x3f0   : > { %5112 = vmatpush1.bf16.msra.mxu0 %v12698_v23  ;;  %v12707_v23 = vld [vmem:[%s16914_s4 + $0x988] ss:$16 sps:$4 sm:$0xff]  }
 0x3f1   : > { %5113 = vmatprep.subr.bf16.mxu0 %v12703_v2  ;;  %v12712_v2 = vld [vmem:[%s16914_s4 + $0x9ac] ss:$16 sps:$4 sm:$0xff]  }
 0x3f4   : > { %5114 = vmatpush1.bf16.msra.mxu0 %v12701_v25  ;;  %v12710_v25 = vld [vmem:[%s16914_s4 + $0x9a8] ss:$16 sps:$4 sm:$0xff]  }
 0x3f5   : > { %5115 = vmatprep.subr.bf16.mxu0 %v12706_v21  ;;  %v12715_v21 = vld [vmem:[%s16914_s4 + $0x9cc] ss:$16 sps:$4 sm:$0xff]  }
 0x3f8   : > { %5116 = vmatpush1.bf16.msra.mxu0 %v12704_v15  ;;  %v12713_v15 = vld [vmem:[%s16914_s4 + $0x9c8] ss:$16 sps:$4 sm:$0xff]  }
 0x3f9   : > { %5117 = vmatprep.subr.bf16.mxu0 %v12709_v5  ;;  %v12718_v5 = vld [vmem:[%s16914_s4 + $0x9ec] ss:$16 sps:$4 sm:$0xff]  }
 0x3fc   : > { %5118 = vmatpush1.bf16.msra.mxu0 %v12707_v23 }
 0x3fd   : > { %5119 = vmatprep.subr.bf16.mxu0 %v12712_v2  ;;  %v12716_v2 = vld [vmem:[%s16914_s4 + $0x9e8] ss:$16 sps:$4 sm:$0xff]  }
 0x400   : > { %5120 = vmatpush1.bf16.msra.mxu0 %v12710_v25  ;;  %v12721_v25 = vld [vmem:[%s16914_s4 + $0xa04] ss:$16 sps:$4 sm:$0xff]  }
 0x401   : > { %5121 = vmatprep.subr.bf16.mxu0 %v12715_v21 }
 0x404   : > { %v15132_v23 = vpop.f32.mrb[208].mxu1  ;;  %5122 = vmatpush1.bf16.msra.mxu0 %v12713_v15  ;;  %v12719_v15 = vld [vmem:[%s16914_s4 + $0xa00] ss:$16 sps:$4 sm:$0xff]  }
 0x405   : > { %v15137_v35 = vpop.f32.mrb[209].mxu1  ;;  %5123 = vmatprep.subr.bf16.mxu0 %v12718_v5 }
 0x406   : > { %v15142_v26 = vpop.f32.mrb[210].mxu1 }
 0x407   : > { %v15144_v21 = vpop.f32.mrb[211].mxu1 }
 0x408   : > { %5124 = vmatpush1.bf16.msra.mxu0 %v12716_v2  ;;  %v12722_v2 = vld [vmem:[%s16914_s4 + $0xa20] ss:$16 sps:$4 sm:$0xff]  }
 0x409   : > { %5655 = vmatprep.subr.bf16.mxu0 %v12721_v25  ;;  %v12727_v25 = vld [vmem:[%s16914_s4 + $0xa44] ss:$16 sps:$4 sm:$0xff]  }
 0x40b   : > { %5126 = vmatmul.mubr.bf16.vlgmr.msra.gmra.mrb[0].mxu0 %v14495_v16  ;;  %v12725_v16 = vld [vmem:[%s16914_s4 + $0xa40] ss:$16 sps:$4 sm:$0xff]  }
 0x40c   : > { %v15153_v5 = vpop.f32.mrb[212].mxu1  ;;  %5135 = vmatprep.mubr.bf16.mxu0 %v14518_v45  ;;  %5656 = vmatpush1.bf16.msra.mxu0 %v12719_v15  ;;  %v12730_v45 = vld [vmem:[%s16914_s4 + $0xa64] ss:$16 sps:$4 sm:$0xff]   ;;  %v12728_v15 = vld [vmem:[%s16914_s4 + $0xa60] ss:$16 sps:$4 sm:$0xff]  }
 0x40d   : > { %v15159_v4 = vpop.f32.mrb[213].mxu1  ;;  %5657 = vmatprep.subr.bf16.mxu0 %v12724_v22 }
 0x40e   : > { %v15164_v1 = vpop.f32.mrb[214].mxu1 }
 0x40f   : > { %v15166_v32 = vpop.f32.mrb[215].mxu1 }
 0x410   : > { %5658 = vmatpush1.bf16.msra.mxu0 %v12722_v2 }
 0x411   : > { %5659 = vmatprep.subr.bf16.mxu0 %v12727_v25  ;;  %v12733_v25 = vld [vmem:[%s16914_s4 + $0xa84] ss:$16 sps:$4 sm:$0xff]  }
 0x413   : > { %5136 = vmatmul.mubr.bf16.gmra.mrb[4].mxu0 %v14513_v41  ;;  %v12731_v41 = vld [vmem:[%s16914_s4 + $0xa80] ss:$16 sps:$4 sm:$0xff]  }
 0x414   : > { %v15175_v22 = vpop.f32.mrb[216].mxu1  ;;  %5145 = vmatprep.mubr.bf16.mxu0 %v14534_v59  ;;  %5660 = vmatpush1.bf16.msra.mxu0 %v12725_v16  ;;  %v12736_v59 = vld [vmem:[%s16914_s4 + $0xaa4] ss:$16 sps:$4 sm:$0xff]  }
 0x415   : > { %v15181_v2 = vpop.f32.mrb[217].mxu1  ;;  %5661 = vmatprep.subr.bf16.mxu0 %v12730_v45  ;;  %v12734_v45 = vld [vmem:[%s16914_s4 + $0xaa0] ss:$16 sps:$4 sm:$0xff]  }
 0x416   : > { %v15186_v33 = vpop.f32.mrb[218].mxu1 }
 0x417   : > { %v15188_v43 = vpop.f32.mrb[219].mxu1 }
 0x418   : > { %5662 = vmatpush1.bf16.msra.mxu0 %v12728_v15 }
 0x419   : > { %5663 = vmatprep.subr.bf16.mxu0 %v12733_v25  ;;  %v12739_v25 = vld [vmem:[%s16914_s4 + $0xac4] ss:$16 sps:$4 sm:$0xff]  }
 0x41b   : > { %5146 = vmatmul.mubr.bf16.gmra.mrb[8].mxu0 %v14529_v55  ;;  %v12737_v55 = vld [vmem:[%s16914_s4 + $0xac0] ss:$16 sps:$4 sm:$0xff]  }
 0x41c   : > { %v15197_v16 = vpop.f32.mrb[220].mxu1  ;;  %5155 = vmatprep.mubr.bf16.mxu0 %v14552_v12  ;;  %5664 = vmatpush1.bf16.msra.mxu0 %v12731_v41  ;;  %v12742_v12 = vld [vmem:[%s16914_s4 + $0xae4] ss:$16 sps:$4 sm:$0xff]   ;;  %v12740_v41 = vld [vmem:[%s16914_s4 + $0xae0] ss:$16 sps:$4 sm:$0xff]  }
 0x41d   : > { %v15203_v15 = vpop.f32.mrb[221].mxu1  ;;  %5665 = vmatprep.subr.bf16.mxu0 %v12736_v59  ;;  %v12745_v59 = vld [vmem:[%s16914_s4 + $0xb04] ss:$16 sps:$4 sm:$0xff]  }
 0x41e   : > { %v15208_v40 = vpop.f32.mrb[222].mxu1 }
 0x41f   : > { %v15210_v30 = vpop.f32.mrb[223].mxu1 }
 0x420   : > { %5666 = vmatpush1.bf16.msra.mxu0 %v12734_v45  ;;  %v12743_v45 = vld [vmem:[%s16914_s4 + $0xb00] ss:$16 sps:$4 sm:$0xff]  }
 0x421   : > { %5667 = vmatprep.subr.bf16.mxu0 %v12739_v25  ;;  %v12746_v25 = vld [vmem:[%s16914_s4 + $0xb20] ss:$16 sps:$4 sm:$0xff]  }
 0x423   : > { %5156 = vmatmul.mubr.bf16.gmra.mrb[12].mxu0 %v14547_v11  ;;  %v12748_v11 = vld [vmem:[%s16914_s4 + $0xb24] ss:$16 sps:$4 sm:$0xff]  }
 0x424   : > { %5668 = vmatpush1.bf16.msra.mxu0 %v12737_v55  ;;  %5687 = vmatprep.mubr.bf16.mxu0 %v14571_v42  ;;  %v12751_v55 = vld [vmem:[%s16914_s4 + $0xb44] ss:$16 sps:$4 sm:$0xff]  }
 0x425   : > { %5669 = vmatprep.subr.bf16.mxu0 %v12742_v12  ;;  %v12749_v12 = vld [vmem:[%s16914_s4 + $0xb40] ss:$16 sps:$4 sm:$0xff]  }
 0x428   : > { %5670 = vmatpush1.bf16.msra.mxu0 %v12740_v41  ;;  %v12754_v41 = vld [vmem:[%s16914_s4 + $0xb64] ss:$16 sps:$4 sm:$0xff]  }
 0x429   : > { %5671 = vmatprep.subr.bf16.mxu0 %v12745_v59  ;;  %v12752_v59 = vld [vmem:[%s16914_s4 + $0xb60] ss:$16 sps:$4 sm:$0xff]  }
 0x42c   : > { %5672 = vmatpush1.bf16.msra.mxu0 %v12743_v45  ;;  %v12757_v45 = vld [vmem:[%s16914_s4 + $0xb84] ss:$16 sps:$4 sm:$0xff]  }
 0x42d   : > { %5673 = vmatprep.subr.bf16.mxu0 %v12748_v11  ;;  %v12755_v11 = vld [vmem:[%s16914_s4 + $0xb80] ss:$16 sps:$4 sm:$0xff]  }
 0x430   : > { %5674 = vmatpush1.bf16.msra.mxu0 %v12746_v25  ;;  %v12760_v25 = vld [vmem:[%s16914_s4 + $0xba4] ss:$16 sps:$4 sm:$0xff]  }
 0x431   : > { %5675 = vmatprep.subr.bf16.mxu0 %v12751_v55  ;;  %v12758_v55 = vld [vmem:[%s16914_s4 + $0xba0] ss:$16 sps:$4 sm:$0xff]  }
 0x434   : > { %5676 = vmatpush1.bf16.msra.mxu0 %v12749_v12  ;;  %v12763_v12 = vld [vmem:[%s16914_s4 + $0xbc4] ss:$16 sps:$4 sm:$0xff]  }
 0x435   : > { %5677 = vmatprep.subr.bf16.mxu0 %v12754_v41  ;;  %v12761_v41 = vld [vmem:[%s16914_s4 + $0xbc0] ss:$16 sps:$4 sm:$0xff]  }
 0x438   : > { %5678 = vmatpush1.bf16.msra.mxu0 %v12752_v59  ;;  %v12766_v59 = vld [vmem:[%s16914_s4 + $0xbe4] ss:$16 sps:$4 sm:$0xff]  }
 0x439   : > { %5679 = vmatprep.subr.bf16.mxu0 %v12757_v45  ;;  %v12764_v45 = vld [vmem:[%s16914_s4 + $0xbe0] ss:$16 sps:$4 sm:$0xff]  }
 0x43c   : > { %5680 = vmatpush1.bf16.msra.mxu0 %v12755_v11  ;;  %v12769_v11 = vld [vmem:[%s16914_s4 + $0xa0c] ss:$16 sps:$4 sm:$0xff]  }
 0x43d   : > { %5681 = vmatprep.subr.bf16.mxu0 %v12760_v25  ;;  %v12767_v25 = vld [vmem:[%s16914_s4 + $0xa08] ss:$16 sps:$4 sm:$0xff]  }
 0x440   : > { %5682 = vmatpush1.bf16.msra.mxu0 %v12758_v55  ;;  %v12772_v55 = vld [vmem:[%s16914_s4 + $0xa2c] ss:$16 sps:$4 sm:$0xff]  }
 0x441   : > { %5683 = vmatprep.subr.bf16.mxu0 %v12763_v12  ;;  %v12770_v12 = vld [vmem:[%s16914_s4 + $0xa28] ss:$16 sps:$4 sm:$0xff]  }
 0x444   : > { %5684 = vmatpush1.bf16.msra.mxu0 %v12761_v41  ;;  %v12775_v41 = vld [vmem:[%s16914_s4 + $0xa4c] ss:$16 sps:$4 sm:$0xff]  }
 0x445   : > { %5685 = vmatprep.subr.bf16.mxu0 %v12766_v59  ;;  %v12773_v59 = vld [vmem:[%s16914_s4 + $0xa48] ss:$16 sps:$4 sm:$0xff]  }
 0x448   : > { %5686 = vmatpush1.bf16.msra.mxu0 %v12764_v45  ;;  %v12778_v45 = vld [vmem:[%s16914_s4 + $0xa6c] ss:$16 sps:$4 sm:$0xff]  }
 0x449   : > { %5728 = vmatprep.subr.bf16.mxu0 %v12769_v11  ;;  %v12776_v11 = vld [vmem:[%s16914_s4 + $0xa68] ss:$16 sps:$4 sm:$0xff]  }
 0x44b   : > { %5688 = vmatmul.mubr.bf16.vlgmr.msra.gmra.mrb[16].mxu0 %v14566_v28 }
 0x44c   : > { %5729 = vmatpush1.bf16.msra.mxu0 %v12767_v25  ;;  %5697 = vmatprep.mubr.bf16.mxu0 %v14603_v0  ;;  %v12781_v25 = vld [vmem:[%s16914_s4 + $0xa8c] ss:$16 sps:$4 sm:$0xff]  }
 0x44d   : > { %5730 = vmatprep.subr.bf16.mxu0 %v12772_v55  ;;  %v12779_v55 = vld [vmem:[%s16914_s4 + $0xa88] ss:$16 sps:$4 sm:$0xff]  }
 0x450   : > { %5731 = vmatpush1.bf16.msra.mxu0 %v12770_v12  ;;  %v12784_v12 = vld [vmem:[%s16914_s4 + $0xaac] ss:$16 sps:$4 sm:$0xff]  }
 0x451   : > { %5732 = vmatprep.subr.bf16.mxu0 %v12775_v41  ;;  %v12782_v41 = vld [vmem:[%s16914_s4 + $0xaa8] ss:$16 sps:$4 sm:$0xff]  }
 0x453   : > { %5698 = vmatmul.mubr.bf16.gmra.mrb[20].mxu0 %v14598_v53 }
 0x454   : > { %5733 = vmatpush1.bf16.msra.mxu0 %v12773_v59  ;;  %5707 = vmatprep.mubr.bf16.mxu0 %v14633_v24  ;;  %v12787_v59 = vld [vmem:[%s16914_s4 + $0xacc] ss:$16 sps:$4 sm:$0xff]  }
 0x455   : > { %5734 = vmatprep.subr.bf16.mxu0 %v12778_v45  ;;  %v12785_v45 = vld [vmem:[%s16914_s4 + $0xac8] ss:$16 sps:$4 sm:$0xff]  }
 0x458   : > { %5735 = vmatpush1.bf16.msra.mxu0 %v12776_v11  ;;  %v12790_v11 = vld [vmem:[%s16914_s4 + $0xaec] ss:$16 sps:$4 sm:$0xff]  }
 0x459   : > { %5736 = vmatprep.subr.bf16.mxu0 %v12781_v25  ;;  %v12788_v25 = vld [vmem:[%s16914_s4 + $0xae8] ss:$16 sps:$4 sm:$0xff]  }
 0x45b   : > { %5708 = vmatmul.mubr.bf16.gmra.mrb[24].mxu0 %v14628_v13 }
 0x45c   : > { %5737 = vmatpush1.bf16.msra.mxu0 %v12779_v55  ;;  %5717 = vmatprep.mubr.bf16.mxu0 %v14663_v63  ;;  %v12793_v55 = vld [vmem:[%s16914_s4 + $0xb0c] ss:$16 sps:$4 sm:$0xff]  }
 0x45d   : > { %5738 = vmatprep.subr.bf16.mxu0 %v12784_v12  ;;  %v12791_v12 = vld [vmem:[%s16914_s4 + $0xb08] ss:$16 sps:$4 sm:$0xff]  }
 0x460   : > { %5739 = vmatpush1.bf16.msra.mxu0 %v12782_v41  ;;  %v12796_v41 = vld [vmem:[%s16914_s4 + $0xb2c] ss:$16 sps:$4 sm:$0xff]  }
 0x461   : > { %5740 = vmatprep.subr.bf16.mxu0 %v12787_v59  ;;  %v12799_v59 = vld [vmem:[%s16914_s4 + $0xb4c] ss:$16 sps:$4 sm:$0xff]  }
 0x463   : > { %5718 = vmatmul.mubr.bf16.gmra.mrb[28].mxu0 %v14658_v3 }
 0x464   : > { %5741 = vmatpush1.bf16.msra.mxu0 %v12785_v45  ;;  %5760 = vmatprep.mubr.bf16.mxu0 %v14571_v42  ;;  %v12794_v42 = vld [vmem:[%s16914_s4 + $0xb28] ss:$16 sps:$4 sm:$0xff]  }
 0x465   : > { %5742 = vmatprep.subr.bf16.mxu0 %v12790_v11  ;;  %v12797_v45 = vld [vmem:[%s16914_s4 + $0xb48] ss:$16 sps:$4 sm:$0xff]   ;;  %v12802_v11 = vld [vmem:[%s16914_s4 + $0xb6c] ss:$16 sps:$4 sm:$0xff]  }
 0x468   : > { %5743 = vmatpush1.bf16.msra.mxu0 %v12788_v25  ;;  %v12800_v25 = vld [vmem:[%s16914_s4 + $0xb68] ss:$16 sps:$4 sm:$0xff]  }
 0x469   : > { %5744 = vmatprep.subr.bf16.mxu0 %v12793_v55  ;;  %v12805_v55 = vld [vmem:[%s16914_s4 + $0xb8c] ss:$16 sps:$4 sm:$0xff]  }
 0x46c   : > { %5745 = vmatpush1.bf16.msra.mxu0 %v12791_v12  ;;  %v12803_v12 = vld [vmem:[%s16914_s4 + $0xb88] ss:$16 sps:$4 sm:$0xff]  }
 0x46d   : > { %5746 = vmatprep.subr.bf16.mxu0 %v12796_v41  ;;  %v12808_v41 = vld [vmem:[%s16914_s4 + $0xbac] ss:$16 sps:$4 sm:$0xff]  }
 0x470   : > { %5747 = vmatpush1.bf16.msra.mxu0 %v12794_v42  ;;  %v12806_v42 = vld [vmem:[%s16914_s4 + $0xba8] ss:$16 sps:$4 sm:$0xff]  }
 0x471   : > { %5748 = vmatprep.subr.bf16.mxu0 %v12799_v59  ;;  %v12811_v59 = vld [vmem:[%s16914_s4 + $0xbcc] ss:$16 sps:$4 sm:$0xff]  }
 0x474   : > { %5749 = vmatpush1.bf16.msra.mxu0 %v12797_v45  ;;  %v12809_v45 = vld [vmem:[%s16914_s4 + $0xbc8] ss:$16 sps:$4 sm:$0xff]  }
 0x475   : > { %5750 = vmatprep.subr.bf16.mxu0 %v12802_v11  ;;  %v12814_v11 = vld [vmem:[%s16914_s4 + $0xbec] ss:$16 sps:$4 sm:$0xff]  }
 0x478   : > { %5751 = vmatpush1.bf16.msra.mxu0 %v12800_v25  ;;  %v12812_v25 = vld [vmem:[%s16914_s4 + $0xbe8] ss:$16 sps:$4 sm:$0xff]  }
 0x479   : > { %5752 = vmatprep.subr.bf16.mxu0 %v12805_v55  ;;  %v12817_v55 = vld [vmem:[%s16914_s4 + $0xc04] ss:$16 sps:$4 sm:$0xff]  }
 0x47c   : > { %5753 = vmatpush1.bf16.msra.mxu0 %v12803_v12  ;;  %v12815_v12 = vld [vmem:[%s16914_s4 + $0xc00] ss:$16 sps:$4 sm:$0xff]  }
 0x47d   : > { %5754 = vmatprep.subr.bf16.mxu0 %v12808_v41  ;;  %v12820_v41 = vld [vmem:[%s16914_s4 + $0xc24] ss:$16 sps:$4 sm:$0xff]  }
 0x480   : > { %5755 = vmatpush1.bf16.msra.mxu0 %v12806_v42  ;;  %v12818_v42 = vld [vmem:[%s16914_s4 + $0xc20] ss:$16 sps:$4 sm:$0xff]  }
 0x481   : > { %5756 = vmatprep.subr.bf16.mxu0 %v12811_v59  ;;  %v12823_v59 = vld [vmem:[%s16914_s4 + $0xc44] ss:$16 sps:$4 sm:$0xff]  }
 0x484   : > { %5757 = vmatpush1.bf16.msra.mxu0 %v12809_v45  ;;  %v12821_v45 = vld [vmem:[%s16914_s4 + $0xc40] ss:$16 sps:$4 sm:$0xff]  }
 0x485   : > { %5758 = vmatprep.subr.bf16.mxu0 %v12814_v11  ;;  %v12829_v11 = vld [vmem:[%s16914_s4 + $0xc84] ss:$16 sps:$4 sm:$0xff]  }
 0x488   : > { %5759 = vmatpush1.bf16.msra.mxu0 %v12812_v25  ;;  %v12827_v25 = vld [vmem:[%s16914_s4 + $0xc80] ss:$16 sps:$4 sm:$0xff]  }
 0x489   : > { %6290 = vmatprep.subr.bf16.mxu0 %v12817_v55  ;;  %v12835_v55 = vld [vmem:[%s16914_s4 + $0xcc4] ss:$16 sps:$4 sm:$0xff]  }
 0x48b   : > { %5761 = vmatmul.mubr.bf16.vlgmr.msra.gmra.mrb[0].mxu0 %v14566_v28  ;;  %v12826_v28 = vld [vmem:[%s16914_s4 + $0xc64] ss:$16 sps:$4 sm:$0xff]  }
 0x48c   : > { %5770 = vmatprep.mubr.bf16.mxu0 %v14603_v0  ;;  %6291 = vmatpush1.bf16.msra.mxu0 %v12815_v12  ;;  %v12824_v0 = vld [vmem:[%s16914_s4 + $0xc60] ss:$16 sps:$4 sm:$0xff]  }
 0x48d   : > { %6292 = vmatprep.subr.bf16.mxu0 %v12820_v41  ;;  %v12833_v12 = vld [vmem:[%s16914_s4 + $0xcc0] ss:$16 sps:$4 sm:$0xff]   ;;  %v12841_v41 = vld [vmem:[%s16914_s4 + $0xd04] ss:$16 sps:$4 sm:$0xff]  }
 0x490   : > { %6293 = vmatpush1.bf16.msra.mxu0 %v12818_v42  ;;  %v12839_v42 = vld [vmem:[%s16914_s4 + $0xd00] ss:$16 sps:$4 sm:$0xff]  }
 0x491   : > { %6294 = vmatprep.subr.bf16.mxu0 %v12823_v59  ;;  %v12842_v59 = vld [vmem:[%s16914_s4 + $0xd20] ss:$16 sps:$4 sm:$0xff]  }
 0x493   : > { %5771 = vmatmul.mubr.bf16.gmra.mrb[4].mxu0 %v14598_v53  ;;  %v12832_v53 = vld [vmem:[%s16914_s4 + $0xca4] ss:$16 sps:$4 sm:$0xff]  }
 0x494   : > { %5780 = vmatprep.mubr.bf16.mxu0 %v14633_v24  ;;  %6295 = vmatpush1.bf16.msra.mxu0 %v12821_v45  ;;  %v12830_v24 = vld [vmem:[%s16914_s4 + $0xca0] ss:$16 sps:$4 sm:$0xff]   ;;  %v12847_v45 = vld [vmem:[%s16914_s4 + $0xd44] ss:$16 sps:$4 sm:$0xff]  }
 0x495   : > { %6296 = vmatprep.subr.bf16.mxu0 %v12826_v28  ;;  %v12845_v28 = vld [vmem:[%s16914_s4 + $0xd40] ss:$16 sps:$4 sm:$0xff]  }
 0x498   : > { %6297 = vmatpush1.bf16.msra.mxu0 %v12824_v0  ;;  %v12850_v0 = vld [vmem:[%s16914_s4 + $0xd64] ss:$16 sps:$4 sm:$0xff]  }
 0x499   : > { %6298 = vmatprep.subr.bf16.mxu0 %v12829_v11  ;;  %v12848_v11 = vld [vmem:[%s16914_s4 + $0xd60] ss:$16 sps:$4 sm:$0xff]  }
 0x49b   : > { %5781 = vmatmul.mubr.bf16.gmra.mrb[8].mxu0 %v14628_v13  ;;  %v12838_v13 = vld [vmem:[%s16914_s4 + $0xce4] ss:$16 sps:$4 sm:$0xff]  }
 0x49c   : > { %5790 = vmatprep.mubr.bf16.mxu0 %v14663_v63  ;;  %6299 = vmatpush1.bf16.msra.mxu0 %v12827_v25  ;;  %v12836_v63 = vld [vmem:[%s16914_s4 + $0xce0] ss:$16 sps:$4 sm:$0xff]   ;;  %v12853_v25 = vld [vmem:[%s16914_s4 + $0xd84] ss:$16 sps:$4 sm:$0xff]  }
 0x49d   : > { %6300 = vmatprep.subr.bf16.mxu0 %v12832_v53  ;;  %v12851_v53 = vld [vmem:[%s16914_s4 + $0xd80] ss:$16 sps:$4 sm:$0xff]  }
 0x4a0   : > { %6301 = vmatpush1.bf16.msra.mxu0 %v12830_v24  ;;  %v12856_v24 = vld [vmem:[%s16914_s4 + $0xda4] ss:$16 sps:$4 sm:$0xff]  }
 0x4a1   : > { %6302 = vmatprep.subr.bf16.mxu0 %v12835_v55  ;;  %v12854_v55 = vld [vmem:[%s16914_s4 + $0xda0] ss:$16 sps:$4 sm:$0xff]  }
 0x4a3   : > { %5791 = vmatmul.mubr.bf16.gmra.mrb[12].mxu0 %v14658_v3  ;;  %v12844_v3 = vld [vmem:[%s16914_s4 + $0xd24] ss:$16 sps:$4 sm:$0xff]  }
 0x4a4   : > { %6303 = vmatpush1.bf16.msra.mxu0 %v12833_v12  ;;  %6322 = vmatprep.mubr.bf16.mxu0 %v14693_v62  ;;  %v12859_v12 = vld [vmem:[%s16914_s4 + $0xdc4] ss:$16 sps:$4 sm:$0xff]  }
 0x4a5   : > { %6304 = vmatprep.subr.bf16.mxu0 %v12838_v13  ;;  %v12857_v13 = vld [vmem:[%s16914_s4 + $0xdc0] ss:$16 sps:$4 sm:$0xff]  }
 0x4a8   : > { %6305 = vmatpush1.bf16.msra.mxu0 %v12836_v63  ;;  %v12862_v63 = vld [vmem:[%s16914_s4 + $0xde4] ss:$16 sps:$4 sm:$0xff]  }
 0x4a9   : > { %6306 = vmatprep.subr.bf16.mxu0 %v12841_v41  ;;  %v12860_v41 = vld [vmem:[%s16914_s4 + $0xde0] ss:$16 sps:$4 sm:$0xff]  }
 0x4ac   : > { %6307 = vmatpush1.bf16.msra.mxu0 %v12839_v42  ;;  %v12865_v42 = vld [vmem:[%s16914_s4 + $0xc0c] ss:$16 sps:$4 sm:$0xff]  }
 0x4ad   : > { %6308 = vmatprep.subr.bf16.mxu0 %v12844_v3  ;;  %v12863_v3 = vld [vmem:[%s16914_s4 + $0xc08] ss:$16 sps:$4 sm:$0xff]  }
 0x4b0   : > { %6309 = vmatpush1.bf16.msra.mxu0 %v12842_v59  ;;  %v12868_v59 = vld [vmem:[%s16914_s4 + $0xc2c] ss:$16 sps:$4 sm:$0xff]  }
 0x4b1   : > { %6310 = vmatprep.subr.bf16.mxu0 %v12847_v45  ;;  %v12866_v45 = vld [vmem:[%s16914_s4 + $0xc28] ss:$16 sps:$4 sm:$0xff]  }
 0x4b4   : > { %6311 = vmatpush1.bf16.msra.mxu0 %v12845_v28  ;;  %v12871_v28 = vld [vmem:[%s16914_s4 + $0xc4c] ss:$16 sps:$4 sm:$0xff]  }
 0x4b5   : > { %6312 = vmatprep.subr.bf16.mxu0 %v12850_v0  ;;  %v12869_v0 = vld [vmem:[%s16914_s4 + $0xc48] ss:$16 sps:$4 sm:$0xff]  }
 0x4b8   : > { %6313 = vmatpush1.bf16.msra.mxu0 %v12848_v11  ;;  %v12874_v11 = vld [vmem:[%s16914_s4 + $0xc6c] ss:$16 sps:$4 sm:$0xff]  }
 0x4b9   : > { %6314 = vmatprep.subr.bf16.mxu0 %v12853_v25  ;;  %v12872_v25 = vld [vmem:[%s16914_s4 + $0xc68] ss:$16 sps:$4 sm:$0xff]  }
 0x4bc   : > { %6315 = vmatpush1.bf16.msra.mxu0 %v12851_v53  ;;  %v12877_v53 = vld [vmem:[%s16914_s4 + $0xc8c] ss:$16 sps:$4 sm:$0xff]  }
 0x4bd   : > { %6316 = vmatprep.subr.bf16.mxu0 %v12856_v24  ;;  %v12875_v24 = vld [vmem:[%s16914_s4 + $0xc88] ss:$16 sps:$4 sm:$0xff]  }
 0x4c0   : > { %6317 = vmatpush1.bf16.msra.mxu0 %v12854_v55  ;;  %v12880_v55 = vld [vmem:[%s16914_s4 + $0xcac] ss:$16 sps:$4 sm:$0xff]  }
 0x4c1   : > { %6318 = vmatprep.subr.bf16.mxu0 %v12859_v12  ;;  %v12878_v12 = vld [vmem:[%s16914_s4 + $0xca8] ss:$16 sps:$4 sm:$0xff]  }
 0x4c4   : > { %6319 = vmatpush1.bf16.msra.mxu0 %v12857_v13  ;;  %v12883_v13 = vld [vmem:[%s16914_s4 + $0xccc] ss:$16 sps:$4 sm:$0xff]  }
 0x4c5   : > { %6320 = vmatprep.subr.bf16.mxu0 %v12862_v63  ;;  %v12881_v63 = vld [vmem:[%s16914_s4 + $0xcc8] ss:$16 sps:$4 sm:$0xff]  }
 0x4c8   : > { %6321 = vmatpush1.bf16.msra.mxu0 %v12860_v41  ;;  %v12886_v41 = vld [vmem:[%s16914_s4 + $0xcec] ss:$16 sps:$4 sm:$0xff]  }
 0x4c9   : > { %6363 = vmatprep.subr.bf16.mxu0 %v12865_v42  ;;  %v12884_v42 = vld [vmem:[%s16914_s4 + $0xce8] ss:$16 sps:$4 sm:$0xff]  }
 0x4cb   : > { %6323 = vmatmul.mubr.bf16.vlgmr.msra.gmra.mrb[16].mxu0 %v14688_v46 }
 0x4cc   : > { %6364 = vmatpush1.bf16.msra.mxu0 %v12863_v3  ;;  %6332 = vmatprep.mubr.bf16.mxu0 %v14712_v29  ;;  %v12889_v3 = vld [vmem:[%s16914_s4 + $0xd0c] ss:$16 sps:$4 sm:$0xff]  }
 0x4cd   : > { %6365 = vmatprep.subr.bf16.mxu0 %v12868_v59  ;;  %v12887_v59 = vld [vmem:[%s16914_s4 + $0xd08] ss:$16 sps:$4 sm:$0xff]  }
 0x4d0   : > { %6366 = vmatpush1.bf16.msra.mxu0 %v12866_v45  ;;  %v12892_v45 = vld [vmem:[%s16914_s4 + $0xd2c] ss:$16 sps:$4 sm:$0xff]  }
 0x4d1   : > { %6367 = vmatprep.subr.bf16.mxu0 %v12871_v28  ;;  %v12895_v28 = vld [vmem:[%s16914_s4 + $0xd4c] ss:$16 sps:$4 sm:$0xff]  }
 0x4d3   : > { %6333 = vmatmul.mubr.bf16.gmra.mrb[20].mxu0 %v14707_v44 }
 0x4d4   : > { %6368 = vmatpush1.bf16.msra.mxu0 %v12869_v0  ;;  %6342 = vmatprep.mubr.bf16.mxu0 %v14730_v58  ;;  %v12893_v0 = vld [vmem:[%s16914_s4 + $0xd48] ss:$16 sps:$4 sm:$0xff]  }
 0x4d5   : > { %6369 = vmatprep.subr.bf16.mxu0 %v12874_v11  ;;  %v12898_v11 = vld [vmem:[%s16914_s4 + $0xd6c] ss:$16 sps:$4 sm:$0xff]  }
 0x4d8   : > { %6370 = vmatpush1.bf16.msra.mxu0 %v12872_v25  ;;  %v12896_v25 = vld [vmem:[%s16914_s4 + $0xd68] ss:$16 sps:$4 sm:$0xff]  }
 0x4d9   : > { %6371 = vmatprep.subr.bf16.mxu0 %v12877_v53  ;;  %v12901_v53 = vld [vmem:[%s16914_s4 + $0xd8c] ss:$16 sps:$4 sm:$0xff]  }
 0x4db   : > { %6343 = vmatmul.mubr.bf16.gmra.mrb[24].mxu0 %v14725_v18 }
 0x4dc   : > { %6372 = vmatpush1.bf16.msra.mxu0 %v12875_v24  ;;  %6352 = vmatprep.mubr.bf16.mxu0 %v14748_v14  ;;  %v12899_v24 = vld [vmem:[%s16914_s4 + $0xd88] ss:$16 sps:$4 sm:$0xff]  }
 0x4dd   : > { %6373 = vmatprep.subr.bf16.mxu0 %v12880_v55  ;;  %v12904_v55 = vld [vmem:[%s16914_s4 + $0xdac] ss:$16 sps:$4 sm:$0xff]  }
 0x4e0   : > { %6374 = vmatpush1.bf16.msra.mxu0 %v12878_v12  ;;  %v12902_v12 = vld [vmem:[%s16914_s4 + $0xda8] ss:$16 sps:$4 sm:$0xff]  }
 0x4e1   : > { %6375 = vmatprep.subr.bf16.mxu0 %v12883_v13  ;;  %v12907_v13 = vld [vmem:[%s16914_s4 + $0xdcc] ss:$16 sps:$4 sm:$0xff]  }
 0x4e3   : > { %6353 = vmatmul.mubr.bf16.gmra.mrb[28].mxu0 %v14743_v31 }
 0x4e4   : > { %6376 = vmatpush1.bf16.msra.mxu0 %v12881_v63  ;;  %6395 = vmatprep.mubr.bf16.mxu0 %v14693_v62  ;;  %v12890_v62 = vld [vmem:[%s16914_s4 + $0xd28] ss:$16 sps:$4 sm:$0xff]  }
 0x4e5   : > { %6377 = vmatprep.subr.bf16.mxu0 %v12886_v41  ;;  %v12905_v63 = vld [vmem:[%s16914_s4 + $0xdc8] ss:$16 sps:$4 sm:$0xff]   ;;  %v12910_v41 = vld [vmem:[%s16914_s4 + $0xdec] ss:$16 sps:$4 sm:$0xff]  }
 0x4e8   : > { %6378 = vmatpush1.bf16.msra.mxu0 %v12884_v42  ;;  %v12908_v42 = vld [vmem:[%s16914_s4 + $0xde8] ss:$16 sps:$4 sm:$0xff]  }
 0x4e9   : > { %6379 = vmatprep.subr.bf16.mxu0 %v12889_v3  ;;  %v12913_v3 = vld [vmem:[%s16914_s4 + $0xe04] ss:$16 sps:$4 sm:$0xff]  }
 0x4ec   : > { %6380 = vmatpush1.bf16.msra.mxu0 %v12887_v59  ;;  %v12911_v59 = vld [vmem:[%s16914_s4 + $0xe00] ss:$16 sps:$4 sm:$0xff]  }
 0x4ed   : > { %6381 = vmatprep.subr.bf16.mxu0 %v12892_v45  ;;  %v12916_v45 = vld [vmem:[%s16914_s4 + $0xe24] ss:$16 sps:$4 sm:$0xff]  }
 0x4f0   : > { %6382 = vmatpush1.bf16.msra.mxu0 %v12890_v62  ;;  %v12914_v62 = vld [vmem:[%s16914_s4 + $0xe20] ss:$16 sps:$4 sm:$0xff]  }
 0x4f1   : > { %6383 = vmatprep.subr.bf16.mxu0 %v12895_v28  ;;  %v12919_v28 = vld [vmem:[%s16914_s4 + $0xe44] ss:$16 sps:$4 sm:$0xff]  }
 0x4f4   : > { %6384 = vmatpush1.bf16.msra.mxu0 %v12893_v0  ;;  %v12917_v0 = vld [vmem:[%s16914_s4 + $0xe40] ss:$16 sps:$4 sm:$0xff]  }
 0x4f5   : > { %6385 = vmatprep.subr.bf16.mxu0 %v12898_v11  ;;  %v12925_v11 = vld [vmem:[%s16914_s4 + $0xe84] ss:$16 sps:$4 sm:$0xff]  }
 0x4f8   : > { %6386 = vmatpush1.bf16.msra.mxu0 %v12896_v25  ;;  %v12923_v25 = vld [vmem:[%s16914_s4 + $0xe80] ss:$16 sps:$4 sm:$0xff]  }
 0x4f9   : > { %6387 = vmatprep.subr.bf16.mxu0 %v12901_v53  ;;  %v12931_v53 = vld [vmem:[%s16914_s4 + $0xec4] ss:$16 sps:$4 sm:$0xff]  }
 0x4fc   : > { %6388 = vmatpush1.bf16.msra.mxu0 %v12899_v24  ;;  %v12929_v24 = vld [vmem:[%s16914_s4 + $0xec0] ss:$16 sps:$4 sm:$0xff]  }
 0x4fd   : > { %6389 = vmatprep.subr.bf16.mxu0 %v12904_v55  ;;  %v12937_v55 = vld [vmem:[%s16914_s4 + $0xf04] ss:$16 sps:$4 sm:$0xff]  }
 0x500   : > { %6390 = vmatpush1.bf16.msra.mxu0 %v12902_v12  ;;  %v12935_v12 = vld [vmem:[%s16914_s4 + $0xf00] ss:$16 sps:$4 sm:$0xff]  }
 0x501   : > { %6391 = vmatprep.subr.bf16.mxu0 %v12907_v13  ;;  %v12938_v13 = vld [vmem:[%s16914_s4 + $0xf20] ss:$16 sps:$4 sm:$0xff]  }
 0x504   : > { %6392 = vmatpush1.bf16.msra.mxu0 %v12905_v63  ;;  %v12943_v63 = vld [vmem:[%s16914_s4 + $0xf44] ss:$16 sps:$4 sm:$0xff]  }
 0x505   : > { %6393 = vmatprep.subr.bf16.mxu0 %v12910_v41  ;;  %v12941_v41 = vld [vmem:[%s16914_s4 + $0xf40] ss:$16 sps:$4 sm:$0xff]  }
 0x508   : > { %6394 = vmatpush1.bf16.msra.mxu0 %v12908_v42  ;;  %v12946_v42 = vld [vmem:[%s16914_s4 + $0xf64] ss:$16 sps:$4 sm:$0xff]  }
 0x509   : > { %6925 = vmatprep.subr.bf16.mxu0 %v12913_v3  ;;  %v12944_v3 = vld [vmem:[%s16914_s4 + $0xf60] ss:$16 sps:$4 sm:$0xff]  }
 0x50b   : > { %6396 = vmatmul.mubr.bf16.vlgmr.msra.gmra.mrb[0].mxu0 %v14688_v46  ;;  %v12922_v46 = vld [vmem:[%s16914_s4 + $0xe64] ss:$16 sps:$4 sm:$0xff]  }
 0x50c   : > { %6405 = vmatprep.mubr.bf16.mxu0 %v14712_v29  ;;  %6926 = vmatpush1.bf16.msra.mxu0 %v12911_v59  ;;  %v12920_v29 = vld [vmem:[%s16914_s4 + $0xe60] ss:$16 sps:$4 sm:$0xff]   ;;  %v12949_v59 = vld [vmem:[%s16914_s4 + $0xf84] ss:$16 sps:$4 sm:$0xff]  }
 0x50d   : > { %6927 = vmatprep.subr.bf16.mxu0 %v12916_v45  ;;  %v12947_v45 = vld [vmem:[%s16914_s4 + $0xf80] ss:$16 sps:$4 sm:$0xff]  }
 0x510   : > { %6928 = vmatpush1.bf16.msra.mxu0 %v12914_v62  ;;  %v12952_v62 = vld [vmem:[%s16914_s4 + $0xfa4] ss:$16 sps:$4 sm:$0xff]  }
 0x511   : > { %6929 = vmatprep.subr.bf16.mxu0 %v12919_v28  ;;  %v12950_v28 = vld [vmem:[%s16914_s4 + $0xfa0] ss:$16 sps:$4 sm:$0xff]  }
 0x513   : > { %6406 = vmatmul.mubr.bf16.gmra.mrb[4].mxu0 %v14707_v44  ;;  %v12928_v44 = vld [vmem:[%s16914_s4 + $0xea4] ss:$16 sps:$4 sm:$0xff]  }
 0x514   : > { %6415 = vmatprep.mubr.bf16.mxu0 %v14730_v58  ;;  %6930 = vmatpush1.bf16.msra.mxu0 %v12917_v0  ;;  %v12926_v58 = vld [vmem:[%s16914_s4 + $0xea0] ss:$16 sps:$4 sm:$0xff]   ;;  %v12955_v0 = vld [vmem:[%s16914_s4 + $0xfc4] ss:$16 sps:$4 sm:$0xff]  }
 0x515   : > { %6931 = vmatprep.subr.bf16.mxu0 %v12922_v46  ;;  %v12953_v46 = vld [vmem:[%s16914_s4 + $0xfc0] ss:$16 sps:$4 sm:$0xff]  }
 0x518   : > { %6932 = vmatpush1.bf16.msra.mxu0 %v12920_v29  ;;  %v12958_v29 = vld [vmem:[%s16914_s4 + $0xfe4] ss:$16 sps:$4 sm:$0xff]  }
 0x519   : > { %6933 = vmatprep.subr.bf16.mxu0 %v12925_v11  ;;  %v12956_v11 = vld [vmem:[%s16914_s4 + $0xfe0] ss:$16 sps:$4 sm:$0xff]  }
 0x51b   : > { %6416 = vmatmul.mubr.bf16.gmra.mrb[8].mxu0 %v14725_v18  ;;  %v12934_v18 = vld [vmem:[%s16914_s4 + $0xee4] ss:$16 sps:$4 sm:$0xff]  }
 0x51c   : > { %6425 = vmatprep.mubr.bf16.mxu0 %v14748_v14  ;;  %6934 = vmatpush1.bf16.msra.mxu0 %v12923_v25  ;;  %v12932_v14 = vld [vmem:[%s16914_s4 + $0xee0] ss:$16 sps:$4 sm:$0xff]   ;;  %v12961_v25 = vld [vmem:[%s16914_s4 + $0xe0c] ss:$16 sps:$4 sm:$0xff]  }
 0x51d   : > { %6935 = vmatprep.subr.bf16.mxu0 %v12928_v44  ;;  %v12959_v44 = vld [vmem:[%s16914_s4 + $0xe08] ss:$16 sps:$4 sm:$0xff]  }
 0x520   : > { %6936 = vmatpush1.bf16.msra.mxu0 %v12926_v58  ;;  %v12964_v58 = vld [vmem:[%s16914_s4 + $0xe2c] ss:$16 sps:$4 sm:$0xff]  }
 0x521   : > { %6937 = vmatprep.subr.bf16.mxu0 %v12931_v53  ;;  %v12962_v53 = vld [vmem:[%s16914_s4 + $0xe28] ss:$16 sps:$4 sm:$0xff]  }
 0x523   : > { %6426 = vmatmul.mubr.bf16.gmra.mrb[12].mxu0 %v14743_v31  ;;  %v12940_v31 = vld [vmem:[%s16914_s4 + $0xf24] ss:$16 sps:$4 sm:$0xff]  }
 0x524   : > { %6938 = vmatpush1.bf16.msra.mxu0 %v12929_v24  ;;  %6957 = vmatprep.mubr.bf16.mxu0 %v14766_v47  ;;  %v12967_v24 = vld [vmem:[%s16914_s4 + $0xe4c] ss:$16 sps:$4 sm:$0xff]  }
 0x525   : > { %6939 = vmatprep.subr.bf16.mxu0 %v12934_v18  ;;  %v12965_v18 = vld [vmem:[%s16914_s4 + $0xe48] ss:$16 sps:$4 sm:$0xff]  }
 0x528   : > { %6940 = vmatpush1.bf16.msra.mxu0 %v12932_v14  ;;  %v12970_v14 = vld [vmem:[%s16914_s4 + $0xe6c] ss:$16 sps:$4 sm:$0xff]  }
 0x529   : > { %6941 = vmatprep.subr.bf16.mxu0 %v12937_v55  ;;  %v12968_v55 = vld [vmem:[%s16914_s4 + $0xe68] ss:$16 sps:$4 sm:$0xff]  }
 0x52c   : > { %6942 = vmatpush1.bf16.msra.mxu0 %v12935_v12  ;;  %v12973_v12 = vld [vmem:[%s16914_s4 + $0xe8c] ss:$16 sps:$4 sm:$0xff]  }
 0x52d   : > { %6943 = vmatprep.subr.bf16.mxu0 %v12940_v31  ;;  %v12971_v31 = vld [vmem:[%s16914_s4 + $0xe88] ss:$16 sps:$4 sm:$0xff]  }
 0x530   : > { %6944 = vmatpush1.bf16.msra.mxu0 %v12938_v13  ;;  %v12976_v13 = vld [vmem:[%s16914_s4 + $0xeac] ss:$16 sps:$4 sm:$0xff]  }
 0x531   : > { %6945 = vmatprep.subr.bf16.mxu0 %v12943_v63  ;;  %v12974_v63 = vld [vmem:[%s16914_s4 + $0xea8] ss:$16 sps:$4 sm:$0xff]  }
 0x534   : > { %6946 = vmatpush1.bf16.msra.mxu0 %v12941_v41  ;;  %v12979_v41 = vld [vmem:[%s16914_s4 + $0xecc] ss:$16 sps:$4 sm:$0xff]  }
 0x535   : > { %6947 = vmatprep.subr.bf16.mxu0 %v12946_v42  ;;  %v12977_v42 = vld [vmem:[%s16914_s4 + $0xec8] ss:$16 sps:$4 sm:$0xff]  }
 0x538   : > { %6948 = vmatpush1.bf16.msra.mxu0 %v12944_v3  ;;  %v12982_v3 = vld [vmem:[%s16914_s4 + $0xeec] ss:$16 sps:$4 sm:$0xff]  }
 0x539   : > { %6949 = vmatprep.subr.bf16.mxu0 %v12949_v59  ;;  %v12980_v59 = vld [vmem:[%s16914_s4 + $0xee8] ss:$16 sps:$4 sm:$0xff]  }
 0x53c   : > { %6950 = vmatpush1.bf16.msra.mxu0 %v12947_v45  ;;  %v12985_v45 = vld [vmem:[%s16914_s4 + $0xf0c] ss:$16 sps:$4 sm:$0xff]  }
 0x53d   : > { %6951 = vmatprep.subr.bf16.mxu0 %v12952_v62  ;;  %v12983_v62 = vld [vmem:[%s16914_s4 + $0xf08] ss:$16 sps:$4 sm:$0xff]  }
 0x540   : > { %6952 = vmatpush1.bf16.msra.mxu0 %v12950_v28  ;;  %v12988_v28 = vld [vmem:[%s16914_s4 + $0xf2c] ss:$16 sps:$4 sm:$0xff]  }
 0x541   : > { %6953 = vmatprep.subr.bf16.mxu0 %v12955_v0  ;;  %v12991_v0 = vld [vmem:[%s16914_s4 + $0xf4c] ss:$16 sps:$4 sm:$0xff]  }
 0x544   : > { %6954 = vmatpush1.bf16.msra.mxu0 %v12953_v46  ;;  %v12989_v46 = vld [vmem:[%s16914_s4 + $0xf48] ss:$16 sps:$4 sm:$0xff]  }
 0x545   : > { %6955 = vmatprep.subr.bf16.mxu0 %v12958_v29  ;;  %v12994_v29 = vld [vmem:[%s16914_s4 + $0xf6c] ss:$16 sps:$4 sm:$0xff]  }
 0x548   : > { %6956 = vmatpush1.bf16.msra.mxu0 %v12956_v11  ;;  %v12992_v11 = vld [vmem:[%s16914_s4 + $0xf68] ss:$16 sps:$4 sm:$0xff]  }
 0x549   : > { %6998 = vmatprep.subr.bf16.mxu0 %v12961_v25  ;;  %v12997_v25 = vld [vmem:[%s16914_s4 + $0xf8c] ss:$16 sps:$4 sm:$0xff]  }
 0x54b   : > { %6958 = vmatmul.mubr.bf16.vlgmr.msra.gmra.mrb[16].mxu0 %v14761_v39 }
 0x54c   : > { %6999 = vmatpush1.bf16.msra.mxu0 %v12959_v44  ;;  %6967 = vmatprep.mubr.bf16.mxu0 %v14785_v20  ;;  %v12995_v44 = vld [vmem:[%s16914_s4 + $0xf88] ss:$16 sps:$4 sm:$0xff]  }
 0x54d   : > { %7000 = vmatprep.subr.bf16.mxu0 %v12964_v58  ;;  %v13000_v58 = vld [vmem:[%s16914_s4 + $0xfac] ss:$16 sps:$4 sm:$0xff]  }
 0x550   : > { %7001 = vmatpush1.bf16.msra.mxu0 %v12962_v53  ;;  %v12998_v53 = vld [vmem:[%s16914_s4 + $0xfa8] ss:$16 sps:$4 sm:$0xff]  }
 0x551   : > { %7002 = vmatprep.subr.bf16.mxu0 %v12967_v24  ;;  %v13003_v24 = vld [vmem:[%s16914_s4 + $0xfcc] ss:$16 sps:$4 sm:$0xff]  }
 0x553   : > { %6968 = vmatmul.mubr.bf16.gmra.mrb[20].mxu0 %v14780_v50 }
 0x554   : > { %7003 = vmatpush1.bf16.msra.mxu0 %v12965_v18  ;;  %6977 = vmatprep.mubr.bf16.mxu0 %v14803_v19  ;;  %v13001_v18 = vld [vmem:[%s16914_s4 + $0xfc8] ss:$16 sps:$4 sm:$0xff]  }
 0x555   : > { %7004 = vmatprep.subr.bf16.mxu0 %v12970_v14  ;;  %v13006_v14 = vld [vmem:[%s16914_s4 + $0xfec] ss:$16 sps:$4 sm:$0xff]  }
 0x558   : > { %7005 = vmatpush1.bf16.msra.mxu0 %v12968_v55  ;;  %v13004_v55 = vld [vmem:[%s16914_s4 + $0xfe8] ss:$16 sps:$4 sm:$0xff]  }
 0x559   : > { %7006 = vmatprep.subr.bf16.mxu0 %v12973_v12  ;;  %v13009_v12 = vld [vmem:[%s16914_s4 + $0x1004] ss:$16 sps:$4 sm:$0xff]  }
 0x55b   : > { %6978 = vmatmul.mubr.bf16.gmra.mrb[24].mxu0 %v14798_v52 }
 0x55c   : > { %7007 = vmatpush1.bf16.msra.mxu0 %v12971_v31  ;;  %6987 = vmatprep.mubr.bf16.mxu0 %v14821_v48  ;;  %v13007_v31 = vld [vmem:[%s16914_s4 + $0x1000] ss:$16 sps:$4 sm:$0xff]  }
 0x55d   : > { %7008 = vmatprep.subr.bf16.mxu0 %v12976_v13  ;;  %v13012_v13 = vld [vmem:[%s16914_s4 + $0x1024] ss:$16 sps:$4 sm:$0xff]  }
 0x560   : > { %7009 = vmatpush1.bf16.msra.mxu0 %v12974_v63  ;;  %v13010_v63 = vld [vmem:[%s16914_s4 + $0x1020] ss:$16 sps:$4 sm:$0xff]  }
 0x561   : > { %7010 = vmatprep.subr.bf16.mxu0 %v12979_v41  ;;  %v13015_v41 = vld [vmem:[%s16914_s4 + $0x1044] ss:$16 sps:$4 sm:$0xff]  }
 0x563   : > { %6988 = vmatmul.mubr.bf16.gmra.mrb[28].mxu0 %v14816_v54 }
 0x564   : > { %7011 = vmatpush1.bf16.msra.mxu0 %v12977_v42  ;;  %7030 = vmatprep.mubr.bf16.mxu0 %v14766_v47  ;;  %v12986_v47 = vld [vmem:[%s16914_s4 + $0xf28] ss:$16 sps:$4 sm:$0xff]   ;;  %v13013_v42 = vld [vmem:[%s16914_s4 + $0x1040] ss:$16 sps:$4 sm:$0xff]  }
 0x565   : > { %7012 = vmatprep.subr.bf16.mxu0 %v12982_v3  ;;  %v13021_v3 = vld [vmem:[%s16914_s4 + $0x1084] ss:$16 sps:$4 sm:$0xff]  }
 0x568   : > { %7013 = vmatpush1.bf16.msra.mxu0 %v12980_v59  ;;  %v13019_v59 = vld [vmem:[%s16914_s4 + $0x1080] ss:$16 sps:$4 sm:$0xff]  }
 0x569   : > { %7014 = vmatprep.subr.bf16.mxu0 %v12985_v45  ;;  %v13027_v45 = vld [vmem:[%s16914_s4 + $0x10c4] ss:$16 sps:$4 sm:$0xff]  }
 0x56c   : > { %7015 = vmatpush1.bf16.msra.mxu0 %v12983_v62  ;;  %v13025_v62 = vld [vmem:[%s16914_s4 + $0x10c0] ss:$16 sps:$4 sm:$0xff]  }
 0x56d   : > { %7016 = vmatprep.subr.bf16.mxu0 %v12988_v28  ;;  %v13104_v28 = vld [vmem:[%s16916_s6] sm:$0xff]  }
 0x570   : > { %7017 = vmatpush1.bf16.msra.mxu0 %v12986_v47  ;;  %v13105_v47 = vld [vmem:[%s16916_s6 + $0x48] sm:$0xff]  }
 0x571   : > { %7018 = vmatprep.subr.bf16.mxu0 %v12991_v0  ;;  %v13028_v0 = vld [vmem:[%s16914_s4 + $0x10e0] ss:$16 sps:$4 sm:$0xff]  }
 0x574   : > { %7019 = vmatpush1.bf16.msra.mxu0 %v12989_v46  ;;  %v13106_v46 = vld [vmem:[%s16916_s6 + $0x8] sm:$0xff]  }
 0x575   : > { %7020 = vmatprep.subr.bf16.mxu0 %v12994_v29  ;;  %v13107_v29 = vld [vmem:[%s16916_s6 + $0x50] sm:$0xff]  }
 0x578   : > { %7021 = vmatpush1.bf16.msra.mxu0 %v12992_v11  ;;  %v13031_v11 = vld [vmem:[%s16914_s4 + $0x1100] ss:$16 sps:$4 sm:$0xff]  }
 0x579   : > { %7022 = vmatprep.subr.bf16.mxu0 %v12997_v25  ;;  %v13036_v25 = vld [vmem:[%s16914_s4 + $0x1124] ss:$16 sps:$4 sm:$0xff]  }
 0x57c   : > { %7023 = vmatpush1.bf16.msra.mxu0 %v12995_v44  ;;  %v13108_v44 = vld [vmem:[%s16916_s6 + $0x10] sm:$0xff]  }
 0x57d   : > { %7024 = vmatprep.subr.bf16.mxu0 %v13000_v58  ;;  %v13109_v58 = vld [vmem:[%s16916_s6 + $0x58] sm:$0xff]  }
 0x580   : > { %7025 = vmatpush1.bf16.msra.mxu0 %v12998_v53  ;;  %v13034_v53 = vld [vmem:[%s16914_s4 + $0x1120] ss:$16 sps:$4 sm:$0xff]  }
 0x581   : > { %7026 = vmatprep.subr.bf16.mxu0 %v13003_v24  ;;  %v13039_v24 = vld [vmem:[%s16914_s4 + $0x1144] ss:$16 sps:$4 sm:$0xff]  }
 0x584   : > { %7027 = vmatpush1.bf16.msra.mxu0 %v13001_v18  ;;  %v13110_v18 = vld [vmem:[%s16916_s6 + $0x18] sm:$0xff]  }
 0x585   : > { %7028 = vmatprep.subr.bf16.mxu0 %v13006_v14  ;;  %v13111_v14 = vld [vmem:[%s16916_s6 + $0x60] sm:$0xff]  }
 0x588   : > { %7029 = vmatpush1.bf16.msra.mxu0 %v13004_v55  ;;  %v13037_v55 = vld [vmem:[%s16914_s4 + $0x1140] ss:$16 sps:$4 sm:$0xff]  }
 0x589   : > { %7560 = vmatprep.subr.bf16.mxu0 %v13009_v12  ;;  %v13042_v12 = vld [vmem:[%s16914_s4 + $0x1164] ss:$16 sps:$4 sm:$0xff]  }
 0x58b   : > { %7031 = vmatmul.mubr.bf16.vlgmr.msra.gmra.mrb[0].mxu0 %v14761_v39  ;;  %v13018_v39 = vld [vmem:[%s16914_s4 + $0x1064] ss:$16 sps:$4 sm:$0xff]  }
 0x58c   : > { %7040 = vmatprep.mubr.bf16.mxu0 %v14785_v20  ;;  %7561 = vmatpush1.bf16.msra.mxu0 %v13007_v31  ;;  %v13016_v20 = vld [vmem:[%s16914_s4 + $0x1060] ss:$16 sps:$4 sm:$0xff]  }
 0x58d   : > { %7562 = vmatprep.subr.bf16.mxu0 %v13012_v13  ;;  %v13112_v31 = vld [vmem:[%s16916_s6 + $0x20] sm:$0xff]   ;;  %v13113_v13 = vld [vmem:[%s16916_s6 + $0x68] sm:$0xff]  }
 0x590   : > { %7563 = vmatpush1.bf16.msra.mxu0 %v13010_v63  ;;  %v13040_v63 = vld [vmem:[%s16914_s4 + $0x1160] ss:$16 sps:$4 sm:$0xff]  }
 0x591   : > { %7564 = vmatprep.subr.bf16.mxu0 %v13015_v41  ;;  %v13045_v41 = vld [vmem:[%s16914_s4 + $0x1184] ss:$16 sps:$4 sm:$0xff]  }
 0x593   : > { %7041 = vmatmul.mubr.bf16.gmra.mrb[4].mxu0 %v14780_v50  ;;  %v13024_v50 = vld [vmem:[%s16914_s4 + $0x10a4] ss:$16 sps:$4 sm:$0xff]  }
 0x594   : > { %7050 = vmatprep.mubr.bf16.mxu0 %v14803_v19  ;;  %7565 = vmatpush1.bf16.msra.mxu0 %v13013_v42  ;;  %v13022_v19 = vld [vmem:[%s16914_s4 + $0x10a0] ss:$16 sps:$4 sm:$0xff]  }
 0x595   : > { %7566 = vmatprep.subr.bf16.mxu0 %v13018_v39  ;;  %v13043_v42 = vld [vmem:[%s16914_s4 + $0x1180] ss:$16 sps:$4 sm:$0xff]   ;;  %v13048_v39 = vld [vmem:[%s16914_s4 + $0x11a4] ss:$16 sps:$4 sm:$0xff]  }
 0x598   : > { %7567 = vmatpush1.bf16.msra.mxu0 %v13016_v20  ;;  %v13046_v20 = vld [vmem:[%s16914_s4 + $0x11a0] ss:$16 sps:$4 sm:$0xff]  }
 0x599   : > { %7568 = vmatprep.subr.bf16.mxu0 %v13021_v3  ;;  %v13051_v3 = vld [vmem:[%s16914_s4 + $0x11c4] ss:$16 sps:$4 sm:$0xff]  }
 0x59b   : > { %7051 = vmatmul.mubr.bf16.gmra.mrb[8].mxu0 %v14798_v52  ;;  %v13030_v52 = vld [vmem:[%s16914_s4 + $0x10e4] ss:$16 sps:$4 sm:$0xff]  }
 0x59c   : > { %7060 = vmatprep.mubr.bf16.mxu0 %v14821_v48  ;;  %7569 = vmatpush1.bf16.msra.mxu0 %v13019_v59  ;;  %v13103_v48 = vld [vmem:[%s16916_s6 + $0x40] sm:$0xff]  }
 0x59d   : > { %7570 = vmatprep.subr.bf16.mxu0 %v13024_v50  ;;  %11570 = vmatprep.subr.bf16.mxu1 %v13103_v48  ;;  %v13049_v59 = vld [vmem:[%s16914_s4 + $0x11c0] ss:$16 sps:$4 sm:$0xff]   ;;  %v13054_v50 = vld [vmem:[%s16914_s4 + $0x11e4] ss:$16 sps:$4 sm:$0xff]   ;;  %v13058_v48 = vld [vmem:[%s16914_s4 + $0x1028] ss:$16 sps:$4 sm:$0xff]  }
 0x59e   : > { %11571 = vmatpush3.bf16.msra.mxu1 %v13104_v28  ;;  %v13063_v28 = vld [vmem:[%s16914_s4 + $0x104c] ss:$16 sps:$4 sm:$0xff]  }
 0x59f   : > { %11572 = vmatprep.subr.bf16.mxu1 %v13105_v47  ;;  %v13061_v47 = vld [vmem:[%s16914_s4 + $0x1048] ss:$16 sps:$4 sm:$0xff]  }
 0x5a0   : > { %7571 = vmatpush1.bf16.msra.mxu0 %v13022_v19  ;;  %v13052_v19 = vld [vmem:[%s16914_s4 + $0x11e0] ss:$16 sps:$4 sm:$0xff]  }
 0x5a1   : > { %7572 = vmatprep.subr.bf16.mxu0 %v13027_v45  ;;  %v13057_v45 = vld [vmem:[%s16914_s4 + $0x100c] ss:$16 sps:$4 sm:$0xff]  }
 0x5a2   : > { %11573 = vmatpush3.bf16.msra.mxu1 %v13106_v46  ;;  %v13069_v46 = vld [vmem:[%s16914_s4 + $0x108c] ss:$16 sps:$4 sm:$0xff]  }
 0x5a3   : > { %7061 = vmatmul.mubr.bf16.gmra.mrb[12].mxu0 %v14816_v54  ;;  %v13033_v54 = vld [vmem:[%s16914_s4 + $0x1104] ss:$16 sps:$4 sm:$0xff]   ;;  %11574 = vmatprep.subr.bf16.mxu1 %v13107_v29  ;;  %v13067_v29 = vld [vmem:[%s16914_s4 + $0x1088] ss:$16 sps:$4 sm:$0xff]  }
 0x5a4   : > { %7573 = vmatpush1.bf16.msra.mxu0 %v13025_v62  ;;  %7592 = vmatprep.mubr.bf16.mxu0 %v14839_v10  ;;  %v13055_v62 = vld [vmem:[%s16914_s4 + $0x1008] ss:$16 sps:$4 sm:$0xff]  }
 0x5a5   : > { %7574 = vmatprep.subr.bf16.mxu0 %v13030_v52  ;;  %v13060_v52 = vld [vmem:[%s16914_s4 + $0x102c] ss:$16 sps:$4 sm:$0xff]  }
 0x5a6   : > { %11575 = vmatpush3.bf16.msra.mxu1 %v13108_v44  ;;  %v13075_v44 = vld [vmem:[%s16914_s4 + $0x10cc] ss:$16 sps:$4 sm:$0xff]  }
 0x5a7   : > { %11576 = vmatprep.subr.bf16.mxu1 %v13109_v58  ;;  %v13073_v58 = vld [vmem:[%s16914_s4 + $0x10c8] ss:$16 sps:$4 sm:$0xff]  }
 0x5a8   : > { %7575 = vmatpush1.bf16.msra.mxu0 %v13028_v0  ;;  %v13066_v0 = vld [vmem:[%s16914_s4 + $0x106c] ss:$16 sps:$4 sm:$0xff]  }
 0x5a9   : > { %7576 = vmatprep.subr.bf16.mxu0 %v13033_v54  ;;  %v13064_v54 = vld [vmem:[%s16914_s4 + $0x1068] ss:$16 sps:$4 sm:$0xff]  }
 0x5aa   : > { %11577 = vmatpush3.bf16.msra.mxu1 %v13110_v18  ;;  %v13081_v18 = vld [vmem:[%s16914_s4 + $0x110c] ss:$16 sps:$4 sm:$0xff]  }
 0x5ab   : > { %11578 = vmatprep.subr.bf16.mxu1 %v13111_v14  ;;  %v13079_v14 = vld [vmem:[%s16914_s4 + $0x1108] ss:$16 sps:$4 sm:$0xff]  }
 0x5ac   : > { %7577 = vmatpush1.bf16.msra.mxu0 %v13031_v11  ;;  %v13072_v11 = vld [vmem:[%s16914_s4 + $0x10ac] ss:$16 sps:$4 sm:$0xff]  }
 0x5ad   : > { %7578 = vmatprep.subr.bf16.mxu0 %v13036_v25  ;;  %v13070_v25 = vld [vmem:[%s16914_s4 + $0x10a8] ss:$16 sps:$4 sm:$0xff]  }
 0x5ae   : > { %11579 = vmatpush3.bf16.msra.mxu1 %v13112_v31  ;;  %v13085_v31 = vld [vmem:[%s16914_s4 + $0x1148] ss:$16 sps:$4 sm:$0xff]  }
 0x5af   : > { %11580 = vmatprep.subr.bf16.mxu1 %v13113_v13  ;;  %v13090_v13 = vld [vmem:[%s16914_s4 + $0x116c] ss:$16 sps:$4 sm:$0xff]  }
 0x5b0   : > { %7579 = vmatpush1.bf16.msra.mxu0 %v13034_v53  ;;  %v13078_v53 = vld [vmem:[%s16914_s4 + $0x10ec] ss:$16 sps:$4 sm:$0xff]  }
 0x5b1   : > { %7580 = vmatprep.subr.bf16.mxu0 %v13039_v24  ;;  %v13076_v24 = vld [vmem:[%s16914_s4 + $0x10e8] ss:$16 sps:$4 sm:$0xff]  }
 0x5b4   : > { %7581 = vmatpush1.bf16.msra.mxu0 %v13037_v55  ;;  %v13084_v55 = vld [vmem:[%s16914_s4 + $0x112c] ss:$16 sps:$4 sm:$0xff]  }
 0x5b5   : > { %7582 = vmatprep.subr.bf16.mxu0 %v13042_v12  ;;  %v13087_v12 = vld [vmem:[%s16914_s4 + $0x114c] ss:$16 sps:$4 sm:$0xff]  }
 0x5b8   : > { %7583 = vmatpush1.bf16.msra.mxu0 %v13040_v63  ;;  %v13088_v63 = vld [vmem:[%s16914_s4 + $0x1168] ss:$16 sps:$4 sm:$0xff]  }
 0x5b9   : > { %7584 = vmatprep.subr.bf16.mxu0 %v13045_v41  ;;  %v13093_v41 = vld [vmem:[%s16914_s4 + $0x118c] ss:$16 sps:$4 sm:$0xff]  }
 0x5bc   : > { %7585 = vmatpush1.bf16.msra.mxu0 %v13043_v42  ;;  %v13091_v42 = vld [vmem:[%s16914_s4 + $0x1188] ss:$16 sps:$4 sm:$0xff]  }
 0x5bd   : > { %7586 = vmatprep.subr.bf16.mxu0 %v13048_v39  ;;  %v13096_v39 = vld [vmem:[%s16914_s4 + $0x11ac] ss:$16 sps:$4 sm:$0xff]  }
 0x5c0   : > { %7587 = vmatpush1.bf16.msra.mxu0 %v13046_v20  ;;  %v13094_v20 = vld [vmem:[%s16914_s4 + $0x11a8] ss:$16 sps:$4 sm:$0xff]  }
 0x5c1   : > { %7588 = vmatprep.subr.bf16.mxu0 %v13051_v3  ;;  %v13099_v3 = vld [vmem:[%s16914_s4 + $0x11cc] ss:$16 sps:$4 sm:$0xff]  }
 0x5c4   : > { %7589 = vmatpush1.bf16.msra.mxu0 %v13049_v59  ;;  %v13097_v59 = vld [vmem:[%s16914_s4 + $0x11c8] ss:$16 sps:$4 sm:$0xff]  }
 0x5c5   : > { %7590 = vmatprep.subr.bf16.mxu0 %v13054_v50  ;;  %v13102_v50 = vld [vmem:[%s16914_s4 + $0x11ec] ss:$16 sps:$4 sm:$0xff]  }
 0x5c8   : > { %7591 = vmatpush1.bf16.msra.mxu0 %v13052_v19  ;;  %v13100_v19 = vld [vmem:[%s16914_s4 + $0x11e8] ss:$16 sps:$4 sm:$0xff]  }
 0x5c9   : > { %7633 = vmatprep.subr.bf16.mxu0 %v13057_v45  ;;  %v13114_v45 = vld [vmem:[%s16916_s6 + $0x28] sm:$0xff]  }
 0x5ca   : > { %11581 = vmatpush3.bf16.msra.mxu1 %v13114_v45 }
 0x5cb   : > { %7593 = vmatmul.mubr.bf16.vlgmr.msra.gmra.mrb[16].mxu0 %v14834_v9 }
 0x5cc   : > { %7634 = vmatpush1.bf16.msra.mxu0 %v13055_v62  ;;  %7602 = vmatprep.mubr.bf16.mxu0 %v14855_v60  ;;  %v13115_v62 = vld [vmem:[%s16916_s6 + $0x70] sm:$0xff]  }
 0x5cd   : > { %7635 = vmatprep.subr.bf16.mxu0 %v13060_v52  ;;  %11582 = vmatprep.subr.bf16.mxu1 %v13115_v62  ;;  %v16077_v52 = vld [vmem:[%s16916_s6 + $0xd0] sm:$0xff]  }
 0x5d0   : > { %7636 = vmatpush1.bf16.msra.mxu0 %v13058_v48  ;;  %v16083_v48 = vld [vmem:[%s16916_s6 + $0x90] sm:$0xff]  }
 0x5d1   : > { %7637 = vmatprep.subr.bf16.mxu0 %v13063_v28  ;;  %v16089_v28 = vld [vmem:[%s16916_s6 + $0xd8] sm:$0xff]  }
 0x5d3   : > { %7603 = vmatmul.mubr.bf16.gmra.mrb[20].mxu0 %v14850_v38 }
 0x5d4   : > { %7638 = vmatpush1.bf16.msra.mxu0 %v13061_v47  ;;  %7612 = vmatprep.mubr.bf16.mxu0 %v14871_v17  ;;  %v16095_v47 = vld [vmem:[%s16916_s6 + $0x98] sm:$0xff]  }
 0x5d5   : > { %7639 = vmatprep.subr.bf16.mxu0 %v13066_v0  ;;  %v16101_v0 = vld [vmem:[%s16916_s6 + $0xe0] sm:$0xff]  }
 0x5d8   : > { %7640 = vmatpush1.bf16.msra.mxu0 %v13064_v54  ;;  %v16107_v54 = vld [vmem:[%s16916_s6 + $0xa0] sm:$0xff]  }
 0x5d9   : > { %7641 = vmatprep.subr.bf16.mxu0 %v13069_v46  ;;  %v16113_v46 = vld [vmem:[%s16916_s6 + $0xe8] sm:$0xff]  }
 0x5db   : > { %7613 = vmatmul.mubr.bf16.gmra.mrb[24].mxu0 %v14866_v6 }
 0x5dc   : > { %7642 = vmatpush1.bf16.msra.mxu0 %v13067_v29  ;;  %7622 = vmatprep.mubr.bf16.mxu0 %v14887_v49  ;;  %v16120_v29 = vld [vmem:[%s16916_s6 + $0xa8] sm:$0xff]  }
 0x5dd   : > { %7643 = vmatprep.subr.bf16.mxu0 %v13072_v11  ;;  %v16126_v11 = vld [vmem:[%s16916_s6 + $0xf0] sm:$0xff]  }
 0x5e0   : > { %7644 = vmatpush1.bf16.msra.mxu0 %v13070_v25  ;;  %v16131_v25 = vld [vmem:[%s16916_s6 + $0xb0] sm:$0xff]  }
 0x5e1   : > { %7645 = vmatprep.subr.bf16.mxu0 %v13075_v44  ;;  %v16138_v44 = vld [vmem:[%s16916_s6 + $0xf8] sm:$0xff]  }
 0x5e3   : > { %7623 = vmatmul.mubr.bf16.gmra.mrb[28].mxu0 %v14882_v51 }
 0x5e4   : > { %7646 = vmatpush1.bf16.msra.mxu0 %v13073_v58  ;;  %7665 = vmatprep.mubr.bf16.mxu0 %v14839_v10  ;;  %v13082_v10 = vld [vmem:[%s16914_s4 + $0x1128] ss:$16 sps:$4 sm:$0xff]  }
 0x5e5   : > { %7647 = vmatprep.subr.bf16.mxu0 %v13078_v53  ;;  %v16143_v58 = vld [vmem:[%s16916_s6 + $0xb8] sm:$0xff]   ;;  %v16150_v53 = vld [vmem:[%s16915_s5] sm:$0xf] }
 0x5e8   : > { %7648 = vmatpush1.bf16.msra.mxu0 %v13076_v24  ;;  %v16154_v24 = vrot.slane %v16150_v53, %v13635_v36 }
 0x5e9   : > { %7649 = vmatprep.subr.bf16.mxu0 %v13081_v18  ;;  %v16158_v18 = vrot.slane %v16150_v53, %v13638_v37 }
 0x5ec   : > { %7650 = vmatpush1.bf16.msra.mxu0 %v13079_v14  ;;  %v11723_v14 = vadd.f32 %v15132_v23, %v16154_v24 }
 0x5ed   : > { %7651 = vmatprep.subr.bf16.mxu0 %v13084_v55  ;;  %v11725_v55 = vadd.f32 %v15137_v35, %v16158_v18 }
 0x5f0   : > { %7652 = vmatpush1.bf16.msra.mxu0 %v13082_v10 }
 0x5f1   : > { %7653 = vmatprep.subr.bf16.mxu0 %v13087_v12  ;;  %v11727_v12 = vadd.f32 %v15142_v26, %v16154_v24 }
 0x5f4   : > { %7654 = vmatpush1.bf16.msra.mxu0 %v13085_v31 }
 0x5f5   : > { %7655 = vmatprep.subr.bf16.mxu0 %v13090_v13 }
 0x5f8   : > { %7656 = vmatpush1.bf16.msra.mxu0 %v13088_v63  ;;  %v11729_v63 = vadd.f32 %v15144_v21, %v16158_v18  ;;  %v11731_v21 = vadd.f32 %v15153_v5, %v16154_v24 }
 0x5f9   : > { %7657 = vmatprep.subr.bf16.mxu0 %v13093_v41 }
 0x5fc   : > { %7658 = vmatpush1.bf16.msra.mxu0 %v13091_v42 }
 0x5fd   : > { %7659 = vmatprep.subr.bf16.mxu0 %v13096_v39 }
 0x600   : > { %7660 = vmatpush1.bf16.msra.mxu0 %v13094_v20 }
 0x601   : > { %7661 = vmatprep.subr.bf16.mxu0 %v13099_v3 }
 0x604   : > { %7662 = vmatpush1.bf16.msra.mxu0 %v13097_v59 }
 0x605   : > { %7663 = vmatprep.subr.bf16.mxu0 %v13102_v50 }
 0x608   : > { %7664 = vmatpush1.bf16.msra.mxu0 %v13100_v19  ;;  %v11733_v19 = vadd.f32 %v15159_v4, %v16158_v18 }
 0x60b   : > { %7666 = vmatmul.mubr.bf16.vlgmr.msra.gmra.mrb[0].mxu0 %v14834_v9  ;;  %v13116_v9 = vld [vmem:[%s16916_s6 + $0x30] sm:$0xff]  }
 0x60c   : > { %7675 = vmatprep.mubr.bf16.mxu0 %v14855_v60  ;;  %11583 = vmatpush3.bf16.msra.mxu1 %v13116_v9  ;;  %v13118_v60 = vld [vmem:[%s16916_s6 + $0x38] sm:$0xff]   ;;  %v11735_v9 = vadd.f32 %v15164_v1, %v16154_v24 }
 0x613   : > { %7676 = vmatmul.mubr.bf16.gmra.mrb[4].mxu0 %v14850_v38  ;;  %v13117_v38 = vld [vmem:[%s16916_s6 + $0x78] sm:$0xff]  }
 0x614   : > { %7685 = vmatprep.mubr.bf16.mxu0 %v14871_v17  ;;  %11584 = vmatprep.subr.bf16.mxu1 %v13117_v38  ;;  %v16060_v17 = vld [vmem:[%s16916_s6 + $0x80] sm:$0xff]  }
 0x615   : > { %11585 = vmatpush3.bf16.msra.mxu1 %v13118_v60 }
 0x61b   : > { %7686 = vmatmul.mubr.bf16.gmra.mrb[8].mxu0 %v14866_v6  ;;  %v13119_v6 = vld [vmem:[%s16916_s6 + $0xc0] sm:$0xff]  }
 0x61c   : > { %7695 = vmatprep.mubr.bf16.mxu0 %v14887_v49  ;;  %11610 = vmatprep.subr.bf16.mxu0 %v13119_v6  ;;  %v16071_v49 = vld [vmem:[%s16916_s6 + $0x88] sm:$0xff]  }
 0x61d   : > { %11707 = vmatprep.subr.bf16.mxu1 %v13119_v6  ;;  %11611 = vmatpush3.bf16.msra.mxu0 %v16060_v17  ;;  %v11737_v6 = vadd.f32 %v15166_v32, %v16158_v18  ;;  %v11739_v32 = vadd.f32 %v15175_v22, %v16154_v24  ;;  %v11745_v22 = vadd.f32 %v15188_v43, %v16158_v18 }
 0x61e   : > { %v11747_v43 = vadd.f32 %v15197_v16, %v16154_v24  ;;  %v11753_v16 = vadd.f32 %v15210_v30, %v16158_v18 }
 0x623   : > { %7696 = vmatmul.mubr.bf16.gmra.mrb[12].mxu0 %v14882_v51  ;;  %v16065_v51 = vld [vmem:[%s16916_s6 + $0xc8] sm:$0xff]  }
 0x624   : > { %11612 = vmatprep.subr.bf16.mxu0 %v16065_v51 }
 0x625   : > { %11613 = vmatpush3.bf16.msra.mxu0 %v16071_v49 }
 0x626   : > { %11614 = vmatprep.subr.bf16.mxu0 %v16077_v52 }
 0x629   : > { %11615 = vmatpush3.bf16.msra.mxu0 %v16083_v48 }
 0x62a   : > { %11616 = vmatprep.subr.bf16.mxu0 %v16089_v28 }
 0x62d   : > { %11617 = vmatpush3.bf16.msra.mxu0 %v16095_v47 }
 0x62e   : > { %11618 = vmatprep.subr.bf16.mxu0 %v16101_v0 }
 0x631   : > { %11619 = vmatpush3.bf16.msra.mxu0 %v16107_v54 }
 0x632   : > { %11620 = vmatprep.subr.bf16.mxu0 %v16113_v46 }
 0x635   : > { %11621 = vmatpush3.bf16.msra.mxu0 %v16120_v29 }
 0x636   : > { %11622 = vmatprep.subr.bf16.mxu0 %v16126_v11 }
 0x639   : > { %11623 = vmatpush3.bf16.msra.mxu0 %v16131_v25 }
 0x63a   : > { %11624 = vmatprep.subr.bf16.mxu0 %v16138_v44 }
 0x63d   : > { %11625 = vmatpush3.bf16.msra.mxu0 %v16143_v58 }
 0x69e   : > { %v7594_v10 = vpop.f32.mrb[16].mxu0 }
 0x69f   : > { %v11724_v31 = vadd.f32 %v11723_v14, %v7594_v10  ;;  %v7596_v13 = vpop.f32.mrb[17].mxu0 }
 0x6a0   : > { %v11726_v41 = vadd.f32 %v11725_v55, %v7596_v13  ;;  %v7598_v42 = vpop.f32.mrb[18].mxu0 }
 0x6a1   : > { %v7802_v39 = vmax.f32 %v11724_v31, 0.0  ;;  %v11728_v20 = vadd.f32 %v11727_v12, %v7598_v42  ;;  %v7600_v3 = vpop.f32.mrb[19].mxu0 }
 0x6a2   : > { %v7803_v23 = vmax.f32 %v11726_v41, 0.0  ;;  %v11730_v59 = vadd.f32 %v11729_v63, %v7600_v3  ;;  %v11741_v41 = vadd.f32 %v15181_v2, %v16158_v18 }
 0x6a3   : > { %7834 = vst [vmem:[%s16171_s19] sm:$0xff] %v7802_v39  ;;  %v7806_v26 = vmax.f32 %v11728_v20, 0.0 }
 0x6a4   : > { %7835 = vst [vmem:[%s16171_s19 + $0x8] sm:$0xff] %v7803_v23  ;;  %v7807_v35 = vmax.f32 %v11730_v59, 0.0 }
 0x6a5   : > { %7838 = vst [vmem:[%s16171_s19 + $0x20] sm:$0xff] %v7806_v26  ;;  %v7866_v50 = vpack.c.bf16 %v7806_v26, %v7802_v39 }
 0x6a6   : > { %7839 = vst [vmem:[%s16171_s19 + $0x28] sm:$0xff] %v7807_v35  ;;  %v7867_v45 = vpack.c.bf16 %v7807_v35, %v7803_v23  ;;  %v7604_v62 = vpop.f32.mrb[20].mxu0 }
 0x6a7   : > { %v11732_v38 = vadd.f32 %v11731_v21, %v7604_v62  ;;  %v7606_v60 = vpop.f32.mrb[21].mxu0 }
 0x6a8   : > { %v11734_v14 = vadd.f32 %v11733_v19, %v7606_v60  ;;  %v7608_v5 = vpop.f32.mrb[22].mxu0  ;;  %8177 = vmatprep.mubr.bf16.mxu1 %v7867_v45 }
 0x6a9   : > { %v7810_v55 = vmax.f32 %v11732_v38, 0.0  ;;  %v11736_v4 = vadd.f32 %v11735_v9, %v7608_v5  ;;  %v7610_v10 = vpop.f32.mrb[23].mxu0  ;;  %8178 = vmatmul.mubr.bf16.vlgmr.msra.gmra.mrb[240].mxu1 %v7866_v50  ;;  %v11749_v50 = vadd.f32 %v15203_v15, %v16158_v18 }
 0x6aa   : > { %v7811_v12 = vmax.f32 %v11734_v14, 0.0  ;;  %v11738_v31 = vadd.f32 %v11737_v6, %v7610_v10  ;;  %11715 = vmatpush3.bf16.msra.mxu1 %v16060_v17  ;;  %v11743_v17 = vadd.f32 %v15186_v33, %v16154_v24 }
 0x6ab   : > { %7842 = vst [vmem:[%s16171_s19 + $0x40] sm:$0xff] %v7810_v55  ;;  %v7814_v1 = vmax.f32 %v11736_v4, 0.0  ;;  %11708 = vmatprep.subr.bf16.mxu1 %v16065_v51 }
 0x6ac   : > { %7843 = vst [vmem:[%s16171_s19 + $0x48] sm:$0xff] %v7811_v12  ;;  %v7815_v13 = vmax.f32 %v11738_v31, 0.0 }
 0x6ad   : > { %7846 = vst [vmem:[%s16171_s19 + $0x60] sm:$0xff] %v7814_v1  ;;  %v7870_v63 = vpack.c.bf16 %v7814_v1, %v7810_v55 }
 0x6ae   : > { %7847 = vst [vmem:[%s16171_s19 + $0x68] sm:$0xff] %v7815_v13  ;;  %v7871_v42 = vpack.c.bf16 %v7815_v13, %v7811_v12  ;;  %v7614_v39 = vpop.f32.mrb[24].mxu0  ;;  %11716 = vmatpush3.bf16.msra.mxu1 %v16071_v49 }
 0x6af   : > { %v11740_v51 = vadd.f32 %v11739_v32, %v7614_v39  ;;  %v7616_v20 = vpop.f32.mrb[25].mxu0  ;;  %11709 = vmatprep.subr.bf16.mxu1 %v16077_v52 }
 0x6b0   : > { %v11742_v3 = vadd.f32 %v11741_v41, %v7616_v20  ;;  %v7618_v2 = vpop.f32.mrb[26].mxu0  ;;  %8185 = vmatprep.mubr.bf16.mxu1 %v7871_v42  ;;  %v16943_v42 = vld [vmem:[#allocation14_spill] sm:$0xff]  ;;  %v16944_v20 = vld [vmem:[#allocation15_spill] sm:$0xff] }
 0x6b1   : > { %v7818_v23 = vmax.f32 %v11740_v51, 0.0  ;;  %v11744_v59 = vadd.f32 %v11743_v17, %v7618_v2  ;;  %v7620_v49 = vpop.f32.mrb[27].mxu0  ;;  %8186 = vmatmul.mubr.bf16.gmra.mrb[244].mxu1 %v7870_v63 }
 0x6b2   : > { %v7819_v26 = vmax.f32 %v11742_v3, 0.0  ;;  %v11746_v35 = vadd.f32 %v11745_v22, %v7620_v49  ;;  %11717 = vmatpush3.bf16.msra.mxu1 %v16083_v48  ;;  %v11751_v48 = vadd.f32 %v15208_v40, %v16154_v24 }
 0x6b3   : > { %7850 = vst [vmem:[%s16171_s19 + $0x80] sm:$0xff] %v7818_v23  ;;  %v7822_v33 = vmax.f32 %v11744_v59, 0.0  ;;  %11710 = vmatprep.subr.bf16.mxu1 %v16089_v28 }
 0x6b4   : > { %7851 = vst [vmem:[%s16171_s19 + $0x88] sm:$0xff] %v7819_v26  ;;  %v7823_v52 = vmax.f32 %v11746_v35, 0.0 }
 0x6b5   : > { %7854 = vst [vmem:[%s16171_s19 + $0xa0] sm:$0xff] %v7822_v33  ;;  %v7874_v21 = vpack.c.bf16 %v7822_v33, %v7818_v23  ;;  %v16945_v33 = vld [vmem:[#allocation16_spill] sm:$0xff] }
 0x6b6   : > { %7855 = vst [vmem:[%s16171_s19 + $0xa8] sm:$0xff] %v7823_v52  ;;  %v7875_v19 = vpack.c.bf16 %v7823_v52, %v7819_v26  ;;  %v7624_v45 = vpop.f32.mrb[28].mxu0  ;;  %11718 = vmatpush3.bf16.msra.mxu1 %v16095_v47 }
 0x6b7   : > { %v11748_v28 = vadd.f32 %v11747_v43, %v7624_v45  ;;  %v7626_v62 = vpop.f32.mrb[29].mxu0  ;;  %11711 = vmatprep.subr.bf16.mxu1 %v16101_v0 }
 0x6b8   : > { %v11750_v9 = vadd.f32 %v11749_v50, %v7626_v62  ;;  %v7628_v15 = vpop.f32.mrb[30].mxu0  ;;  %8193 = vmatprep.mubr.bf16.mxu1 %v7875_v19 }
 0x6b9   : > { %v7826_v38 = vmax.f32 %v11748_v28, 0.0  ;;  %v11752_v60 = vadd.f32 %v11751_v48, %v7628_v15  ;;  %v7630_v47 = vpop.f32.mrb[31].mxu0  ;;  %8194 = vmatmul.mubr.bf16.gmra.mrb[248].mxu1 %v7874_v21  ;;  %v16946_v21 = vld [vmem:[#allocation17_spill] sm:$0xff]  ;;  %v16947_v48 = vld [vmem:[#allocation18_spill] sm:$0xff] }
 0x6ba   : > { %v7827_v6 = vmax.f32 %v11750_v9, 0.0  ;;  %v11754_v14 = vadd.f32 %v11753_v16, %v7630_v47  ;;  %11719 = vmatpush3.bf16.msra.mxu1 %v16107_v54  ;;  %v2010_v54 = vsub.s32 2, %v13629_v34  ;;  %v16948_v9 = vld [vmem:[#allocation19_spill] sm:$0xff] }
 0x6bb   : > { %7858 = vst [vmem:[%s16171_s19 + $0xc0] sm:$0xff] %v7826_v38  ;;  %v7830_v40 = vmax.f32 %v11752_v60, 0.0  ;;  %11712 = vmatprep.subr.bf16.mxu1 %v16113_v46  ;;  %v2014_v46 = vsub.s32 3, %v13629_v34 }
 0x6bc   : > { %7859 = vst [vmem:[%s16171_s19 + $0xc8] sm:$0xff] %v7827_v6  ;;  %v7831_v0 = vmax.f32 %v11754_v14, 0.0  ;;  %v16231_v18 = vrot.slane %v16150_v53, %v2010_v54  ;;  %v16949_v54 = vld [vmem:[#allocation20_spill] sm:$0xff] }
 0x6bd   : > { %7862 = vst [vmem:[%s16171_s19 + $0xe0] sm:$0xff] %v7830_v40  ;;  %v7878_v30 = vpack.c.bf16 %v7830_v40, %v7826_v38 }
 0x6be   : > { %7863 = vst [vmem:[%s16171_s19 + $0xe8] sm:$0xff] %v7831_v0  ;;  %v7879_v24 = vpack.c.bf16 %v7831_v0, %v7827_v6  ;;  %11720 = vmatpush3.bf16.msra.mxu1 %v16120_v29  ;;  %v16234_v29 = vrot.slane %v16150_v53, %v2014_v46  ;;  %v2640_v39 = vadd.f32 %v16943_v42, %v16231_v18 }
 0x6bf   : > { %11713 = vmatprep.subr.bf16.mxu1 %v16126_v11  ;;  %v2628_v11 = vadd.f32 %v14996_v8, %v16231_v18  ;;  %v2644_v52 = vadd.f32 %v16945_v33, %v16231_v18  ;;  %v2648_v28 = vadd.f32 %v16947_v48, %v16231_v18  ;;  %v2652_v46 = vadd.f32 %v16949_v54, %v16231_v18 }
 0x6c0   : > { %8201 = vmatprep.mubr.bf16.mxu1 %v7879_v24  ;;  %v2633_v55 = vadd.f32 %v15008_v7, %v16234_v29  ;;  %v2637_v7 = vadd.f32 %v15023_v57, %v16234_v29  ;;  %v2641_v22 = vadd.f32 %v16944_v20, %v16234_v29  ;;  %v2645_v50 = vadd.f32 %v16946_v21, %v16234_v29 }
 0x6c1   : > { %8202 = vmatmul.mubr.bf16.gmra.mrb[252].mxu1 %v7878_v30  ;;  %v2649_v15 = vadd.f32 %v16948_v9, %v16234_v29 }
 0x6c2   : > { %11721 = vmatpush3.bf16.msra.mxu1 %v16131_v25  ;;  %v2629_v25 = vadd.f32 %v15001_v61, %v16234_v29 }
 0x6c3   : > { %11714 = vmatprep.subr.bf16.mxu1 %v16138_v44 }
 0x6c6   : > { %11722 = vmatpush3.bf16.msra.mxu1 %v16143_v58  ;;  %v2632_v58 = vadd.f32 %v15006_v27, %v16231_v18  ;;  %v2636_v27 = vadd.f32 %v15017_v56, %v16231_v18 }
 0x6de   : > { %v7667_v44 = vpop.f32.mrb[0].mxu0 }
 0x6df   : > { %v11756_v34 = vadd.f32 %v7667_v44, %v2628_v11  ;;  %v7669_v5 = vpop.f32.mrb[1].mxu0 }
 0x6e0   : > { %v11758_v53 = vadd.f32 %v7669_v5, %v2629_v25  ;;  %v7671_v4 = vpop.f32.mrb[2].mxu0  ;;  %v16950_v25 = vld [vmem:[#allocation21_spill] sm:$0xff]  ;;  %v16951_v5 = vld [vmem:[#allocation22_spill] sm:$0xff] }
 0x6e1   : > { %v7804_v10 = vmax.f32 %v11756_v34, 0.0  ;;  %v11760_v12 = vadd.f32 %v7671_v4, %v2632_v58  ;;  %v7673_v8 = vpop.f32.mrb[3].mxu0  ;;  %v2653_v44 = vadd.f32 %v16950_v25, %v16234_v29 }
 0x6e2   : > { %v7805_v31 = vmax.f32 %v11758_v53, 0.0  ;;  %v11762_v1 = vadd.f32 %v7673_v8, %v2633_v55  ;;  %v2656_v55 = vadd.f32 %v16951_v5, %v16231_v18 }
 0x6e3   : > { %7836 = vst [vmem:[%s16171_s19 + $0x10] sm:$0xff] %v7804_v10  ;;  %v7808_v61 = vmax.f32 %v11760_v12, 0.0 }
 0x6e4   : > { %7837 = vst [vmem:[%s16171_s19 + $0x18] sm:$0xff] %v7805_v31  ;;  %v7809_v13 = vmax.f32 %v11762_v1, 0.0 }
 0x6e5   : > { %7840 = vst [vmem:[%s16171_s19 + $0x30] sm:$0xff] %v7808_v61  ;;  %v7868_v32 = vpack.c.bf16 %v7808_v61, %v7804_v10  ;;  %v16952_v10 = vld [vmem:[#allocation23_spill] sm:$0xff] }
 0x6e6   : > { %7841 = vst [vmem:[%s16171_s19 + $0x38] sm:$0xff] %v7809_v13  ;;  %v7869_v63 = vpack.c.bf16 %v7809_v13, %v7805_v31  ;;  %v7677_v41 = vpop.f32.mrb[4].mxu0  ;;  %v2657_v12 = vadd.f32 %v16952_v10, %v16234_v29  ;;  %v13425_v29 = vmov 0.0  }
 0x6e7   : > { %v11764_v17 = vadd.f32 %v7677_v41, %v2636_v27  ;;  %v7679_v51 = vpop.f32.mrb[5].mxu0  ;;  %11663 = vmatprep.subr.bf16.mxu1 %v13425_v29 }
 0x6e8   : > { %v11766_v56 = vadd.f32 %v7679_v51, %v2637_v7  ;;  %v7681_v3 = vpop.f32.mrb[6].mxu0  ;;  %8242 = vmatprep.mubr.bf16.mxu0 %v7869_v63 }
 0x6e9   : > { %v7812_v2 = vmax.f32 %v11764_v17, 0.0  ;;  %v11768_v57 = vadd.f32 %v7681_v3, %v2640_v39  ;;  %v7683_v23 = vpop.f32.mrb[7].mxu0  ;;  %8243 = vmatmul.mubr.bf16.vlgmr.msra.gmra.mrb[32].mxu0 %v7868_v32 }
 0x6ea   : > { %v7813_v59 = vmax.f32 %v11766_v56, 0.0  ;;  %v11770_v49 = vadd.f32 %v7683_v23, %v2641_v22 }
 0x6eb   : > { %7844 = vst [vmem:[%s16171_s19 + $0x50] sm:$0xff] %v7812_v2  ;;  %v7816_v26 = vmax.f32 %v11768_v57, 0.0 }
 0x6ec   : > { %7845 = vst [vmem:[%s16171_s19 + $0x58] sm:$0xff] %v7813_v59  ;;  %v7817_v35 = vmax.f32 %v11770_v49, 0.0 }
 0x6ed   : > { %7848 = vst [vmem:[%s16171_s19 + $0x70] sm:$0xff] %v7816_v26  ;;  %v7872_v43 = vpack.c.bf16 %v7816_v26, %v7812_v2 }
 0x6ee   : > { %7849 = vst [vmem:[%s16171_s19 + $0x78] sm:$0xff] %v7817_v35  ;;  %v7873_v19 = vpack.c.bf16 %v7817_v35, %v7813_v59  ;;  %v7687_v45 = vpop.f32.mrb[8].mxu0 }
 0x6ef   : > { %v11772_v62 = vadd.f32 %v7687_v45, %v2644_v52  ;;  %v7689_v16 = vpop.f32.mrb[9].mxu0 }
 0x6f0   : > { %v11774_v38 = vadd.f32 %v7689_v16, %v2645_v50  ;;  %v7691_v60 = vpop.f32.mrb[10].mxu0  ;;  %8250 = vmatprep.mubr.bf16.mxu1 %v7873_v19 }
 0x6f1   : > { %v7820_v47 = vmax.f32 %v11772_v62, 0.0  ;;  %v11776_v6 = vadd.f32 %v7691_v60, %v2648_v28  ;;  %v7693_v14 = vpop.f32.mrb[11].mxu0  ;;  %8251 = vmatmul.mubr.bf16.vlgmr.msra.gmra.mrb[0].mxu1 %v7872_v43  ;;  %v11238_v62 = vld [vmem:[%s16917_s7] ss:$0 sm:$0xff] }
 0x6f2   : > { %v7821_v40 = vmax.f32 %v11774_v38, 0.0  ;;  %v11778_v0 = vadd.f32 %v7693_v14, %v2649_v15 }
 0x6f3   : > { %7852 = vst [vmem:[%s16171_s19 + $0x90] sm:$0xff] %v7820_v47  ;;  %v7824_v30 = vmax.f32 %v11776_v6, 0.0 }
 0x6f4   : > { %7853 = vst [vmem:[%s16171_s19 + $0x98] sm:$0xff] %v7821_v40  ;;  %v7825_v24 = vmax.f32 %v11778_v0, 0.0 }
 0x6f5   : > { %7856 = vst [vmem:[%s16171_s19 + $0xb0] sm:$0xff] %v7824_v30  ;;  %v7876_v11 = vpack.c.bf16 %v7824_v30, %v7820_v47 }
 0x6f6   : > { %7857 = vst [vmem:[%s16171_s19 + $0xb8] sm:$0xff] %v7825_v24  ;;  %v7877_v58 = vpack.c.bf16 %v7825_v24, %v7821_v40  ;;  %v7697_v34 = vpop.f32.mrb[12].mxu0 }
 0x6f7   : > { %v11780_v53 = vadd.f32 %v7697_v34, %v2652_v46  ;;  %v7699_v4 = vpop.f32.mrb[13].mxu0 }
 0x6f8   : > { %v11782_v8 = vadd.f32 %v7699_v4, %v2653_v44  ;;  %v7701_v31 = vpop.f32.mrb[14].mxu0  ;;  %8258 = vmatprep.mubr.bf16.mxu1 %v7877_v58 }
 0x6f9   : > { %v7828_v1 = vmax.f32 %v11780_v53, 0.0  ;;  %v11784_v61 = vadd.f32 %v7701_v31, %v2656_v55  ;;  %v7703_v13 = vpop.f32.mrb[15].mxu0  ;;  %8259 = vmatmul.mubr.bf16.gmra.mrb[4].mxu1 %v7876_v11 }
 0x6fa   : > { %v7829_v27 = vmax.f32 %v11782_v8, 0.0  ;;  %v11786_v32 = vadd.f32 %v7703_v13, %v2657_v12 }
 0x6fb   : > { %7860 = vst [vmem:[%s16171_s19 + $0xd0] sm:$0xff] %v7828_v1  ;;  %v7832_v7 = vmax.f32 %v11784_v61, 0.0 }
 0x6fc   : > { %7861 = vst [vmem:[%s16171_s19 + $0xd8] sm:$0xff] %v7829_v27  ;;  %v7833_v18 = vmax.f32 %v11786_v32, 0.0 }
 0x6fd   : > { %7864 = vst [vmem:[%s16171_s19 + $0xf0] sm:$0xff] %v7832_v7  ;;  %v7880_v63 = vpack.c.bf16 %v7832_v7, %v7828_v1 }
 0x6fe   : > { %7865 = vst [vmem:[%s16171_s19 + $0xf8] sm:$0xff] %v7833_v18  ;;  %v7881_v41 = vpack.c.bf16 %v7833_v18, %v7829_v27  ;;  %s13364_s19 = sshll.u32 %s13427_s26, 4  ;;  %s13365_s19 = int_to_ptr.vmem [resolvable:$false] %s13364_s19 }
 0x6ff   : > { %s13366_s28 = scalar_lea.vmem %s13365_s19, 8192  ;;  %p13367_p0 = scmp.lt.s32.totalorder %s16856_s30, %s13365_s19 }
 0x700   : > { %8266 = vmatprep.mubr.bf16.mxu1 %v7881_v41  ;;  %p13368_p1 = scmp.lt.s32.totalorder %s13366_s28, %s13360_s20 }
 0x701   : > { %8267 = vmatmul.mubr.bf16.gmra.mrb[8].mxu1 %v7880_v63 }
 0x702   : > { %11671 = vmatprep.mubr.msk.bf16.mxu1 %vm13426_vm0, %v13425_v29  ;;  %p13369_p2 = por %p13368_p1, %p13367_p0 }
 0x704   : > { %p13370_p3 = pnand %p13369_p2, %p13363_p13 }
 0x77c   : > { %v11586_v42 = vpop.f32.mrb[240].mxu1 }
 0x77d   : > { %v11587_v39 = vpop.f32.mrb[241].mxu1 }
 0x77e   : > { %v11588_v17 = vadd.f32 %v11587_v39, %v11586_v42  ;;  %v11589_v51 = vpop.f32.mrb[242].mxu1 }
 0x77f   : > { %v11590_v20 = vpop.f32.mrb[243].mxu1 }
 0x780   : > { %v11591_v22 = vadd.f32 %v11590_v20, %v11589_v51  ;;  %v8180_v15 = vadd.f32 %v11588_v17, %v11238_v62 }
 0x782   : > { %v8183_v6 = vadd.f32 %v11591_v22, %v11238_v62 }
 0x784   : > { %v11592_v56 = vpop.f32.mrb[244].mxu1 }
 0x785   : > { %v11593_v3 = vpop.f32.mrb[245].mxu1 }
 0x786   : > { %v11594_v2 = vadd.f32 %v11593_v3, %v11592_v56  ;;  %v11595_v57 = vpop.f32.mrb[246].mxu1 }
 0x787   : > { %v11596_v23 = vpop.f32.mrb[247].mxu1 }
 0x788   : > { %v11597_v59 = vadd.f32 %v11596_v23, %v11595_v57  ;;  %v8188_v11 = vadd.f32 %v11594_v2, %v11238_v62 }
 0x78a   : > { %v8191_v5 = vadd.f32 %v11597_v59, %v11238_v62 }
 0x78c   : > { %v11598_v49 = vpop.f32.mrb[248].mxu1 }
 0x78d   : > { %v11599_v26 = vpop.f32.mrb[249].mxu1 }
 0x78e   : > { %v11600_v35 = vadd.f32 %v11599_v26, %v11598_v49  ;;  %v11601_v33 = vpop.f32.mrb[250].mxu1 }
 0x78f   : > { %v11602_v52 = vpop.f32.mrb[251].mxu1 }
 0x790   : > { %v11603_v43 = vadd.f32 %v11602_v52, %v11601_v33  ;;  %v8196_v1 = vadd.f32 %v11600_v35, %v11238_v62  ;;  %v13142_v33 = vld [vmem:[%s16919_s9 + $0x4] ss:$8 sps:$4 sm:$0xff]  }
 0x792   : > { %v8199_v7 = vadd.f32 %v11603_v43, %v11238_v62  ;;  %v13135_v43 = vld [vmem:[%s16918_s8] sm:$0xff]  }
 0x794   : > { %v11604_v21 = vpop.f32.mrb[252].mxu1 }
 0x795   : > { %v11605_v50 = vpop.f32.mrb[253].mxu1 }
 0x796   : > { %v11606_v19 = vadd.f32 %v11605_v50, %v11604_v21  ;;  %v11607_v45 = vpop.f32.mrb[254].mxu1  ;;  %v13140_v21 = vld [vmem:[%s16919_s9] ss:$8 sps:$4 sm:$0xff]   ;;  %v13145_v50 = vld [vmem:[%s16919_s9 + $0x14] ss:$8 sps:$4 sm:$0xff]  }
 0x797   : > { %v11608_v48 = vpop.f32.mrb[255].mxu1 }
 0x798   : > { %v11609_v28 = vadd.f32 %v11608_v48, %v11607_v45  ;;  %v8204_v20 = vadd.f32 %v11606_v19, %v11238_v62  ;;  %v13143_v19 = vld [vmem:[%s16919_s9 + $0x10] ss:$8 sps:$4 sm:$0xff]   ;;  %v13149_v45 = vld [vmem:[%s16919_s9 + $0x24] ss:$8 sps:$4 sm:$0xff]  }
 0x799   : > { %v13136_v48 = vld [vmem:[%s16918_s8 + $0x8] sm:$0xff]  }
 0x79a   : > { %v8207_v57 = vadd.f32 %v11609_v28, %v11238_v62  ;;  %v13147_v28 = vld [vmem:[%s16919_s9 + $0x20] ss:$8 sps:$4 sm:$0xff]   ;;  %v13152_v62 = vld [vmem:[%s16919_s9 + $0x34] ss:$8 sps:$4 sm:$0xff]  }
 0x7bc   : > { %v11626_v16 = vpop.f32.mrb[32].mxu0 }
 0x7bd   : > { %v11627_v9 = vpop.f32.mrb[33].mxu0 }
 0x7be   : > { %v11628_v38 = vadd.f32 %v11627_v9, %v11626_v16  ;;  %v11629_v60 = vpop.f32.mrb[34].mxu0  ;;  %v13150_v16 = vld [vmem:[%s16919_s9 + $0x30] ss:$8 sps:$4 sm:$0xff]   ;;  %v13155_v9 = vld [vmem:[%s16919_s9 + $0x44] ss:$8 sps:$4 sm:$0xff]  }
 0x7bf   : > { %v11630_v47 = vpop.f32.mrb[35].mxu0 }
 0x7c0   : > { %v8245_v14 = vadd.f32 %v11628_v38, %v8180_v15  ;;  %v11631_v40 = vadd.f32 %v11630_v47, %v11629_v60  ;;  %v13137_v15 = vld [vmem:[%s16918_s8 + $0x10] sm:$0xff]   ;;  %v13153_v38 = vld [vmem:[%s16919_s9 + $0x40] ss:$8 sps:$4 sm:$0xff]  }
 0x7c1   : > { %v13159_v60 = vld [vmem:[%s16919_s9 + $0x54] ss:$8 sps:$4 sm:$0xff]   ;;  %v13157_v47 = vld [vmem:[%s16919_s9 + $0x50] ss:$8 sps:$4 sm:$0xff]  }
 0x7c2   : > { %v8248_v0 = vadd.f32 %v11631_v40, %v8183_v6  ;;  %v8275_v30 = vmax.f32 %v8245_v14, 0.0  ;;  %v13163_v6 = vld [vmem:[%s16919_s9 + $0x64] ss:$8 sps:$4 sm:$0xff]   ;;  %v13138_v14 = vld [vmem:[%s16918_s8 + $0x18] sm:$0xff]   ;;  %v13161_v40 = vld [vmem:[%s16919_s9 + $0x60] ss:$8 sps:$4 sm:$0xff]  }
 0x7c4   : > { %v8276_v24 = vmax.f32 %v8248_v0, 0.0  ;;  %v11632_v54 = vpop.f32.mrb[0].mxu1  ;;  %v13139_v0 = vld [vmem:[%s16918_s8 + $0x20] sm:$0xff]  }
 0x7c5   : > { %v11633_v46 = vpop.f32.mrb[1].mxu1 }
 0x7c6   : > { %v8283_v25 = vpack.c.bf16 %v8276_v24, %v8275_v30  ;;  %v11634_v44 = vadd.f32 %v11633_v46, %v11632_v54  ;;  %v11635_v58 = vpop.f32.mrb[2].mxu1  ;;  %v13146_v30 = vld [vmem:[%s16918_s8 + $0x28] sm:$0xff]   ;;  %v13156_v24 = vld [vmem:[%s16918_s8 + $0x30] sm:$0xff]   ;;  %v13160_v54 = vld [vmem:[%s16918_s8 + $0x38] sm:$0xff]  }
 0x7c7   : > { %v11636_v34 = vpop.f32.mrb[3].mxu1  ;;  %v13164_v46 = vld [vmem:[%s16918_s8 + $0x40] sm:$0xff]  }
 0x7c8   : > { %v8253_v55 = vadd.f32 %v11634_v44, %v8188_v11  ;;  %v11637_v53 = vadd.f32 %v11636_v34, %v11635_v58  ;;  %11664 = vmatpush3.bf16.msra.mxu1 %v8283_v25  ;;  %v16953_v11 = vmov 0   ;;  %v13167_v25 = vld [vmem:[%s16919_s9 + $0x74] ss:$8 sps:$4 sm:$0xff]   ;;  %v13165_v44 = vld [vmem:[%s16919_s9 + $0x70] ss:$8 sps:$4 sm:$0xff]  }
 0x7c9   : > { %11665 = vmatprep.subr.bf16.mxu1 %v13425_v29 }
 0x7ca   : > { %v8256_v4 = vadd.f32 %v11637_v53, %v8191_v5  ;;  %v8277_v10 = vmax.f32 %v8253_v55, 0.0  ;;  %v13168_v55 = vld [vmem:[%s16919_s9 + $0x80] ss:$8 sps:$4 sm:$0xff]  }
 0x7cc   : > { %v8278_v12 = vmax.f32 %v8256_v4, 0.0  ;;  %v11638_v8 = vpop.f32.mrb[4].mxu1 }
 0x7cd   : > { %v11639_v31 = vpop.f32.mrb[5].mxu1 }
 0x7ce   : > { %v8284_v61 = vpack.c.bf16 %v8278_v12, %v8277_v10  ;;  %v11640_v13 = vadd.f32 %v11639_v31, %v11638_v8  ;;  %v11641_v27 = vpop.f32.mrb[6].mxu1  ;;  %v13173_v10 = vld [vmem:[%s16919_s9 + $0x94] ss:$8 sps:$4 sm:$0xff]   ;;  %v13171_v12 = vld [vmem:[%s16919_s9 + $0x90] ss:$8 sps:$4 sm:$0xff]  }
 0x7cf   : > { %v11642_v32 = vpop.f32.mrb[7].mxu1  ;;  %v13176_v8 = vld [vmem:[%s16919_s9 + $0xa4] ss:$8 sps:$4 sm:$0xff]  }
 0x7d0   : > { %v8261_v18 = vadd.f32 %v11640_v13, %v8196_v1  ;;  %v11643_v63 = vadd.f32 %v11642_v32, %v11641_v27  ;;  %11666 = vmatpush3.bf16.msra.mxu1 %v8284_v61  ;;  %v13174_v61 = vld [vmem:[%s16919_s9 + $0xa0] ss:$8 sps:$4 sm:$0xff]   ;;  %v13179_v27 = vld [vmem:[%s16919_s9 + $0xb4] ss:$8 sps:$4 sm:$0xff]  }
 0x7d1   : > { %11667 = vmatprep.subr.bf16.mxu1 %v13425_v29 }
 0x7d2   : > { %v8264_v41 = vadd.f32 %v11643_v63, %v8199_v7  ;;  %v8279_v42 = vmax.f32 %v8261_v18, 0.0  ;;  %v13177_v18 = vld [vmem:[%s16919_s9 + $0xb0] ss:$8 sps:$4 sm:$0xff]   ;;  %v13182_v63 = vld [vmem:[%s16919_s9 + $0xc4] ss:$8 sps:$4 sm:$0xff]  }
 0x7d4   : > { %v8280_v39 = vmax.f32 %v8264_v41, 0.0  ;;  %v11644_v17 = vpop.f32.mrb[8].mxu1 }
 0x7d5   : > { %v11645_v51 = vpop.f32.mrb[9].mxu1 }
 0x7d6   : > { %v8285_v22 = vpack.c.bf16 %v8280_v39, %v8279_v42  ;;  %v11646_v56 = vadd.f32 %v11645_v51, %v11644_v17  ;;  %v11647_v3 = vpop.f32.mrb[10].mxu1  ;;  %v13180_v39 = vld [vmem:[%s16919_s9 + $0xc0] ss:$8 sps:$4 sm:$0xff]   ;;  %v13185_v51 = vld [vmem:[%s16919_s9 + $0xd4] ss:$8 sps:$4 sm:$0xff]  }
 0x7d7   : > { %v11648_v2 = vpop.f32.mrb[11].mxu1 }
 0x7d8   : > { %v8269_v23 = vadd.f32 %v11646_v56, %v8204_v20  ;;  %v11649_v59 = vadd.f32 %v11648_v2, %v11647_v3  ;;  %11668 = vmatpush3.bf16.msra.mxu1 %v8285_v22  ;;  %v13183_v56 = vld [vmem:[%s16919_s9 + $0xd0] ss:$8 sps:$4 sm:$0xff]   ;;  %v13188_v3 = vld [vmem:[%s16919_s9 + $0xe4] ss:$8 sps:$4 sm:$0xff]  }
 0x7d9   : > { %11669 = vmatprep.subr.bf16.mxu1 %v13425_v29 }
 0x7da   : > { %v8272_v49 = vadd.f32 %v11649_v59, %v8207_v57  ;;  %v8281_v26 = vmax.f32 %v8269_v23, 0.0  ;;  %v13186_v23 = vld [vmem:[%s16919_s9 + $0xe0] ss:$8 sps:$4 sm:$0xff]  }
 0x7dc   : > { %v8282_v35 = vmax.f32 %v8272_v49, 0.0  ;;  %v13191_v49 = vld [vmem:[%s16919_s9 + $0xf4] ss:$8 sps:$4 sm:$0xff]  }
 0x7de   : > { %v8286_v52 = vpack.c.bf16 %v8282_v35, %v8281_v26 }
 0x7e0   : > { %11670 = vmatpush3.bf16.msra.mxu1 %v8286_v52  ;;  %v13194_v52 = vld [vmem:[%s16919_s9 + $0x104] ss:$8 sps:$4 sm:$0xff]  }
 0x7e1   : > { %8636 = vmatprep.subr.bf16.mxu1 %v13142_v33  ;;  %v13189_v33 = vld [vmem:[%s16919_s9 + $0xf0] ss:$8 sps:$4 sm:$0xff]  }
 0x7e3   : > { %11672 = vmatmul.mubr.msk.bf16.vlgmr.msra.gmra.mrb[12].mxu1 %vm8358_vm1, %v13135_v43 }
 0x7e4   : > { %11675 = vmatprep.mubr.msk.bf16.mxu1 %vm13426_vm0, %v13425_v29  ;;  %8637 = vmatpush1.bf16.msra.mxu1 %v13140_v21 }
 0x7e5   : > { %8638 = vmatprep.subr.bf16.mxu1 %v13145_v50  ;;  %v13192_v50 = vld [vmem:[%s16919_s9 + $0x100] ss:$8 sps:$4 sm:$0xff]  }
 0x7e8   : > { %8639 = vmatpush1.bf16.msra.mxu1 %v13143_v19 }
 0x7e9   : > { %8640 = vmatprep.subr.bf16.mxu1 %v13149_v45  ;;  %v13197_v45 = vld [vmem:[%s16919_s9 + $0x114] ss:$8 sps:$4 sm:$0xff]  }
 0x7eb   : > { %11676 = vmatmul.mubr.msk.bf16.gmra.mrb[16].mxu1 %vm8358_vm1, %v13136_v48 }
 0x7ec   : > { %11679 = vmatprep.mubr.msk.bf16.mxu1 %vm13426_vm0, %v13425_v29  ;;  %8641 = vmatpush1.bf16.msra.mxu1 %v13147_v28 }
 0x7ed   : > { %8642 = vmatprep.subr.bf16.mxu1 %v13152_v62  ;;  %v13195_v62 = vld [vmem:[%s16919_s9 + $0x110] ss:$8 sps:$4 sm:$0xff]  }
 0x7f0   : > { %8643 = vmatpush1.bf16.msra.mxu1 %v13150_v16  ;;  %v13200_v16 = vld [vmem:[%s16919_s9 + $0x124] ss:$8 sps:$4 sm:$0xff]  }
 0x7f1   : > { %8644 = vmatprep.subr.bf16.mxu1 %v13155_v9 }
 0x7f3   : > { %11680 = vmatmul.mubr.msk.bf16.gmra.mrb[20].mxu1 %vm8358_vm1, %v13137_v15 }
 0x7f4   : > { %11683 = vmatprep.mubr.msk.bf16.mxu1 %vm13426_vm0, %v13425_v29  ;;  %8645 = vmatpush1.bf16.msra.mxu1 %v13153_v38  ;;  %v13198_v38 = vld [vmem:[%s16919_s9 + $0x120] ss:$8 sps:$4 sm:$0xff]  }
 0x7f5   : > { %8646 = vmatprep.subr.bf16.mxu1 %v13159_v60 }
 0x7f8   : > { %8647 = vmatpush1.bf16.msra.mxu1 %v13157_v47  ;;  %v13203_v47 = vld [vmem:[%s16919_s9 + $0x134] ss:$8 sps:$4 sm:$0xff]  }
 0x7f9   : > { %8648 = vmatprep.subr.bf16.mxu1 %v13163_v6 }
 0x7fb   : > { %11684 = vmatmul.mubr.msk.bf16.gmra.mrb[24].mxu1 %vm8358_vm1, %v13138_v14 }
 0x7fc   : > { %11687 = vmatprep.mubr.msk.bf16.mxu1 %vm13426_vm0, %v13425_v29  ;;  %8649 = vmatpush1.bf16.msra.mxu1 %v13161_v40  ;;  %v13201_v40 = vld [vmem:[%s16919_s9 + $0x130] ss:$8 sps:$4 sm:$0xff]  }
 0x7fd   : > { %8650 = vmatprep.subr.bf16.mxu1 %v13167_v25  ;;  %v13210_v25 = vld [vmem:[%s16919_s9 + $0x160] ss:$8 sps:$4 sm:$0xff]  }
 0x800   : > { %8651 = vmatpush1.bf16.msra.mxu1 %v13165_v44  ;;  %v13215_v44 = vld [vmem:[%s16919_s9 + $0x174] ss:$8 sps:$4 sm:$0xff]  }
 0x803   : > { %11688 = vmatmul.mubr.msk.bf16.gmra.mrb[28].mxu1 %vm8358_vm1, %v13139_v0  ;;  %v13206_v0 = vld [vmem:[%s16919_s9 + $0x144] ss:$8 sps:$4 sm:$0xff]  }
 0x804   : > { %11691 = vmatprep.mubr.msk.bf16.mxu1 %vm13426_vm0, %v13425_v29 }
 0x80b   : > { %11692 = vmatmul.mubr.msk.bf16.gmra.mrb[32].mxu1 %vm8358_vm1, %v13146_v30  ;;  %v13204_v30 = vld [vmem:[%s16919_s9 + $0x140] ss:$8 sps:$4 sm:$0xff]  }
 0x80c   : > { %11695 = vmatprep.mubr.msk.bf16.mxu1 %vm13426_vm0, %v13425_v29 }
 0x813   : > { %11696 = vmatmul.mubr.msk.bf16.gmra.mrb[36].mxu1 %vm8358_vm1, %v13156_v24  ;;  %v13209_v24 = vld [vmem:[%s16919_s9 + $0x154] ss:$8 sps:$4 sm:$0xff]  }
 0x814   : > { %11699 = vmatprep.mubr.msk.bf16.mxu1 %vm13426_vm0, %v13425_v29 }
 0x81b   : > { %11700 = vmatmul.mubr.msk.bf16.gmra.mrb[40].mxu1 %vm8358_vm1, %v13160_v54  ;;  %v13207_v54 = vld [vmem:[%s16919_s9 + $0x150] ss:$8 sps:$4 sm:$0xff]  }
 0x81c   : > { %11703 = vmatprep.mubr.msk.bf16.mxu1 %vm13426_vm0, %v13425_v29  ;;  %v13170_v29 = vld [vmem:[%s16919_s9 + $0x84] ss:$8 sps:$4 sm:$0xff]  }
 0x81d   : > { %8789 = vmatprep.subr.bf16.mxu1 %v13170_v29  ;;  %v13213_v29 = vld [vmem:[%s16919_s9 + $0x170] ss:$8 sps:$4 sm:$0xff]  }
 0x823   : > { %11704 = vmatmul.mubr.msk.bf16.gmra.mrb[44].mxu1 %vm8358_vm1, %v13164_v46  ;;  %v13212_v46 = vld [vmem:[%s16919_s9 + $0x164] ss:$8 sps:$4 sm:$0xff]  }
 0x824   : > { %8668 = vmatprep.mubr.bf16.mxu1 %v16953_v11 }
 0x8b6   : > { %v8420_v58 = vpop.f32.mrb[12].mxu1 }
 0x8b7   : > { %v11673_v34 = vpop.f32.mrb[13].mxu1 }
 0x8b8   : > { %v8423_v5 = vpop.f32.mrb[14].mxu1  ;;  %v13218_v34 = vld [vmem:[%s16919_s9 + $0x184] ss:$8 sps:$4 sm:$0xff]  }
 0x8b9   : > { %v8491_v53 = vpack.c.bf16 %v8423_v5, %v8420_v58  ;;  %v11674_v4 = vpop.f32.mrb[15].mxu1 }
 0x8ba   : > { %v13216_v4 = vld [vmem:[%s16919_s9 + $0x180] ss:$8 sps:$4 sm:$0xff]  }
 0x8bb   : > { %8669 = vmatmul.mubr.bf16.vlgmr.msra.gmra.mrb[48].mxu1 %v8491_v53 }
 0x8bc   : > { %8790 = vmatpush1.bf16.msra.mxu1 %v13168_v55  ;;  %8821 = vmatprep.mubr.bf16.mxu1 %v16953_v11 }
 0x8bd   : > { %8791 = vmatprep.subr.bf16.mxu1 %v13173_v10 }
 0x8be   : > { %v8428_v31 = vpop.f32.mrb[16].mxu1 }
 0x8bf   : > { %v11677_v1 = vpop.f32.mrb[17].mxu1 }
 0x8c0   : > { %8792 = vmatpush1.bf16.msra.mxu1 %v13171_v12  ;;  %v8431_v13 = vpop.f32.mrb[18].mxu1  ;;  %v13221_v12 = vld [vmem:[%s16919_s9 + $0x194] ss:$8 sps:$4 sm:$0xff]   ;;  %v13224_v1 = vld [vmem:[%s16919_s9 + $0x1a4] ss:$8 sps:$4 sm:$0xff]  }
 0x8c1   : > { %8793 = vmatprep.subr.bf16.mxu1 %v13176_v8  ;;  %v8492_v32 = vpack.c.bf16 %v8431_v13, %v8428_v31  ;;  %v11678_v7 = vpop.f32.mrb[19].mxu1  ;;  %v13219_v8 = vld [vmem:[%s16919_s9 + $0x190] ss:$8 sps:$4 sm:$0xff]  }
 0x8c4   : > { %8794 = vmatpush1.bf16.msra.mxu1 %v13174_v61 }
 0x8c5   : > { %8795 = vmatprep.subr.bf16.mxu1 %v13179_v27 }
 0x8c6   : > { %v16422_v41 = vpop.f32.mrb[20].mxu1 }
 0x8c7   : > { %v11681_v42 = vpop.f32.mrb[21].mxu1 }
 0x8c8   : > { %8796 = vmatpush1.bf16.msra.mxu1 %v13177_v18  ;;  %v16427_v17 = vpop.f32.mrb[22].mxu1  ;;  %v13227_v18 = vld [vmem:[%s16919_s9 + $0x1b4] ss:$8 sps:$4 sm:$0xff]   ;;  %v13230_v42 = vld [vmem:[%s16919_s9 + $0x1c4] ss:$8 sps:$4 sm:$0xff]  }
 0x8c9   : > { %8797 = vmatprep.subr.bf16.mxu1 %v13182_v63  ;;  %v8493_v20 = vpack.c.bf16 %v16427_v17, %v16422_v41  ;;  %v11682_v22 = vpop.f32.mrb[23].mxu1  ;;  %v13225_v63 = vld [vmem:[%s16919_s9 + $0x1b0] ss:$8 sps:$4 sm:$0xff]  }
 0x8cc   : > { %8798 = vmatpush1.bf16.msra.mxu1 %v13180_v39 }
 0x8cd   : > { %8799 = vmatprep.subr.bf16.mxu1 %v13185_v51 }
 0x8ce   : > { %v16440_v2 = vpop.f32.mrb[24].mxu1 }
 0x8cf   : > { %v11685_v57 = vpop.f32.mrb[25].mxu1 }
 0x8d0   : > { %8800 = vmatpush1.bf16.msra.mxu1 %v13183_v56  ;;  %v16445_v59 = vpop.f32.mrb[26].mxu1  ;;  %v13233_v56 = vld [vmem:[%s16919_s9 + $0x1d4] ss:$8 sps:$4 sm:$0xff]   ;;  %v13236_v57 = vld [vmem:[%s16919_s9 + $0x1e4] ss:$8 sps:$4 sm:$0xff]  }
 0x8d1   : > { %8801 = vmatprep.subr.bf16.mxu1 %v13188_v3  ;;  %v8494_v26 = vpack.c.bf16 %v16445_v59, %v16440_v2  ;;  %v11686_v35 = vpop.f32.mrb[27].mxu1  ;;  %v13231_v3 = vld [vmem:[%s16919_s9 + $0x1d0] ss:$8 sps:$4 sm:$0xff]   ;;  %v13251_v2 = vld [vmem:[%s16919_s9 + $0x234] ss:$8 sps:$4 sm:$0xff]  }
 0x8d2   : > { %v13237_v35 = vld [vmem:[%s16919_s9 + $0x1f0] ss:$8 sps:$4 sm:$0xff]  }
 0x8d3   : > { %v13249_v59 = vld [vmem:[%s16919_s9 + $0x230] ss:$8 sps:$4 sm:$0xff]  }
 0x8d4   : > { %8802 = vmatpush1.bf16.msra.mxu1 %v13186_v23  ;;  %v13234_v23 = vld [vmem:[%s16919_s9 + $0x1e0] ss:$8 sps:$4 sm:$0xff]  }
 0x8d5   : > { %8803 = vmatprep.subr.bf16.mxu1 %v13191_v49  ;;  %v13239_v49 = vld [vmem:[%s16919_s9 + $0x1f4] ss:$8 sps:$4 sm:$0xff]  }
 0x8d6   : > { %v16458_v43 = vpop.f32.mrb[28].mxu1 }
 0x8d7   : > { %v11689_v21 = vpop.f32.mrb[29].mxu1 }
 0x8d8   : > { %8804 = vmatpush1.bf16.msra.mxu1 %v13189_v33  ;;  %v16463_v19 = vpop.f32.mrb[30].mxu1  ;;  %v13242_v33 = vld [vmem:[%s16919_s9 + $0x204] ss:$8 sps:$4 sm:$0xff]   ;;  %v13245_v21 = vld [vmem:[%s16919_s9 + $0x214] ss:$8 sps:$4 sm:$0xff]  }
 0x8d9   : > { %8942 = vmatprep.subr.bf16.mxu1 %v13194_v52  ;;  %v8495_v48 = vpack.c.bf16 %v16463_v19, %v16458_v43  ;;  %v11690_v28 = vpop.f32.mrb[31].mxu1  ;;  %v13240_v52 = vld [vmem:[%s16919_s9 + $0x200] ss:$8 sps:$4 sm:$0xff]   ;;  %v13275_v43 = vld [vmem:[%s16919_s9 + $0x2b4] ss:$8 sps:$4 sm:$0xff]  }
 0x8da   : > { %v13246_v28 = vld [vmem:[%s16919_s9 + $0x220] ss:$8 sps:$4 sm:$0xff]   ;;  %v13273_v19 = vld [vmem:[%s16919_s9 + $0x2b0] ss:$8 sps:$4 sm:$0xff]  }
 0x8db   : > { %8822 = vmatmul.mubr.bf16.vlgmr.msra.gmra.mrb[48].mxu1 %v8492_v32  ;;  %v13222_v32 = vld [vmem:[%s16919_s9 + $0x1a0] ss:$8 sps:$4 sm:$0xff]  }
 0x8dc   : > { %8943 = vmatpush1.bf16.msra.mxu1 %v13192_v50  ;;  %8974 = vmatprep.mubr.bf16.mxu1 %v16953_v11  ;;  %v13243_v50 = vld [vmem:[%s16919_s9 + $0x210] ss:$8 sps:$4 sm:$0xff]  }
 0x8dd   : > { %8944 = vmatprep.subr.bf16.mxu1 %v13197_v45  ;;  %v13248_v45 = vld [vmem:[%s16919_s9 + $0x224] ss:$8 sps:$4 sm:$0xff]  }
 0x8de   : > { %v16477_v9 = vpop.f32.mrb[32].mxu1 }
 0x8df   : > { %v11693_v15 = vpop.f32.mrb[33].mxu1 }
 0x8e0   : > { %8945 = vmatpush1.bf16.msra.mxu1 %v13195_v62  ;;  %v16482_v60 = vpop.f32.mrb[34].mxu1  ;;  %v13252_v62 = vld [vmem:[%s16919_s9 + $0x240] ss:$8 sps:$4 sm:$0xff]   ;;  %v13255_v15 = vld [vmem:[%s16919_s9 + $0x250] ss:$8 sps:$4 sm:$0xff]  }
 0x8e1   : > { %8946 = vmatprep.subr.bf16.mxu1 %v13200_v16  ;;  %v8496_v6 = vpack.c.bf16 %v16482_v60, %v16477_v9  ;;  %v11694_v14 = vpop.f32.mrb[35].mxu1  ;;  %v13257_v16 = vld [vmem:[%s16919_s9 + $0x254] ss:$8 sps:$4 sm:$0xff]   ;;  %v13297_v60 = vld [vmem:[%s16919_s9 + $0x330] ss:$8 sps:$4 sm:$0xff]  }
 0x8e2   : > { %v13263_v14 = vld [vmem:[%s16919_s9 + $0x274] ss:$8 sps:$4 sm:$0xff]  }
 0x8e3   : > { %v13299_v9 = vld [vmem:[%s16919_s9 + $0x334] ss:$8 sps:$4 sm:$0xff]  }
 0x8e4   : > { %8947 = vmatpush1.bf16.msra.mxu1 %v13198_v38  ;;  %v13260_v38 = vld [vmem:[%s16919_s9 + $0x264] ss:$8 sps:$4 sm:$0xff]  }
 0x8e5   : > { %8948 = vmatprep.subr.bf16.mxu1 %v13203_v47  ;;  %v13258_v47 = vld [vmem:[%s16919_s9 + $0x260] ss:$8 sps:$4 sm:$0xff]  }
 0x8e6   : > { %v16516_v58 = vpop.f32.mrb[36].mxu1 }
 0x8e7   : > { %v11697_v5 = vpop.f32.mrb[37].mxu1 }
 0x8e8   : > { %8949 = vmatpush1.bf16.msra.mxu1 %v13201_v40  ;;  %v16521_v55 = vpop.f32.mrb[38].mxu1  ;;  %v13261_v40 = vld [vmem:[%s16919_s9 + $0x270] ss:$8 sps:$4 sm:$0xff]   ;;  %v13284_v5 = vld [vmem:[%s16919_s9 + $0x2e4] ss:$8 sps:$4 sm:$0xff]  }
 0x8e9   : > { %8950 = vmatprep.subr.bf16.mxu1 %v13206_v0  ;;  %v11698_v53 = vpop.f32.mrb[39].mxu1  ;;  %v8497_v10 = vpack.c.bf16 %v16521_v55, %v16516_v58  ;;  %v13266_v0 = vld [vmem:[%s16919_s9 + $0x284] ss:$8 sps:$4 sm:$0xff]   ;;  %v13323_v58 = vld [vmem:[%s16919_s9 + $0x3b4] ss:$8 sps:$4 sm:$0xff]  }
 0x8ea   : > { %v13282_v53 = vld [vmem:[%s16919_s9 + $0x2e0] ss:$8 sps:$4 sm:$0xff]   ;;  %v13321_v55 = vld [vmem:[%s16919_s9 + $0x3b0] ss:$8 sps:$4 sm:$0xff]  }
 0x8ec   : > { %8951 = vmatpush1.bf16.msra.mxu1 %v13204_v30  ;;  %v13264_v30 = vld [vmem:[%s16919_s9 + $0x280] ss:$8 sps:$4 sm:$0xff]  }
 0x8ed   : > { %8952 = vmatprep.subr.bf16.mxu1 %v13209_v24  ;;  %v13269_v24 = vld [vmem:[%s16919_s9 + $0x294] ss:$8 sps:$4 sm:$0xff]  }
 0x8ee   : > { %v16538_v31 = vpop.f32.mrb[40].mxu1 }
 0x8ef   : > { %v11701_v61 = vpop.f32.mrb[41].mxu1 }
 0x8f0   : > { %8953 = vmatpush1.bf16.msra.mxu1 %v13207_v54  ;;  %v16543_v13 = vpop.f32.mrb[42].mxu1  ;;  %v13267_v54 = vld [vmem:[%s16919_s9 + $0x290] ss:$8 sps:$4 sm:$0xff]   ;;  %v13293_v61 = vld [vmem:[%s16919_s9 + $0x314] ss:$8 sps:$4 sm:$0xff]  }
 0x8f1   : > { %8954 = vmatprep.subr.bf16.mxu1 %v13212_v46  ;;  %v11702_v27 = vpop.f32.mrb[43].mxu1  ;;  %v8498_v7 = vpack.c.bf16 %v16543_v13, %v16538_v31  ;;  %v13272_v46 = vld [vmem:[%s16919_s9 + $0x2a4] ss:$8 sps:$4 sm:$0xff]   ;;  %v13347_v31 = vld [vmem:[%s16919_s9 + $0x434] ss:$8 sps:$4 sm:$0xff]  }
 0x8f2   : > { %v13291_v27 = vld [vmem:[%s16919_s9 + $0x310] ss:$8 sps:$4 sm:$0xff]   ;;  %v13350_v13 = vld [vmem:[%s16919_s9 + $0x444] ss:$8 sps:$4 sm:$0xff]  }
 0x8f4   : > { %8955 = vmatpush1.bf16.msra.mxu1 %v13210_v25  ;;  %v13270_v25 = vld [vmem:[%s16919_s9 + $0x2a0] ss:$8 sps:$4 sm:$0xff]  }
 0x8f5   : > { %8956 = vmatprep.subr.bf16.mxu1 %v13215_v44  ;;  %v13276_v44 = vld [vmem:[%s16919_s9 + $0x2c0] ss:$8 sps:$4 sm:$0xff]  }
 0x8f6   : > { %v16556_v41 = vpop.f32.mrb[44].mxu1 }
 0x8f7   : > { %v11705_v39 = vpop.f32.mrb[45].mxu1 }
 0x8f8   : > { %8957 = vmatpush1.bf16.msra.mxu1 %v13213_v29  ;;  %v16561_v17 = vpop.f32.mrb[46].mxu1  ;;  %v13281_v29 = vld [vmem:[%s16919_s9 + $0x2d4] ss:$8 sps:$4 sm:$0xff]   ;;  %v13303_v39 = vld [vmem:[%s16919_s9 + $0x350] ss:$8 sps:$4 sm:$0xff]  }
 0x8f9   : > { %9095 = vmatprep.subr.bf16.mxu1 %v13218_v34  ;;  %v11706_v51 = vpop.f32.mrb[47].mxu1  ;;  %v8499_v22 = vpack.c.bf16 %v16561_v17, %v16556_v41  ;;  %v13279_v34 = vld [vmem:[%s16919_s9 + $0x2d0] ss:$8 sps:$4 sm:$0xff]  }
 0x8fa   : > { %v13308_v51 = vld [vmem:[%s16919_s9 + $0x364] ss:$8 sps:$4 sm:$0xff]  }
 0x8fb   : > { %8975 = vmatmul.mubr.bf16.vlgmr.msra.gmra.mrb[48].mxu1 %v8493_v20  ;;  %v13228_v20 = vld [vmem:[%s16919_s9 + $0x1c0] ss:$8 sps:$4 sm:$0xff]  }
 0x8fc   : > { %9096 = vmatpush1.bf16.msra.mxu1 %v13216_v4  ;;  %9127 = vmatprep.mubr.bf16.mxu1 %v16953_v11  ;;  %v13287_v4 = vld [vmem:[%s16919_s9 + $0x2f4] ss:$8 sps:$4 sm:$0xff]  }
 0x8fd   : > { %9097 = vmatprep.subr.bf16.mxu1 %v13221_v12  ;;  %v13285_v12 = vld [vmem:[%s16919_s9 + $0x2f0] ss:$8 sps:$4 sm:$0xff]  }
 0x900   : > { %9098 = vmatpush1.bf16.msra.mxu1 %v13219_v8  ;;  %v13290_v8 = vld [vmem:[%s16919_s9 + $0x304] ss:$8 sps:$4 sm:$0xff]  }
 0x901   : > { %9099 = vmatprep.subr.bf16.mxu1 %v13224_v1  ;;  %v13288_v1 = vld [vmem:[%s16919_s9 + $0x300] ss:$8 sps:$4 sm:$0xff]  }
 0x904   : > { %9100 = vmatpush1.bf16.msra.mxu1 %v13222_v32  ;;  %v13296_v32 = vld [vmem:[%s16919_s9 + $0x324] ss:$8 sps:$4 sm:$0xff]  }
 0x905   : > { %9101 = vmatprep.subr.bf16.mxu1 %v13227_v18  ;;  %v13294_v18 = vld [vmem:[%s16919_s9 + $0x320] ss:$8 sps:$4 sm:$0xff]  }
 0x908   : > { %9102 = vmatpush1.bf16.msra.mxu1 %v13225_v63  ;;  %v13300_v63 = vld [vmem:[%s16919_s9 + $0x340] ss:$8 sps:$4 sm:$0xff]  }
 0x909   : > { %9103 = vmatprep.subr.bf16.mxu1 %v13230_v42  ;;  %v13305_v42 = vld [vmem:[%s16919_s9 + $0x354] ss:$8 sps:$4 sm:$0xff]  }
 0x90c   : > { %9104 = vmatpush1.bf16.msra.mxu1 %v13228_v20  ;;  %v13306_v20 = vld [vmem:[%s16919_s9 + $0x360] ss:$8 sps:$4 sm:$0xff]  }
 0x90d   : > { %9105 = vmatprep.subr.bf16.mxu1 %v13233_v56  ;;  %v13311_v56 = vld [vmem:[%s16919_s9 + $0x374] ss:$8 sps:$4 sm:$0xff]  }
 0x910   : > { %9106 = vmatpush1.bf16.msra.mxu1 %v13231_v3  ;;  %v13309_v3 = vld [vmem:[%s16919_s9 + $0x370] ss:$8 sps:$4 sm:$0xff]  }
 0x911   : > { %9107 = vmatprep.subr.bf16.mxu1 %v13236_v57  ;;  %v13314_v57 = vld [vmem:[%s16919_s9 + $0x384] ss:$8 sps:$4 sm:$0xff]  }
 0x914   : > { %9108 = vmatpush1.bf16.msra.mxu1 %v13234_v23  ;;  %v13312_v23 = vld [vmem:[%s16919_s9 + $0x380] ss:$8 sps:$4 sm:$0xff]  }
 0x915   : > { %9109 = vmatprep.subr.bf16.mxu1 %v13239_v49  ;;  %v13317_v49 = vld [vmem:[%s16919_s9 + $0x394] ss:$8 sps:$4 sm:$0xff]  }
 0x918   : > { %9110 = vmatpush1.bf16.msra.mxu1 %v13237_v35  ;;  %v13315_v35 = vld [vmem:[%s16919_s9 + $0x390] ss:$8 sps:$4 sm:$0xff]  }
 0x919   : > { %9248 = vmatprep.subr.bf16.mxu1 %v13242_v33  ;;  %v13320_v33 = vld [vmem:[%s16919_s9 + $0x3a4] ss:$8 sps:$4 sm:$0xff]  }
 0x91b   : > { %9128 = vmatmul.mubr.bf16.vlgmr.msra.gmra.mrb[48].mxu1 %v8494_v26  ;;  %v13254_v26 = vld [vmem:[%s16919_s9 + $0x244] ss:$8 sps:$4 sm:$0xff]  }
 0x91c   : > { %9249 = vmatpush1.bf16.msra.mxu1 %v13240_v52  ;;  %9280 = vmatprep.mubr.bf16.mxu1 %v16953_v11  ;;  %v13318_v52 = vld [vmem:[%s16919_s9 + $0x3a0] ss:$8 sps:$4 sm:$0xff]  }
 0x91d   : > { %9250 = vmatprep.subr.bf16.mxu1 %v13245_v21  ;;  %v13324_v21 = vld [vmem:[%s16919_s9 + $0x3c0] ss:$8 sps:$4 sm:$0xff]  }
 0x920   : > { %9251 = vmatpush1.bf16.msra.mxu1 %v13243_v50  ;;  %v13329_v50 = vld [vmem:[%s16919_s9 + $0x3d4] ss:$8 sps:$4 sm:$0xff]  }
 0x921   : > { %9252 = vmatprep.subr.bf16.mxu1 %v13248_v45  ;;  %v13327_v45 = vld [vmem:[%s16919_s9 + $0x3d0] ss:$8 sps:$4 sm:$0xff]  }
 0x924   : > { %9253 = vmatpush1.bf16.msra.mxu1 %v13246_v28  ;;  %v13332_v28 = vld [vmem:[%s16919_s9 + $0x3e4] ss:$8 sps:$4 sm:$0xff]  }
 0x925   : > { %9254 = vmatprep.subr.bf16.mxu1 %v13251_v2  ;;  %v13330_v2 = vld [vmem:[%s16919_s9 + $0x3e0] ss:$8 sps:$4 sm:$0xff]  }
 0x928   : > { %9255 = vmatpush1.bf16.msra.mxu1 %v13249_v59  ;;  %v13335_v59 = vld [vmem:[%s16919_s9 + $0x3f4] ss:$8 sps:$4 sm:$0xff]  }
 0x929   : > { %9256 = vmatprep.subr.bf16.mxu1 %v13254_v26  ;;  %v13333_v26 = vld [vmem:[%s16919_s9 + $0x3f0] ss:$8 sps:$4 sm:$0xff]  }
 0x92c   : > { %9257 = vmatpush1.bf16.msra.mxu1 %v13252_v62  ;;  %v13338_v62 = vld [vmem:[%s16919_s9 + $0x404] ss:$8 sps:$4 sm:$0xff]  }
 0x92d   : > { %9258 = vmatprep.subr.bf16.mxu1 %v13257_v16  ;;  %v13336_v16 = vld [vmem:[%s16919_s9 + $0x400] ss:$8 sps:$4 sm:$0xff]  }
 0x930   : > { %9259 = vmatpush1.bf16.msra.mxu1 %v13255_v15  ;;  %v13341_v15 = vld [vmem:[%s16919_s9 + $0x414] ss:$8 sps:$4 sm:$0xff]  }
 0x931   : > { %9260 = vmatprep.subr.bf16.mxu1 %v13260_v38  ;;  %v13339_v38 = vld [vmem:[%s16919_s9 + $0x410] ss:$8 sps:$4 sm:$0xff]  }
 0x934   : > { %9261 = vmatpush1.bf16.msra.mxu1 %v13258_v47  ;;  %v13344_v47 = vld [vmem:[%s16919_s9 + $0x424] ss:$8 sps:$4 sm:$0xff]  }
 0x935   : > { %9262 = vmatprep.subr.bf16.mxu1 %v13263_v14  ;;  %v13342_v14 = vld [vmem:[%s16919_s9 + $0x420] ss:$8 sps:$4 sm:$0xff]  }
 0x938   : > { %9263 = vmatpush1.bf16.msra.mxu1 %v13261_v40  ;;  %v13353_v40 = vld [vmem:[%s16919_s9 + $0x454] ss:$8 sps:$4 sm:$0xff]  }
 0x939   : > { %9401 = vmatprep.subr.bf16.mxu1 %v13266_v0  ;;  %v13351_v0 = vld [vmem:[%s16919_s9 + $0x450] ss:$8 sps:$4 sm:$0xff]  }
 0x93b   : > { %9281 = vmatmul.mubr.bf16.vlgmr.msra.gmra.mrb[48].mxu1 %v8495_v48  ;;  %v13278_v48 = vld [vmem:[%s16919_s9 + $0x2c4] ss:$8 sps:$4 sm:$0xff]  }
 0x93c   : > { %9402 = vmatpush1.bf16.msra.mxu1 %v13264_v30  ;;  %9433 = vmatprep.mubr.bf16.mxu1 %v16953_v11  ;;  %v13356_v30 = vld [vmem:[%s16919_s9 + $0x464] ss:$8 sps:$4 sm:$0xff]  }
 0x93d   : > { %9403 = vmatprep.subr.bf16.mxu1 %v13269_v24  ;;  %v13354_v24 = vld [vmem:[%s16919_s9 + $0x460] ss:$8 sps:$4 sm:$0xff]  }
 0x940   : > { %9404 = vmatpush1.bf16.msra.mxu1 %v13267_v54  ;;  %v13359_v54 = vld [vmem:[%s16919_s9 + $0x474] ss:$8 sps:$4 sm:$0xff]  }
 0x941   : > { %9405 = vmatprep.subr.bf16.mxu1 %v13272_v46  ;;  %v13357_v46 = vld [vmem:[%s16919_s9 + $0x470] ss:$8 sps:$4 sm:$0xff]  }
 0x944   : > { %9406 = vmatpush1.bf16.msra.mxu1 %v13270_v25 }
 0x945   : > { %9407 = vmatprep.subr.bf16.mxu1 %v13275_v43 }
 0x948   : > { %9408 = vmatpush1.bf16.msra.mxu1 %v13273_v19 }
 0x949   : > { %9409 = vmatprep.subr.bf16.mxu1 %v13278_v48 }
 0x94c   : > { %9410 = vmatpush1.bf16.msra.mxu1 %v13276_v44 }
 0x94d   : > { %9411 = vmatprep.subr.bf16.mxu1 %v13281_v29 }
 0x950   : > { %9412 = vmatpush1.bf16.msra.mxu1 %v13279_v34 }
 0x951   : > { %9413 = vmatprep.subr.bf16.mxu1 %v13284_v5 }
 0x954   : > { %9414 = vmatpush1.bf16.msra.mxu1 %v13282_v53 }
 0x955   : > { %9415 = vmatprep.subr.bf16.mxu1 %v13287_v4 }
 0x958   : > { %9416 = vmatpush1.bf16.msra.mxu1 %v13285_v12 }
 0x959   : > { %9554 = vmatprep.subr.bf16.mxu1 %v13290_v8 }
 0x95b   : > { %9434 = vmatmul.mubr.bf16.vlgmr.msra.gmra.mrb[48].mxu1 %v8496_v6  ;;  %v13302_v6 = vld [vmem:[%s16919_s9 + $0x344] ss:$8 sps:$4 sm:$0xff]  }
 0x95c   : > { %9555 = vmatpush1.bf16.msra.mxu1 %v13288_v1  ;;  %9586 = vmatprep.mubr.bf16.mxu1 %v16953_v11 }
 0x95d   : > { %9556 = vmatprep.subr.bf16.mxu1 %v13293_v61 }
 0x960   : > { %9557 = vmatpush1.bf16.msra.mxu1 %v13291_v27 }
 0x961   : > { %9558 = vmatprep.subr.bf16.mxu1 %v13296_v32 }
 0x964   : > { %9559 = vmatpush1.bf16.msra.mxu1 %v13294_v18 }
 0x965   : > { %9560 = vmatprep.subr.bf16.mxu1 %v13299_v9 }
 0x968   : > { %9561 = vmatpush1.bf16.msra.mxu1 %v13297_v60 }
 0x969   : > { %9562 = vmatprep.subr.bf16.mxu1 %v13302_v6 }
 0x96c   : > { %9563 = vmatpush1.bf16.msra.mxu1 %v13300_v63 }
 0x96d   : > { %9564 = vmatprep.subr.bf16.mxu1 %v13305_v42 }
 0x970   : > { %9565 = vmatpush1.bf16.msra.mxu1 %v13303_v39 }
 0x971   : > { %9566 = vmatprep.subr.bf16.mxu1 %v13308_v51 }
 0x974   : > { %9567 = vmatpush1.bf16.msra.mxu1 %v13306_v20 }
 0x975   : > { %9568 = vmatprep.subr.bf16.mxu1 %v13311_v56 }
 0x978   : > { %9569 = vmatpush1.bf16.msra.mxu1 %v13309_v3 }
 0x979   : > { %9707 = vmatprep.subr.bf16.mxu1 %v13314_v57 }
 0x97b   : > { %9587 = vmatmul.mubr.bf16.vlgmr.msra.gmra.mrb[48].mxu1 %v8497_v10  ;;  %v13326_v10 = vld [vmem:[%s16919_s9 + $0x3c4] ss:$8 sps:$4 sm:$0xff]  }
 0x97c   : > { %9708 = vmatpush1.bf16.msra.mxu1 %v13312_v23  ;;  %9739 = vmatprep.mubr.bf16.mxu1 %v16953_v11 }
 0x97d   : > { %9709 = vmatprep.subr.bf16.mxu1 %v13317_v49 }
 0x980   : > { %9710 = vmatpush1.bf16.msra.mxu1 %v13315_v35 }
 0x981   : > { %9711 = vmatprep.subr.bf16.mxu1 %v13320_v33 }
 0x984   : > { %9712 = vmatpush1.bf16.msra.mxu1 %v13318_v52 }
 0x985   : > { %9713 = vmatprep.subr.bf16.mxu1 %v13323_v58 }
 0x988   : > { %9714 = vmatpush1.bf16.msra.mxu1 %v13321_v55 }
 0x989   : > { %9715 = vmatprep.subr.bf16.mxu1 %v13326_v10 }
 0x98c   : > { %9716 = vmatpush1.bf16.msra.mxu1 %v13324_v21 }
 0x98d   : > { %9717 = vmatprep.subr.bf16.mxu1 %v13329_v50 }
 0x990   : > { %9718 = vmatpush1.bf16.msra.mxu1 %v13327_v45 }
 0x991   : > { %9719 = vmatprep.subr.bf16.mxu1 %v13332_v28 }
 0x994   : > { %9720 = vmatpush1.bf16.msra.mxu1 %v13330_v2 }
 0x995   : > { %9721 = vmatprep.subr.bf16.mxu1 %v13335_v59 }
 0x998   : > { %9722 = vmatpush1.bf16.msra.mxu1 %v13333_v26 }
 0x999   : > { %9860 = vmatprep.subr.bf16.mxu1 %v13338_v62 }
 0x99b   : > { %9740 = vmatmul.mubr.bf16.vlgmr.msra.gmra.mrb[48].mxu1 %v8498_v7  ;;  %v13348_v7 = vld [vmem:[%s16919_s9 + $0x440] ss:$8 sps:$4 sm:$0xff]  }
 0x99c   : > { %9861 = vmatpush1.bf16.msra.mxu1 %v13336_v16  ;;  %9892 = vmatprep.mubr.bf16.mxu1 %v16953_v11  ;;  %v13345_v11 = vld [vmem:[%s16919_s9 + $0x430] ss:$8 sps:$4 sm:$0xff]  }
 0x99d   : > { %9862 = vmatprep.subr.bf16.mxu1 %v13341_v15 }
 0x9a0   : > { %9863 = vmatpush1.bf16.msra.mxu1 %v13339_v38 }
 0x9a1   : > { %9864 = vmatprep.subr.bf16.mxu1 %v13344_v47 }
 0x9a4   : > { %9865 = vmatpush1.bf16.msra.mxu1 %v13342_v14 }
 0x9a5   : > { %9866 = vmatprep.subr.bf16.mxu1 %v13347_v31 }
 0x9a8   : > { %9867 = vmatpush1.bf16.msra.mxu1 %v13345_v11 }
 0x9a9   : > { %9868 = vmatprep.subr.bf16.mxu1 %v13350_v13 }
 0x9ac   : > { %9869 = vmatpush1.bf16.msra.mxu1 %v13348_v7 }
 0x9ad   : > { %9870 = vmatprep.subr.bf16.mxu1 %v13353_v40 }
 0x9b0   : > { %9871 = vmatpush1.bf16.msra.mxu1 %v13351_v0 }
 0x9b1   : > { %9872 = vmatprep.subr.bf16.mxu1 %v13356_v30 }
 0x9b4   : > { %9873 = vmatpush1.bf16.msra.mxu1 %v13354_v24 }
 0x9b5   : > { %9874 = vmatprep.subr.bf16.mxu1 %v13359_v54 }
 0x9b8   : > { %9875 = vmatpush1.bf16.msra.mxu1 %v13357_v46 }
 0x9bb   : > { %9893 = vmatmul.mubr.bf16.vlgmr.msra.gmra.mrb[48].mxu1 %v8499_v22 }
 0x9bc   : > { %13373 = shalt.err (!%p13370_p3)
}
 0x9bd   : > { %s13374_s16 = scalar_lea.hbm %s16854_s27, 4096  ;;  %s13378_s23 = scalar_lea.hbm %s16921_s11, 8192 }
 0x9be   : > { %p13375_p4 = scmp.ne.s32.totalorder %s16854_s27, %s13374_s16  ;;  %p13379_p9 = scmp.lt.u32.totalorder %s16854_s27, %s16921_s11 }
 0x9bf   : > { %p13380_p10 = scmp.lt.u32.totalorder %s13378_s23, %s13374_s16  ;;  %p13382_p12 = scmp.lt.u32.totalorder %s13374_s16, %s16854_s27 }
 0x9c0   : > { %p13376_p7 = pnand %p13375_p4, %p13533_p5 }
 0x9c1   : > { %p13381_p11 = por %p13380_p10, %p13379_p9 }
 0x9c2   : > { %p13377_p8 = pneg %p13376_p7 }
 0x9c3   : > { %p13383_p13 = por %p13382_p12, %p13381_p11 }
 0x9c5   : > { %p13384_p0 = pnand %p13383_p13, %p13377_p8 }
 0x9c7   : > { %13387 = shalt.err (!%p13384_p0)
}
 0x9c8   : > { %s13428_s20 = smov 512   ;;  %s13429_s19 = smov 32   ;;  %v8517_v41 = vld [vmem:[%s16920_s10] sm:$0x3] }
 0x9c9   : > { %12047 = dma.vmem_to_hbm [thread:$0]  (%p13533_p5), %s16856_s30, 4096, %s16854_s27, %s16860_s29, %s13428_s20, %s13428_s20, %s13429_s19   ;;  %v8522_v17 = vrot.slane %v8517_v41, %v13635_v36  ;;  %v8526_v22 = vrot.slane %v8517_v41, %v13638_v37 }
 0x9ca   : > { %s10043_s28 = sshll.u32 %s13516_s25, 1 }
 0x9cb   : > { %p425_p1 = scmp.lt.s32.totalorder %s10043_s28, 3 }
 0x9cd   : > { %s16962_s28 = smov (!%p425_p1, %s10043_s28), 3 }
 0x9ce   : > { %s11567_s16 = sshll.u32 %s16962_s28, 4 }
 0x9cf   : > { %s429_s13 = scalar_lea.vmem %s16922_s12, %s11567_s16 }
 0xa8e   : > { %v9894_v25 = vpop.f32.mrb[48].mxu1 }
 0xa8f   : > { %v11787_v43 = vadd.f32 %v9894_v25, %v8522_v17  ;;  %v9896_v19 = vpop.f32.mrb[49].mxu1 }
 0xa90   : > { %v11788_v48 = vadd.f32 %v9896_v19, %v8526_v22  ;;  %v9898_v44 = vpop.f32.mrb[50].mxu1 }
 0xa91   : > { %v9915_v29 = vmax.f32 %v11787_v43, 0.0  ;;  %v11789_v34 = vadd.f32 %v9898_v44, %v8522_v17  ;;  %v9900_v5 = vpop.f32.mrb[51].mxu1 }
 0xa92   : > { %v9916_v53 = vmax.f32 %v11788_v48, 0.0  ;;  %v11790_v4 = vadd.f32 %v9900_v5, %v8526_v22 }
 0xa93   : > { %9919 = vst [vmem:[%s429_s13] sm:$0xff] %v9915_v29  ;;  %v9917_v12 = vmax.f32 %v11789_v34, 0.0 }
 0xa94   : > { %9920 = vst [vmem:[%s429_s13 + $0x8] sm:$0xff] %v9916_v53  ;;  %v9918_v36 = vmax.f32 %v11790_v4, 0.0 }
 0xa95   : > { %9921 = vst [vmem:[%s429_s13 + $0x10] sm:$0xff] %v9917_v12 }
 0xa96   : > { %9922 = vst [vmem:[%s429_s13 + $0x18] sm:$0xff] %v9918_v36 }
 0xa97 PF: > { %p12053_p5 = scmp.ge.s32.totalorder %s13422_s24, 2  ;;  %s9963_s25 = sand.u32 1, %s13410_s21  }
 0xa98   : > { %s9964_s30 = scalar_lea.sflag [#allocation9], %s9963_s25 }
 0xa99   : > { %p12050_p2 = pnand %p12053_p5, %p13537_p6 }
 0xa9b   : > { %13405 = dma.done.wait (!%p12050_p2), %s9964_s30, 4096  }
 0xa9c   : > { %13407 = vsyncadd (!%p12050_p2), %s9964_s30, 4294963200  ;;  %s16954_s24 = sld [smem:[#allocation12_spill]]  ;;  %s16955_s27 = sld [smem:[#allocation11_spill]] }
 0xa9d   : > { %s16956_s23 = sld [smem:[#allocation13_spill]]  ;;  %s16957_s21 = smov %s13414_s22 }
 0xaa2   : > { %p23_p3 = scmp.ge.s32.totalorder %s16954_s24, 4   ;;  %s16958_s22 = smov %s16955_s27 }
 0xaa4   :  { %25 = sbr.rel (!%p23_p3) target bundleno = 3 (0x3), region = 143 }
 0xaab   :  { %9978 = vsyncpa [#allocation9], 1 }
 0xaac   :  { %9980 = vsyncpa [#allocation9 + $0x1], 1 }

</bundles_post_ra>
